<compile_context>
chip_gen: v7x
topology: tpu7x:2x2x1
jax: 0.10.0
libtpu: 0.0.40
codegen_flags: <defaults>
</compile_context>

<pallas_src>
import jax
import jax.numpy as jnp
from jax.experimental import pallas as pl
from jax.experimental.pallas import tpu as pltpu


# ---------------- in-kernel helpers ----------------

def _conv3x3_same_cols(pairs, n_out, n_cols):
    """3x3 'SAME' conv producing n_out rows over n_cols columns.

    pairs: list of (xwin, w_taps); xwin has n_out+2 rows (1-row halo each side,
    already zeroed where it falls outside the image); w_taps is (9, K, Co) bf16
    taps indexed dy*3 + dx.  Each tap is one MXU matmul on an *unshifted* row
    slab; the dx = +/-1 column shifts (which also implement the left/right zero
    padding) are applied to the three f32 accumulators at the end.
    """
    cout = pairs[0][1].shape[-1]
    accs = [jnp.zeros((n_out * n_cols, cout), jnp.float32) for _ in range(3)]
    for xwin, w_taps in pairs:
        k = xwin.shape[-1]
        for dy in range(3):
            xr = xwin[dy:dy + n_out].reshape(n_out * n_cols, k)
            for dx in range(3):
                accs[dx] = accs[dx] + jnp.dot(
                    xr, w_taps[dy * 3 + dx],
                    preferred_element_type=jnp.float32)
    a0, a1, a2 = [a.reshape(n_out, n_cols, cout) for a in accs]
    zero_col = jnp.zeros((n_out, 1, cout), jnp.float32)
    out = a1
    out = out + jnp.concatenate([zero_col, a0[:, :n_cols - 1, :]], axis=1)
    out = out + jnp.concatenate([a2[:, 1:, :], zero_col], axis=1)
    return out


# ---------------- the fused kernel ----------------

def _upsampling_kernel(xb_ref, xt_ref, xd_ref,
                       skb_ref, skt_ref, skd_ref,
                       wt_ref, bt_ref,
                       w1u_ref, w1s_ref, b1_ref,
                       w2_ref, b2_ref, tp_ref,
                       o_ref, up_buf, h1_ref):
    """trans_conv(x) -> [concat skip] -> relu(conv1) -> relu(conv2) + time.

    xb/xt/xd: x row-tile body (TR//2, W, Cin) bf16 plus 1-row top/bottom halos.
    skb/skt/skd: skip body (TR, 2W, Ch) bf16 plus 2-row top/bottom halos.
    wt: (4, Cin, Ch) bf16 trans-conv taps, index = 2*p + q.  bt: (1, Ch) f32.
    w1u/w1s: (9, Ch, Co) bf16 conv1 taps split into up/skip channel halves.
    w2: (9, Co, Co) bf16.  b1/b2: (1, Co) f32.  tp: (1, Co) f32 time term.
    o_ref: (TR, 2W, Co) f32 output tile.
    up_buf: (TR+4, 2W, Ch) f32 VMEM scratch (trans-conv output incl. halo).
    h1_ref: (TR+2, 2W, Co) bf16 VMEM scratch (conv1 output incl. halo).
    """
    t = pl.program_id(1)
    n_tiles = pl.num_programs(1)
    TR, C2, Co = o_ref.shape
    Ch = up_buf.shape[-1]
    W = C2 // 2
    R = n_tiles * TR                 # total output rows (= 2H)
    row0 = t * TR                    # first output row of this tile

    # ---- ConvTranspose2d(k=2, s=2) on the x window (TR//2 + 2 rows) --------
    xw = jnp.concatenate([xt_ref[...], xb_ref[...], xd_ref[...]], axis=0)
    trx2 = xw.shape[0]                                   # TR//2 + 2
    xf = xw.reshape(trx2 * W, xw.shape[-1])
    bias_t = bt_ref[0, :]
    for q in range(2):
        cols = []
        for p in range(2):
            y = jnp.dot(xf, wt_ref[2 * p + q],
                        preferred_element_type=jnp.float32) + bias_t
            cols.append(y.reshape(trx2, W, Ch))
        # Row (p) interleave: major-dim stack + reshape (layout preserving).
        col_q = jnp.stack(cols, axis=1).reshape(2 * trx2, W, Ch)
        # Column (q) interleave: stride-2 store into the VMEM scratch.
        up_buf[:, pl.ds(q, W, 2), :] = col_q

    # ---- haloed (TR+4)-row input windows; rows outside the image are conv1's
    #      zero padding (this also discards the edge-clamped halo fetches) ----
    row = jax.lax.broadcasted_iota(jnp.int32, (TR + 4, 1, 1), 0)
    row_ok = (row0 - 2 + row >= 0) & (row0 - 2 + row < R)

    up_win = jnp.where(row_ok, up_buf[...], 0.0).astype(jnp.bfloat16)
    sk_win = jnp.concatenate([skt_ref[...], skb_ref[...], skd_ref[...]],
                             axis=0)
    sk_win = jnp.where(row_ok, sk_win, 0).astype(jnp.bfloat16)

    # ---- conv1 + bias + ReLU over TR+2 rows (the row halo conv2 needs) -----
    h1 = _conv3x3_same_cols([(up_win, w1u_ref), (sk_win, w1s_ref)],
                            TR + 2, C2) + b1_ref[0, :]
    h1 = jnp.maximum(h1, 0.0)
    hrow = jax.lax.broadcasted_iota(jnp.int32, (TR + 2, 1, 1), 0)
    h_ok = (row0 - 1 + hrow >= 0) & (row0 - 1 + hrow < R)
    h1_ref[...] = jnp.where(h_ok, h1, 0.0).astype(jnp.bfloat16)

    # ---- conv2 + bias + ReLU + time embedding -------------------------------
    h2 = _conv3x3_same_cols([(h1_ref[...], w2_ref)], TR, C2) + b2_ref[0, :]
    o_ref[...] = (jnp.maximum(h2, 0.0) + tp_ref[0, :]).astype(o_ref.dtype)


# ---------------- pallas_call wrapper ----------------

def _largest_divisor(n, cap, multiple=1):
    for d in range(max(multiple, min(n, cap)), 0, -1):
        if n % d == 0 and d % multiple == 0:
            return d
    return n


def upsampling_fused(x, skip, wt_taps, bt, w1u, w1s, b1, w2, b2, tproj3,
                     *, row_tile):
    """Fully fused UpSampling block, tiled over (batch, output-row tiles)."""
    B, H, W, Cin = x.shape
    Ch = wt_taps.shape[-1]
    _, R, C2, _ = skip.shape
    Co = w2.shape[-1]
    assert R == 2 * H and C2 == 2 * W
    assert row_tile % 2 == 0 and R % row_tile == 0
    nt = R // row_tile
    trx = row_tile // 2           # x rows per tile (1-row blocks for halos)
    half = row_tile // 2          # skip halo uses 2-row blocks

    xbody = lambda b, t: (b, t, 0, 0)
    xtop = lambda b, t: (b, jnp.maximum(t * trx - 1, 0), 0, 0)
    xbot = lambda b, t: (b, jnp.minimum((t + 1) * trx, H - 1), 0, 0)
    sbody = lambda b, t: (b, t, 0, 0)
    stop = lambda b, t: (b, jnp.maximum(t * half - 1, 0), 0, 0)
    sbot = lambda b, t: (b, jnp.minimum((t + 1) * half, R // 2 - 1), 0, 0)

    return pl.pallas_call(
        _upsampling_kernel,
        out_shape=jax.ShapeDtypeStruct((B, R, C2, Co), jnp.float32),
        grid=(B, nt),
        in_specs=[
            pl.BlockSpec((None, trx, W, Cin), xbody),
            pl.BlockSpec((None, 1, W, Cin), xtop),
            pl.BlockSpec((None, 1, W, Cin), xbot),
            pl.BlockSpec((None, row_tile, C2, Ch), sbody),
            pl.BlockSpec((None, 2, C2, Ch), stop),
            pl.BlockSpec((None, 2, C2, Ch), sbot),
            pl.BlockSpec((4, Cin, Ch), lambda b, t: (0, 0, 0)),
            pl.BlockSpec((1, Ch), lambda b, t: (0, 0)),
            pl.BlockSpec((9, Ch, Co), lambda b, t: (0, 0, 0)),
            pl.BlockSpec((9, Ch, Co), lambda b, t: (0, 0, 0)),
            pl.BlockSpec((1, Co), lambda b, t: (0, 0)),
            pl.BlockSpec((9, Co, Co), lambda b, t: (0, 0, 0)),
            pl.BlockSpec((1, Co), lambda b, t: (0, 0)),
            pl.BlockSpec((None, 1, Co), lambda b, t: (b, 0, 0)),
        ],
        out_specs=pl.BlockSpec((None, row_tile, C2, Co), sbody),
        scratch_shapes=[
            pltpu.VMEM((row_tile + 4, C2, Ch), jnp.float32),
            pltpu.VMEM((row_tile + 2, C2, Co), jnp.bfloat16),
        ],
        compiler_params=pltpu.CompilerParams(
            dimension_semantics=("parallel", "parallel"),
            vmem_limit_bytes=64 * 1024 * 1024),
    )(x, x, x, skip, skip, skip,
      wt_taps, bt, w1u, w1s, b1, w2, b2, tproj3)


# ---------------- parameters + forward (mirrors UpSampling.forward) ----------

def init_params(key, in_dim, out_dim):
    ch = in_dim // 2
    ks = jax.random.split(key, 8)
    s = 0.1
    return {
        # ConvTranspose2d(in_dim, in_dim//2, 2, 2): PyTorch weight (in, out, 2, 2)
        "wt": s * jax.random.normal(ks[0], (in_dim, ch, 2, 2), jnp.float32),
        "bt": s * jax.random.normal(ks[1], (ch,), jnp.float32),
        # DoubleConv conv1: Conv2d(in_dim, out_dim, 3, pad=1)
        "w1": s * jax.random.normal(ks[2], (out_dim, in_dim, 3, 3), jnp.float32),
        "b1": s * jax.random.normal(ks[3], (out_dim,), jnp.float32),
        # DoubleConv conv2: Conv2d(out_dim, out_dim, 3, pad=1)
        "w2": s * jax.random.normal(ks[4], (out_dim, out_dim, 3, 3), jnp.float32),
        "b2": s * jax.random.normal(ks[5], (out_dim,), jnp.float32),
        # time_linear: Linear(128, out_dim)
        "wl": s * jax.random.normal(ks[6], (128, out_dim), jnp.float32),
        "bl": s * jax.random.normal(ks[7], (out_dim,), jnp.float32),
    }


def upsampling_forward(params, x_nchw, skip_nchw, time_emb, *, row_tile=None):
    """x: (B, in_dim, H, W), skip: (B, in_dim//2, 2H, 2W), time_emb: (B, 128)
    Returns (B, out_dim, 2H, 2W) NCHW, matching the PyTorch module."""
    x = jnp.transpose(x_nchw, (0, 2, 3, 1)).astype(jnp.bfloat16)        # NHWC
    skip = jnp.transpose(skip_nchw, (0, 2, 3, 1)).astype(jnp.bfloat16)  # NHWC

    B, H, W, in_dim = x.shape
    ch = in_dim // 2
    out_dim = params["w1"].shape[0]
    R = 2 * H

    if row_tile is None:
        row_tile = _largest_divisor(R, 64, multiple=2)

    # ConvTranspose2d weights: (Cin, Ch, 2, 2) -> (4, Cin, Ch), tap = 2*p + q
    wt_taps = jnp.transpose(params["wt"], (2, 3, 0, 1)).reshape(4, in_dim, ch)
    wt_taps = wt_taps.astype(jnp.bfloat16)
    bt = params["bt"].reshape(1, ch).astype(jnp.float32)

    # Time projection: tiny (B,128)@(128,Co); folded into the kernel's add.
    tproj = time_emb.astype(jnp.float32) @ params["wl"] + params["bl"]
    tproj3 = tproj.reshape(B, 1, out_dim).astype(jnp.float32)

    # DoubleConv weights: PyTorch (Co, Ci, 3, 3) -> (9, Ci, Co); split conv1
    # taps into the up / skip channel halves so the concat never materializes.
    w1 = jnp.transpose(params["w1"], (2, 3, 1, 0)).reshape(9, in_dim, out_dim)
    w1u = w1[:, :ch, :].astype(jnp.bfloat16)
    w1s = w1[:, ch:, :].astype(jnp.bfloat16)
    w2 = jnp.transpose(params["w2"], (2, 3, 1, 0)).reshape(9, out_dim, out_dim)
    w2 = w2.astype(jnp.bfloat16)
    b1 = params["b1"].reshape(1, out_dim).astype(jnp.float32)
    b2 = params["b2"].reshape(1, out_dim).astype(jnp.float32)

    out = upsampling_fused(x, skip, wt_taps, bt, w1u, w1s, b1, w2, b2, tproj3,
                           row_tile=row_tile)                   # (B, R, 2W, Co)
    return jnp.transpose(out, (0, 3, 1, 2))                     # back to NCHW


# ---------------- pure-JAX f32 reference for verification ----------------

def reference_forward(params, x_nchw, skip_nchw, time_emb):
    x = jnp.transpose(x_nchw, (0, 2, 3, 1))
    skip = jnp.transpose(skip_nchw, (0, 2, 3, 1))
    B, H, W, Cin = x.shape
    ch = Cin // 2
    up = jnp.einsum('bhwc,copq->bhpwqo', x, params["wt"])
    up = up.reshape(B, 2 * H, 2 * W, ch) + params["bt"]
    cat = jnp.concatenate([up, skip], axis=-1)

    def conv3x3(z, w_pt, b_pt):
        w_hwio = jnp.transpose(w_pt, (2, 3, 1, 0))
        y = jax.lax.conv_general_dilated(
            z, w_hwio, window_strides=(1, 1), padding='SAME',
            dimension_numbers=('NHWC', 'HWIO', 'NHWC'))
        return y + b_pt

    h1 = jax.nn.relu(conv3x3(cat, params["w1"], params["b1"]))
    h2 = jax.nn.relu(conv3x3(h1, params["w2"], params["b2"]))
    tproj = time_emb @ params["wl"] + params["bl"]
    out = h2 + tproj[:, None, None, :]
    return jnp.transpose(out, (0, 3, 1, 2))


if __name__ == "__main__":
    key = jax.random.PRNGKey(0)
    # time_emb dim is fixed to 128 by the module (Linear(128, out_dim))
    B, in_dim, out_dim, H, W = 2, 16, 16, 8, 8
    kx, ks, kt, kp = jax.random.split(key, 4)
    x = jax.random.normal(kx, (B, in_dim, H, W), jnp.float32)
    skip_x = jax.random.normal(ks, (B, in_dim // 2, 2 * H, 2 * W), jnp.float32)
    time_emb = jax.random.normal(kt, (B, 128), jnp.float32)
    params = init_params(kp, in_dim, out_dim)

    fwd = jax.jit(upsampling_forward, static_argnames=("row_tile",))
    # Small row tile so the multi-tile / halo paths are exercised at toy sizes.
    out = jax.block_until_ready(fwd(params, x, skip_x, time_emb, row_tile=8))
    ref = jax.block_until_ready(reference_forward(params, x, skip_x, time_emb))

    assert out.shape == (B, out_dim, 2 * H, 2 * W), out.shape
    err = float(jnp.max(jnp.abs(out - ref)))
    # bf16 matmul inputs (f32 accumulation) => loosened tolerance vs f32 ref.
    assert jnp.allclose(out, ref, atol=6e-2, rtol=6e-2), f"max abs err {err}"
    print("KERNEL_OK")
</pallas_src>

<mosaic_0001>
module attributes {stable_mosaic.version = 11 : i64} {
  func.func @_upsampling_kernel(%arg0: i32, %arg1: i32, %arg2: memref<1x4x8x16xbf16, #tpu.memory_space<vmem>>, %arg3: memref<1x1x8x16xbf16, #tpu.memory_space<vmem>>, %arg4: memref<1x1x8x16xbf16, #tpu.memory_space<vmem>>, %arg5: memref<1x8x16x8xbf16, #tpu.memory_space<vmem>>, %arg6: memref<1x2x16x8xbf16, #tpu.memory_space<vmem>>, %arg7: memref<1x2x16x8xbf16, #tpu.memory_space<vmem>>, %arg8: memref<4x16x8xbf16, #tpu.memory_space<vmem>>, %arg9: memref<1x8xf32, #tpu.memory_space<vmem>>, %arg10: memref<9x8x16xbf16, #tpu.memory_space<vmem>>, %arg11: memref<9x8x16xbf16, #tpu.memory_space<vmem>>, %arg12: memref<1x16xf32, #tpu.memory_space<vmem>>, %arg13: memref<9x16x16xbf16, #tpu.memory_space<vmem>>, %arg14: memref<1x16xf32, #tpu.memory_space<vmem>>, %arg15: memref<1x1x16xf32, #tpu.memory_space<vmem>>, %arg16: memref<1x8x16x16xf32, #tpu.memory_space<vmem>>, %arg17: memref<12x16x8xf32, #tpu.memory_space<vmem>>, %arg18: memref<10x16x16xbf16, #tpu.memory_space<vmem>>) attributes {dimension_semantics = [#tpu.dimension_semantics<parallel>, #tpu.dimension_semantics<parallel>], iteration_bounds = array<i64: 2, 2>, scalar_prefetch = 0 : i64, scratch_operands = 2 : i64, tpu.core_type = #tpu.core_type<tc>, window_params = [{transform_indices = @transform_0, window_bounds = array<i64: 1, 4, 8, 16>}, {transform_indices = @transform_1, window_bounds = array<i64: 1, 1, 8, 16>}, {transform_indices = @transform_2, window_bounds = array<i64: 1, 1, 8, 16>}, {transform_indices = @transform_3, window_bounds = array<i64: 1, 8, 16, 8>}, {transform_indices = @transform_4, window_bounds = array<i64: 1, 2, 16, 8>}, {transform_indices = @transform_5, window_bounds = array<i64: 1, 2, 16, 8>}, {pipeline_mode = #tpu.pipeline_mode<synchronous>, transform_indices = @transform_6, window_bounds = array<i64: 4, 16, 8>}, {pipeline_mode = #tpu.pipeline_mode<synchronous>, transform_indices = @transform_7, window_bounds = array<i64: 1, 8>}, {pipeline_mode = #tpu.pipeline_mode<synchronous>, transform_indices = @transform_8, window_bounds = array<i64: 9, 8, 16>}, {pipeline_mode = #tpu.pipeline_mode<synchronous>, transform_indices = @transform_9, window_bounds = array<i64: 9, 8, 16>}, {pipeline_mode = #tpu.pipeline_mode<synchronous>, transform_indices = @transform_10, window_bounds = array<i64: 1, 16>}, {pipeline_mode = #tpu.pipeline_mode<synchronous>, transform_indices = @transform_11, window_bounds = array<i64: 9, 16, 16>}, {pipeline_mode = #tpu.pipeline_mode<synchronous>, transform_indices = @transform_12, window_bounds = array<i64: 1, 16>}, {transform_indices = @transform_13, window_bounds = array<i64: 1, 1, 16>}, {transform_indices = @transform_14, window_bounds = array<i64: 1, 8, 16, 16>}]} {
    %c8_i32 = arith.constant 8 : i32
    %0 = arith.muli %arg1, %c8_i32 : i32
    %c0 = arith.constant 0 : index
    %c0_0 = arith.constant 0 : index
    %c0_1 = arith.constant 0 : index
    %c0_2 = arith.constant 0 : index
    %1 = vector.load %arg3[%c0, %c0_0, %c0_1, %c0_2] : memref<1x1x8x16xbf16, #tpu.memory_space<vmem>>, vector<1x1x8x16xbf16>
    %2 = vector.shape_cast %1 : vector<1x1x8x16xbf16> to vector<1x8x16xbf16>
    %c0_3 = arith.constant 0 : index
    %c0_4 = arith.constant 0 : index
    %c0_5 = arith.constant 0 : index
    %c0_6 = arith.constant 0 : index
    %3 = vector.load %arg2[%c0_3, %c0_4, %c0_5, %c0_6] : memref<1x4x8x16xbf16, #tpu.memory_space<vmem>>, vector<1x4x8x16xbf16>
    %4 = vector.shape_cast %3 : vector<1x4x8x16xbf16> to vector<4x8x16xbf16>
    %c0_7 = arith.constant 0 : index
    %c0_8 = arith.constant 0 : index
    %c0_9 = arith.constant 0 : index
    %c0_10 = arith.constant 0 : index
    %5 = vector.load %arg4[%c0_7, %c0_8, %c0_9, %c0_10] : memref<1x1x8x16xbf16, #tpu.memory_space<vmem>>, vector<1x1x8x16xbf16>
    %6 = vector.shape_cast %5 : vector<1x1x8x16xbf16> to vector<1x8x16xbf16>
    %7 = tpu.concatenate %2, %4, %6 in 0 : vector<1x8x16xbf16>, vector<4x8x16xbf16>, vector<1x8x16xbf16> -> vector<6x8x16xbf16>
    %8 = vector.shape_cast %7 : vector<6x8x16xbf16> to vector<48x16xbf16>
    %c0_11 = arith.constant 0 : index
    %c0_12 = arith.constant 0 : index
    %9 = vector.load %arg9[%c0_11, %c0_12] : memref<1x8xf32, #tpu.memory_space<vmem>>, vector<1x8xf32>
    %10 = vector.shape_cast %9 : vector<1x8xf32> to vector<8xf32>
    %c0_13 = arith.constant 0 : index
    %c0_14 = arith.constant 0 : index
    %c0_15 = arith.constant 0 : index
    %11 = vector.load %arg8[%c0_13, %c0_14, %c0_15] : memref<4x16x8xbf16, #tpu.memory_space<vmem>>, vector<1x16x8xbf16>
    %12 = vector.shape_cast %11 : vector<1x16x8xbf16> to vector<16x8xbf16>
    %cst = arith.constant dense<0.000000e+00> : vector<48x8xf32>
    %13 = tpu.matmul %8, %12, %cst {dimension_numbers = #tpu.dot_dimension_numbers<[1], [0], [0], [1], [0, 0, 1, 1], [], []>} : vector<48x16xbf16>, vector<16x8xbf16>, vector<48x8xf32> -> vector<48x8xf32>
    %14 = vector.shape_cast %10 : vector<8xf32> to vector<1x8xf32>
    %15 = vector.broadcast %14 : vector<1x8xf32> to vector<48x8xf32>
    %16 = arith.addf %13, %15 : vector<48x8xf32>
    %17 = vector.shape_cast %16 : vector<48x8xf32> to vector<6x8x8xf32>
    %c2 = arith.constant 2 : index
    %c0_16 = arith.constant 0 : index
    %c0_17 = arith.constant 0 : index
    %18 = vector.load %arg8[%c2, %c0_16, %c0_17] : memref<4x16x8xbf16, #tpu.memory_space<vmem>>, vector<1x16x8xbf16>
    %19 = vector.shape_cast %18 : vector<1x16x8xbf16> to vector<16x8xbf16>
    %cst_18 = arith.constant dense<0.000000e+00> : vector<48x8xf32>
    %20 = tpu.matmul %8, %19, %cst_18 {dimension_numbers = #tpu.dot_dimension_numbers<[1], [0], [0], [1], [0, 0, 1, 1], [], []>} : vector<48x16xbf16>, vector<16x8xbf16>, vector<48x8xf32> -> vector<48x8xf32>
    %21 = vector.shape_cast %10 : vector<8xf32> to vector<1x8xf32>
    %22 = vector.broadcast %21 : vector<1x8xf32> to vector<48x8xf32>
    %23 = arith.addf %20, %22 : vector<48x8xf32>
    %24 = vector.shape_cast %23 : vector<48x8xf32> to vector<6x8x8xf32>
    %25 = vector.shape_cast %17 : vector<6x8x8xf32> to vector<6x1x8x8xf32>
    %26 = vector.shape_cast %24 : vector<6x8x8xf32> to vector<6x1x8x8xf32>
    %27 = tpu.concatenate %25, %26 in 1 : vector<6x1x8x8xf32>, vector<6x1x8x8xf32> -> vector<6x2x8x8xf32>
    %28 = vector.shape_cast %27 : vector<6x2x8x8xf32> to vector<12x8x8xf32>
    %c0_19 = arith.constant 0 : index
    %c0_20 = arith.constant 0 : index
    %c0_21 = arith.constant 0 : index
    %29 = tpu.strided_load %arg17[%c0_19, %c0_20, %c0_21] {strides = array<i32: 1, 2, 1>} : memref<12x16x8xf32, #tpu.memory_space<vmem>>, vector<12x8x8xf32>
    tpu.strided_store %arg17[%c0_19, %c0_20, %c0_21], %28 {strides = array<i32: 1, 2, 1>} : memref<12x16x8xf32, #tpu.memory_space<vmem>>, vector<12x8x8xf32>
    %c1 = arith.constant 1 : index
    %c0_22 = arith.constant 0 : index
    %c0_23 = arith.constant 0 : index
    %30 = vector.load %arg8[%c1, %c0_22, %c0_23] : memref<4x16x8xbf16, #tpu.memory_space<vmem>>, vector<1x16x8xbf16>
    %31 = vector.shape_cast %30 : vector<1x16x8xbf16> to vector<16x8xbf16>
    %cst_24 = arith.constant dense<0.000000e+00> : vector<48x8xf32>
    %32 = tpu.matmul %8, %31, %cst_24 {dimension_numbers = #tpu.dot_dimension_numbers<[1], [0], [0], [1], [0, 0, 1, 1], [], []>} : vector<48x16xbf16>, vector<16x8xbf16>, vector<48x8xf32> -> vector<48x8xf32>
    %33 = vector.shape_cast %10 : vector<8xf32> to vector<1x8xf32>
    %34 = vector.broadcast %33 : vector<1x8xf32> to vector<48x8xf32>
    %35 = arith.addf %32, %34 : vector<48x8xf32>
    %36 = vector.shape_cast %35 : vector<48x8xf32> to vector<6x8x8xf32>
    %c3 = arith.constant 3 : index
    %c0_25 = arith.constant 0 : index
    %c0_26 = arith.constant 0 : index
    %37 = vector.load %arg8[%c3, %c0_25, %c0_26] : memref<4x16x8xbf16, #tpu.memory_space<vmem>>, vector<1x16x8xbf16>
    %38 = vector.shape_cast %37 : vector<1x16x8xbf16> to vector<16x8xbf16>
    %cst_27 = arith.constant dense<0.000000e+00> : vector<48x8xf32>
    %39 = tpu.matmul %8, %38, %cst_27 {dimension_numbers = #tpu.dot_dimension_numbers<[1], [0], [0], [1], [0, 0, 1, 1], [], []>} : vector<48x16xbf16>, vector<16x8xbf16>, vector<48x8xf32> -> vector<48x8xf32>
    %40 = vector.shape_cast %10 : vector<8xf32> to vector<1x8xf32>
    %41 = vector.broadcast %40 : vector<1x8xf32> to vector<48x8xf32>
    %42 = arith.addf %39, %41 : vector<48x8xf32>
    %43 = vector.shape_cast %42 : vector<48x8xf32> to vector<6x8x8xf32>
    %44 = vector.shape_cast %36 : vector<6x8x8xf32> to vector<6x1x8x8xf32>
    %45 = vector.shape_cast %43 : vector<6x8x8xf32> to vector<6x1x8x8xf32>
    %46 = tpu.concatenate %44, %45 in 1 : vector<6x1x8x8xf32>, vector<6x1x8x8xf32> -> vector<6x2x8x8xf32>
    %47 = vector.shape_cast %46 : vector<6x2x8x8xf32> to vector<12x8x8xf32>
    %c0_28 = arith.constant 0 : index
    %c1_29 = arith.constant 1 : index
    %c0_30 = arith.constant 0 : index
    %48 = tpu.strided_load %arg17[%c0_28, %c1_29, %c0_30] {strides = array<i32: 1, 2, 1>} : memref<12x16x8xf32, #tpu.memory_space<vmem>>, vector<12x8x8xf32>
    tpu.strided_store %arg17[%c0_28, %c1_29, %c0_30], %47 {strides = array<i32: 1, 2, 1>} : memref<12x16x8xf32, #tpu.memory_space<vmem>>, vector<12x8x8xf32>
    %49 = tpu.iota {dimensions = array<i32: 0>} : vector<12x1x1xi32>
    %c2_i32 = arith.constant 2 : i32
    %50 = arith.subi %0, %c2_i32 : i32
    %51 = vector.broadcast %50 : i32 to vector<12x1x1xi32>
    %52 = arith.addi %51, %49 : vector<12x1x1xi32>
    %c0_i32 = arith.constant 0 : i32
    %53 = vector.broadcast %c0_i32 : i32 to vector<12x1x1xi32>
    %54 = arith.cmpi sge, %52, %53 : vector<12x1x1xi32>
    %c2_i32_31 = arith.constant 2 : i32
    %55 = arith.subi %0, %c2_i32_31 : i32
    %56 = vector.broadcast %55 : i32 to vector<12x1x1xi32>
    %57 = arith.addi %56, %49 : vector<12x1x1xi32>
    %c16_i32 = arith.constant 16 : i32
    %58 = vector.broadcast %c16_i32 : i32 to vector<12x1x1xi32>
    %59 = arith.cmpi slt, %57, %58 : vector<12x1x1xi32>
    %60 = arith.andi %54, %59 : vector<12x1x1xi1>
    %c0_32 = arith.constant 0 : index
    %c0_33 = arith.constant 0 : index
    %c0_34 = arith.constant 0 : index
    %61 = vector.load %arg17[%c0_32, %c0_33, %c0_34] : memref<12x16x8xf32, #tpu.memory_space<vmem>>, vector<12x16x8xf32>
    %cst_35 = arith.constant 0.000000e+00 : f32
    %62 = vector.shape_cast %60 : vector<12x1x1xi1> to vector<12x1x1xi1>
    %63 = vector.broadcast %62 : vector<12x1x1xi1> to vector<12x16x8xi1>
    %64 = vector.broadcast %cst_35 : f32 to vector<12x16x8xf32>
    %65 = arith.select %63, %61, %64 : vector<12x16x8xi1>, vector<12x16x8xf32>
    %66 = arith.truncf %65 : vector<12x16x8xf32> to vector<12x16x8xbf16>
    %c0_36 = arith.constant 0 : index
    %c0_37 = arith.constant 0 : index
    %c0_38 = arith.constant 0 : index
    %c0_39 = arith.constant 0 : index
    %67 = vector.load %arg6[%c0_36, %c0_37, %c0_38, %c0_39] : memref<1x2x16x8xbf16, #tpu.memory_space<vmem>>, vector<1x2x16x8xbf16>
    %68 = vector.shape_cast %67 : vector<1x2x16x8xbf16> to vector<2x16x8xbf16>
    %c0_40 = arith.constant 0 : index
    %c0_41 = arith.constant 0 : index
    %c0_42 = arith.constant 0 : index
    %c0_43 = arith.constant 0 : index
    %69 = vector.load %arg5[%c0_40, %c0_41, %c0_42, %c0_43] : memref<1x8x16x8xbf16, #tpu.memory_space<vmem>>, vector<1x8x16x8xbf16>
    %70 = vector.shape_cast %69 : vector<1x8x16x8xbf16> to vector<8x16x8xbf16>
    %c0_44 = arith.constant 0 : index
    %c0_45 = arith.constant 0 : index
    %c0_46 = arith.constant 0 : index
    %c0_47 = arith.constant 0 : index
    %71 = vector.load %arg7[%c0_44, %c0_45, %c0_46, %c0_47] : memref<1x2x16x8xbf16, #tpu.memory_space<vmem>>, vector<1x2x16x8xbf16>
    %72 = vector.shape_cast %71 : vector<1x2x16x8xbf16> to vector<2x16x8xbf16>
    %73 = tpu.concatenate %68, %70, %72 in 0 : vector<2x16x8xbf16>, vector<8x16x8xbf16>, vector<2x16x8xbf16> -> vector<12x16x8xbf16>
    %c0_i32_48 = arith.constant 0 : i32
    %74 = arith.sitofp %c0_i32_48 : i32 to bf16
    %75 = vector.shape_cast %60 : vector<12x1x1xi1> to vector<12x1x1xi1>
    %76 = vector.broadcast %75 : vector<12x1x1xi1> to vector<12x16x8xi1>
    %77 = vector.broadcast %74 : bf16 to vector<12x16x8xbf16>
    %78 = arith.select %76, %73, %77 : vector<12x16x8xi1>, vector<12x16x8xbf16>
    %cst_49 = arith.constant 0.000000e+00 : f32
    %79 = vector.broadcast %cst_49 : f32 to vector<160x16xf32>
    %cst_50 = arith.constant 0.000000e+00 : f32
    %80 = vector.broadcast %cst_50 : f32 to vector<160x16xf32>
    %cst_51 = arith.constant 0.000000e+00 : f32
    %81 = vector.broadcast %cst_51 : f32 to vector<160x16xf32>
    %82 = vector.extract_strided_slice %66 {offsets = [0, 0, 0], sizes = [10, 16, 8], strides = [1, 1, 1]} : vector<12x16x8xbf16> to vector<10x16x8xbf16>
    %83 = vector.shape_cast %82 : vector<10x16x8xbf16> to vector<160x8xbf16>
    %c0_52 = arith.constant 0 : index
    %c0_53 = arith.constant 0 : index
    %c0_54 = arith.constant 0 : index
    %84 = vector.load %arg10[%c0_52, %c0_53, %c0_54] : memref<9x8x16xbf16, #tpu.memory_space<vmem>>, vector<1x8x16xbf16>
    %85 = vector.shape_cast %84 : vector<1x8x16xbf16> to vector<8x16xbf16>
    %cst_55 = arith.constant dense<0.000000e+00> : vector<160x16xf32>
    %86 = tpu.matmul %83, %85, %cst_55 {dimension_numbers = #tpu.dot_dimension_numbers<[1], [0], [0], [1], [0, 0, 1, 1], [], []>} : vector<160x8xbf16>, vector<8x16xbf16>, vector<160x16xf32> -> vector<160x16xf32>
    %87 = arith.addf %79, %86 : vector<160x16xf32>
    %c1_56 = arith.constant 1 : index
    %c0_57 = arith.constant 0 : index
    %c0_58 = arith.constant 0 : index
    %88 = vector.load %arg10[%c1_56, %c0_57, %c0_58] : memref<9x8x16xbf16, #tpu.memory_space<vmem>>, vector<1x8x16xbf16>
    %89 = vector.shape_cast %88 : vector<1x8x16xbf16> to vector<8x16xbf16>
    %cst_59 = arith.constant dense<0.000000e+00> : vector<160x16xf32>
    %90 = tpu.matmul %83, %89, %cst_59 {dimension_numbers = #tpu.dot_dimension_numbers<[1], [0], [0], [1], [0, 0, 1, 1], [], []>} : vector<160x8xbf16>, vector<8x16xbf16>, vector<160x16xf32> -> vector<160x16xf32>
    %91 = arith.addf %80, %90 : vector<160x16xf32>
    %c2_60 = arith.constant 2 : index
    %c0_61 = arith.constant 0 : index
    %c0_62 = arith.constant 0 : index
    %92 = vector.load %arg10[%c2_60, %c0_61, %c0_62] : memref<9x8x16xbf16, #tpu.memory_space<vmem>>, vector<1x8x16xbf16>
    %93 = vector.shape_cast %92 : vector<1x8x16xbf16> to vector<8x16xbf16>
    %cst_63 = arith.constant dense<0.000000e+00> : vector<160x16xf32>
    %94 = tpu.matmul %83, %93, %cst_63 {dimension_numbers = #tpu.dot_dimension_numbers<[1], [0], [0], [1], [0, 0, 1, 1], [], []>} : vector<160x8xbf16>, vector<8x16xbf16>, vector<160x16xf32> -> vector<160x16xf32>
    %95 = arith.addf %81, %94 : vector<160x16xf32>
    %96 = vector.extract_strided_slice %66 {offsets = [1, 0, 0], sizes = [10, 16, 8], strides = [1, 1, 1]} : vector<12x16x8xbf16> to vector<10x16x8xbf16>
    %97 = vector.shape_cast %96 : vector<10x16x8xbf16> to vector<160x8xbf16>
    %c3_64 = arith.constant 3 : index
    %c0_65 = arith.constant 0 : index
    %c0_66 = arith.constant 0 : index
    %98 = vector.load %arg10[%c3_64, %c0_65, %c0_66] : memref<9x8x16xbf16, #tpu.memory_space<vmem>>, vector<1x8x16xbf16>
    %99 = vector.shape_cast %98 : vector<1x8x16xbf16> to vector<8x16xbf16>
    %cst_67 = arith.constant dense<0.000000e+00> : vector<160x16xf32>
    %100 = tpu.matmul %97, %99, %cst_67 {dimension_numbers = #tpu.dot_dimension_numbers<[1], [0], [0], [1], [0, 0, 1, 1], [], []>} : vector<160x8xbf16>, vector<8x16xbf16>, vector<160x16xf32> -> vector<160x16xf32>
    %101 = arith.addf %87, %100 : vector<160x16xf32>
    %c4 = arith.constant 4 : index
    %c0_68 = arith.constant 0 : index
    %c0_69 = arith.constant 0 : index
    %102 = vector.load %arg10[%c4, %c0_68, %c0_69] : memref<9x8x16xbf16, #tpu.memory_space<vmem>>, vector<1x8x16xbf16>
    %103 = vector.shape_cast %102 : vector<1x8x16xbf16> to vector<8x16xbf16>
    %cst_70 = arith.constant dense<0.000000e+00> : vector<160x16xf32>
    %104 = tpu.matmul %97, %103, %cst_70 {dimension_numbers = #tpu.dot_dimension_numbers<[1], [0], [0], [1], [0, 0, 1, 1], [], []>} : vector<160x8xbf16>, vector<8x16xbf16>, vector<160x16xf32> -> vector<160x16xf32>
    %105 = arith.addf %91, %104 : vector<160x16xf32>
    %c5 = arith.constant 5 : index
    %c0_71 = arith.constant 0 : index
    %c0_72 = arith.constant 0 : index
    %106 = vector.load %arg10[%c5, %c0_71, %c0_72] : memref<9x8x16xbf16, #tpu.memory_space<vmem>>, vector<1x8x16xbf16>
    %107 = vector.shape_cast %106 : vector<1x8x16xbf16> to vector<8x16xbf16>
    %cst_73 = arith.constant dense<0.000000e+00> : vector<160x16xf32>
    %108 = tpu.matmul %97, %107, %cst_73 {dimension_numbers = #tpu.dot_dimension_numbers<[1], [0], [0], [1], [0, 0, 1, 1], [], []>} : vector<160x8xbf16>, vector<8x16xbf16>, vector<160x16xf32> -> vector<160x16xf32>
    %109 = arith.addf %95, %108 : vector<160x16xf32>
    %110 = vector.extract_strided_slice %66 {offsets = [2, 0, 0], sizes = [10, 16, 8], strides = [1, 1, 1]} : vector<12x16x8xbf16> to vector<10x16x8xbf16>
    %111 = vector.shape_cast %110 : vector<10x16x8xbf16> to vector<160x8xbf16>
    %c6 = arith.constant 6 : index
    %c0_74 = arith.constant 0 : index
    %c0_75 = arith.constant 0 : index
    %112 = vector.load %arg10[%c6, %c0_74, %c0_75] : memref<9x8x16xbf16, #tpu.memory_space<vmem>>, vector<1x8x16xbf16>
    %113 = vector.shape_cast %112 : vector<1x8x16xbf16> to vector<8x16xbf16>
    %cst_76 = arith.constant dense<0.000000e+00> : vector<160x16xf32>
    %114 = tpu.matmul %111, %113, %cst_76 {dimension_numbers = #tpu.dot_dimension_numbers<[1], [0], [0], [1], [0, 0, 1, 1], [], []>} : vector<160x8xbf16>, vector<8x16xbf16>, vector<160x16xf32> -> vector<160x16xf32>
    %115 = arith.addf %101, %114 : vector<160x16xf32>
    %c7 = arith.constant 7 : index
    %c0_77 = arith.constant 0 : index
    %c0_78 = arith.constant 0 : index
    %116 = vector.load %arg10[%c7, %c0_77, %c0_78] : memref<9x8x16xbf16, #tpu.memory_space<vmem>>, vector<1x8x16xbf16>
    %117 = vector.shape_cast %116 : vector<1x8x16xbf16> to vector<8x16xbf16>
    %cst_79 = arith.constant dense<0.000000e+00> : vector<160x16xf32>
    %118 = tpu.matmul %111, %117, %cst_79 {dimension_numbers = #tpu.dot_dimension_numbers<[1], [0], [0], [1], [0, 0, 1, 1], [], []>} : vector<160x8xbf16>, vector<8x16xbf16>, vector<160x16xf32> -> vector<160x16xf32>
    %119 = arith.addf %105, %118 : vector<160x16xf32>
    %c8 = arith.constant 8 : index
    %c0_80 = arith.constant 0 : index
    %c0_81 = arith.constant 0 : index
    %120 = vector.load %arg10[%c8, %c0_80, %c0_81] : memref<9x8x16xbf16, #tpu.memory_space<vmem>>, vector<1x8x16xbf16>
    %121 = vector.shape_cast %120 : vector<1x8x16xbf16> to vector<8x16xbf16>
    %cst_82 = arith.constant dense<0.000000e+00> : vector<160x16xf32>
    %122 = tpu.matmul %111, %121, %cst_82 {dimension_numbers = #tpu.dot_dimension_numbers<[1], [0], [0], [1], [0, 0, 1, 1], [], []>} : vector<160x8xbf16>, vector<8x16xbf16>, vector<160x16xf32> -> vector<160x16xf32>
    %123 = arith.addf %109, %122 : vector<160x16xf32>
    %124 = vector.extract_strided_slice %78 {offsets = [0, 0, 0], sizes = [10, 16, 8], strides = [1, 1, 1]} : vector<12x16x8xbf16> to vector<10x16x8xbf16>
    %125 = vector.shape_cast %124 : vector<10x16x8xbf16> to vector<160x8xbf16>
    %c0_83 = arith.constant 0 : index
    %c0_84 = arith.constant 0 : index
    %c0_85 = arith.constant 0 : index
    %126 = vector.load %arg11[%c0_83, %c0_84, %c0_85] : memref<9x8x16xbf16, #tpu.memory_space<vmem>>, vector<1x8x16xbf16>
    %127 = vector.shape_cast %126 : vector<1x8x16xbf16> to vector<8x16xbf16>
    %cst_86 = arith.constant dense<0.000000e+00> : vector<160x16xf32>
    %128 = tpu.matmul %125, %127, %cst_86 {dimension_numbers = #tpu.dot_dimension_numbers<[1], [0], [0], [1], [0, 0, 1, 1], [], []>} : vector<160x8xbf16>, vector<8x16xbf16>, vector<160x16xf32> -> vector<160x16xf32>
    %129 = arith.addf %115, %128 : vector<160x16xf32>
    %c1_87 = arith.constant 1 : index
    %c0_88 = arith.constant 0 : index
    %c0_89 = arith.constant 0 : index
    %130 = vector.load %arg11[%c1_87, %c0_88, %c0_89] : memref<9x8x16xbf16, #tpu.memory_space<vmem>>, vector<1x8x16xbf16>
    %131 = vector.shape_cast %130 : vector<1x8x16xbf16> to vector<8x16xbf16>
    %cst_90 = arith.constant dense<0.000000e+00> : vector<160x16xf32>
    %132 = tpu.matmul %125, %131, %cst_90 {dimension_numbers = #tpu.dot_dimension_numbers<[1], [0], [0], [1], [0, 0, 1, 1], [], []>} : vector<160x8xbf16>, vector<8x16xbf16>, vector<160x16xf32> -> vector<160x16xf32>
    %133 = arith.addf %119, %132 : vector<160x16xf32>
    %c2_91 = arith.constant 2 : index
    %c0_92 = arith.constant 0 : index
    %c0_93 = arith.constant 0 : index
    %134 = vector.load %arg11[%c2_91, %c0_92, %c0_93] : memref<9x8x16xbf16, #tpu.memory_space<vmem>>, vector<1x8x16xbf16>
    %135 = vector.shape_cast %134 : vector<1x8x16xbf16> to vector<8x16xbf16>
    %cst_94 = arith.constant dense<0.000000e+00> : vector<160x16xf32>
    %136 = tpu.matmul %125, %135, %cst_94 {dimension_numbers = #tpu.dot_dimension_numbers<[1], [0], [0], [1], [0, 0, 1, 1], [], []>} : vector<160x8xbf16>, vector<8x16xbf16>, vector<160x16xf32> -> vector<160x16xf32>
    %137 = arith.addf %123, %136 : vector<160x16xf32>
    %138 = vector.extract_strided_slice %78 {offsets = [1, 0, 0], sizes = [10, 16, 8], strides = [1, 1, 1]} : vector<12x16x8xbf16> to vector<10x16x8xbf16>
    %139 = vector.shape_cast %138 : vector<10x16x8xbf16> to vector<160x8xbf16>
    %c3_95 = arith.constant 3 : index
    %c0_96 = arith.constant 0 : index
    %c0_97 = arith.constant 0 : index
    %140 = vector.load %arg11[%c3_95, %c0_96, %c0_97] : memref<9x8x16xbf16, #tpu.memory_space<vmem>>, vector<1x8x16xbf16>
    %141 = vector.shape_cast %140 : vector<1x8x16xbf16> to vector<8x16xbf16>
    %cst_98 = arith.constant dense<0.000000e+00> : vector<160x16xf32>
    %142 = tpu.matmul %139, %141, %cst_98 {dimension_numbers = #tpu.dot_dimension_numbers<[1], [0], [0], [1], [0, 0, 1, 1], [], []>} : vector<160x8xbf16>, vector<8x16xbf16>, vector<160x16xf32> -> vector<160x16xf32>
    %143 = arith.addf %129, %142 : vector<160x16xf32>
    %c4_99 = arith.constant 4 : index
    %c0_100 = arith.constant 0 : index
    %c0_101 = arith.constant 0 : index
    %144 = vector.load %arg11[%c4_99, %c0_100, %c0_101] : memref<9x8x16xbf16, #tpu.memory_space<vmem>>, vector<1x8x16xbf16>
    %145 = vector.shape_cast %144 : vector<1x8x16xbf16> to vector<8x16xbf16>
    %cst_102 = arith.constant dense<0.000000e+00> : vector<160x16xf32>
    %146 = tpu.matmul %139, %145, %cst_102 {dimension_numbers = #tpu.dot_dimension_numbers<[1], [0], [0], [1], [0, 0, 1, 1], [], []>} : vector<160x8xbf16>, vector<8x16xbf16>, vector<160x16xf32> -> vector<160x16xf32>
    %147 = arith.addf %133, %146 : vector<160x16xf32>
    %c5_103 = arith.constant 5 : index
    %c0_104 = arith.constant 0 : index
    %c0_105 = arith.constant 0 : index
    %148 = vector.load %arg11[%c5_103, %c0_104, %c0_105] : memref<9x8x16xbf16, #tpu.memory_space<vmem>>, vector<1x8x16xbf16>
    %149 = vector.shape_cast %148 : vector<1x8x16xbf16> to vector<8x16xbf16>
    %cst_106 = arith.constant dense<0.000000e+00> : vector<160x16xf32>
    %150 = tpu.matmul %139, %149, %cst_106 {dimension_numbers = #tpu.dot_dimension_numbers<[1], [0], [0], [1], [0, 0, 1, 1], [], []>} : vector<160x8xbf16>, vector<8x16xbf16>, vector<160x16xf32> -> vector<160x16xf32>
    %151 = arith.addf %137, %150 : vector<160x16xf32>
    %152 = vector.extract_strided_slice %78 {offsets = [2, 0, 0], sizes = [10, 16, 8], strides = [1, 1, 1]} : vector<12x16x8xbf16> to vector<10x16x8xbf16>
    %153 = vector.shape_cast %152 : vector<10x16x8xbf16> to vector<160x8xbf16>
    %c6_107 = arith.constant 6 : index
    %c0_108 = arith.constant 0 : index
    %c0_109 = arith.constant 0 : index
    %154 = vector.load %arg11[%c6_107, %c0_108, %c0_109] : memref<9x8x16xbf16, #tpu.memory_space<vmem>>, vector<1x8x16xbf16>
    %155 = vector.shape_cast %154 : vector<1x8x16xbf16> to vector<8x16xbf16>
    %cst_110 = arith.constant dense<0.000000e+00> : vector<160x16xf32>
    %156 = tpu.matmul %153, %155, %cst_110 {dimension_numbers = #tpu.dot_dimension_numbers<[1], [0], [0], [1], [0, 0, 1, 1], [], []>} : vector<160x8xbf16>, vector<8x16xbf16>, vector<160x16xf32> -> vector<160x16xf32>
    %157 = arith.addf %143, %156 : vector<160x16xf32>
    %c7_111 = arith.constant 7 : index
    %c0_112 = arith.constant 0 : index
    %c0_113 = arith.constant 0 : index
    %158 = vector.load %arg11[%c7_111, %c0_112, %c0_113] : memref<9x8x16xbf16, #tpu.memory_space<vmem>>, vector<1x8x16xbf16>
    %159 = vector.shape_cast %158 : vector<1x8x16xbf16> to vector<8x16xbf16>
    %cst_114 = arith.constant dense<0.000000e+00> : vector<160x16xf32>
    %160 = tpu.matmul %153, %159, %cst_114 {dimension_numbers = #tpu.dot_dimension_numbers<[1], [0], [0], [1], [0, 0, 1, 1], [], []>} : vector<160x8xbf16>, vector<8x16xbf16>, vector<160x16xf32> -> vector<160x16xf32>
    %161 = arith.addf %147, %160 : vector<160x16xf32>
    %c8_115 = arith.constant 8 : index
    %c0_116 = arith.constant 0 : index
    %c0_117 = arith.constant 0 : index
    %162 = vector.load %arg11[%c8_115, %c0_116, %c0_117] : memref<9x8x16xbf16, #tpu.memory_space<vmem>>, vector<1x8x16xbf16>
    %163 = vector.shape_cast %162 : vector<1x8x16xbf16> to vector<8x16xbf16>
    %cst_118 = arith.constant dense<0.000000e+00> : vector<160x16xf32>
    %164 = tpu.matmul %153, %163, %cst_118 {dimension_numbers = #tpu.dot_dimension_numbers<[1], [0], [0], [1], [0, 0, 1, 1], [], []>} : vector<160x8xbf16>, vector<8x16xbf16>, vector<160x16xf32> -> vector<160x16xf32>
    %165 = arith.addf %151, %164 : vector<160x16xf32>
    %166 = vector.shape_cast %157 : vector<160x16xf32> to vector<10x16x16xf32>
    %167 = vector.shape_cast %161 : vector<160x16xf32> to vector<10x16x16xf32>
    %168 = vector.shape_cast %165 : vector<160x16xf32> to vector<10x16x16xf32>
    %cst_119 = arith.constant 0.000000e+00 : f32
    %169 = vector.broadcast %cst_119 : f32 to vector<10x1x16xf32>
    %170 = vector.extract_strided_slice %166 {offsets = [0, 0, 0], sizes = [10, 15, 16], strides = [1, 1, 1]} : vector<10x16x16xf32> to vector<10x15x16xf32>
    %171 = tpu.concatenate %169, %170 in 1 : vector<10x1x16xf32>, vector<10x15x16xf32> -> vector<10x16x16xf32>
    %172 = arith.addf %167, %171 : vector<10x16x16xf32>
    %173 = vector.extract_strided_slice %168 {offsets = [0, 1, 0], sizes = [10, 15, 16], strides = [1, 1, 1]} : vector<10x16x16xf32> to vector<10x15x16xf32>
    %174 = tpu.concatenate %173, %169 in 1 : vector<10x15x16xf32>, vector<10x1x16xf32> -> vector<10x16x16xf32>
    %175 = arith.addf %172, %174 : vector<10x16x16xf32>
    %c0_120 = arith.constant 0 : index
    %c0_121 = arith.constant 0 : index
    %176 = vector.load %arg12[%c0_120, %c0_121] : memref<1x16xf32, #tpu.memory_space<vmem>>, vector<1x16xf32>
    %177 = vector.shape_cast %176 : vector<1x16xf32> to vector<16xf32>
    %178 = vector.shape_cast %177 : vector<16xf32> to vector<1x1x16xf32>
    %179 = vector.broadcast %178 : vector<1x1x16xf32> to vector<10x16x16xf32>
    %180 = arith.addf %175, %179 : vector<10x16x16xf32>
    %cst_122 = arith.constant 0.000000e+00 : f32
    %181 = vector.broadcast %cst_122 : f32 to vector<10x16x16xf32>
    %182 = arith.maximumf %180, %181 : vector<10x16x16xf32>
    %183 = tpu.iota {dimensions = array<i32: 0>} : vector<10x1x1xi32>
    %c1_i32 = arith.constant 1 : i32
    %184 = arith.subi %0, %c1_i32 : i32
    %185 = vector.broadcast %184 : i32 to vector<10x1x1xi32>
    %186 = arith.addi %185, %183 : vector<10x1x1xi32>
    %c0_i32_123 = arith.constant 0 : i32
    %187 = vector.broadcast %c0_i32_123 : i32 to vector<10x1x1xi32>
    %188 = arith.cmpi sge, %186, %187 : vector<10x1x1xi32>
    %c1_i32_124 = arith.constant 1 : i32
    %189 = arith.subi %0, %c1_i32_124 : i32
    %190 = vector.broadcast %189 : i32 to vector<10x1x1xi32>
    %191 = arith.addi %190, %183 : vector<10x1x1xi32>
    %c16_i32_125 = arith.constant 16 : i32
    %192 = vector.broadcast %c16_i32_125 : i32 to vector<10x1x1xi32>
    %193 = arith.cmpi slt, %191, %192 : vector<10x1x1xi32>
    %194 = arith.andi %188, %193 : vector<10x1x1xi1>
    %cst_126 = arith.constant 0.000000e+00 : f32
    %195 = vector.shape_cast %194 : vector<10x1x1xi1> to vector<10x1x1xi1>
    %196 = vector.broadcast %195 : vector<10x1x1xi1> to vector<10x16x16xi1>
    %197 = vector.broadcast %cst_126 : f32 to vector<10x16x16xf32>
    %198 = arith.select %196, %182, %197 : vector<10x16x16xi1>, vector<10x16x16xf32>
    %199 = arith.truncf %198 : vector<10x16x16xf32> to vector<10x16x16xbf16>
    %c0_127 = arith.constant 0 : index
    %c0_128 = arith.constant 0 : index
    %c0_129 = arith.constant 0 : index
    %200 = vector.load %arg18[%c0_127, %c0_128, %c0_129] : memref<10x16x16xbf16, #tpu.memory_space<vmem>>, vector<10x16x16xbf16>
    tpu.vector_store %arg18[%c0_127, %c0_128, %c0_129], %199 {strides = array<i32>} : memref<10x16x16xbf16, #tpu.memory_space<vmem>>, vector<10x16x16xbf16>,
    %c0_130 = arith.constant 0 : index
    %c0_131 = arith.constant 0 : index
    %c0_132 = arith.constant 0 : index
    %201 = vector.load %arg18[%c0_130, %c0_131, %c0_132] : memref<10x16x16xbf16, #tpu.memory_space<vmem>>, vector<10x16x16xbf16>
    %cst_133 = arith.constant 0.000000e+00 : f32
    %202 = vector.broadcast %cst_133 : f32 to vector<128x16xf32>
    %cst_134 = arith.constant 0.000000e+00 : f32
    %203 = vector.broadcast %cst_134 : f32 to vector<128x16xf32>
    %cst_135 = arith.constant 0.000000e+00 : f32
    %204 = vector.broadcast %cst_135 : f32 to vector<128x16xf32>
    %205 = vector.extract_strided_slice %201 {offsets = [0, 0, 0], sizes = [8, 16, 16], strides = [1, 1, 1]} : vector<10x16x16xbf16> to vector<8x16x16xbf16>
    %206 = vector.shape_cast %205 : vector<8x16x16xbf16> to vector<128x16xbf16>
    %c0_136 = arith.constant 0 : index
    %c0_137 = arith.constant 0 : index
    %c0_138 = arith.constant 0 : index
    %207 = vector.load %arg13[%c0_136, %c0_137, %c0_138] : memref<9x16x16xbf16, #tpu.memory_space<vmem>>, vector<1x16x16xbf16>
    %208 = vector.shape_cast %207 : vector<1x16x16xbf16> to vector<16x16xbf16>
    %cst_139 = arith.constant dense<0.000000e+00> : vector<128x16xf32>
    %209 = tpu.matmul %206, %208, %cst_139 {dimension_numbers = #tpu.dot_dimension_numbers<[1], [0], [0], [1], [0, 0, 1, 1], [], []>} : vector<128x16xbf16>, vector<16x16xbf16>, vector<128x16xf32> -> vector<128x16xf32>
    %210 = arith.addf %202, %209 : vector<128x16xf32>
    %c1_140 = arith.constant 1 : index
    %c0_141 = arith.constant 0 : index
    %c0_142 = arith.constant 0 : index
    %211 = vector.load %arg13[%c1_140, %c0_141, %c0_142] : memref<9x16x16xbf16, #tpu.memory_space<vmem>>, vector<1x16x16xbf16>
    %212 = vector.shape_cast %211 : vector<1x16x16xbf16> to vector<16x16xbf16>
    %cst_143 = arith.constant dense<0.000000e+00> : vector<128x16xf32>
    %213 = tpu.matmul %206, %212, %cst_143 {dimension_numbers = #tpu.dot_dimension_numbers<[1], [0], [0], [1], [0, 0, 1, 1], [], []>} : vector<128x16xbf16>, vector<16x16xbf16>, vector<128x16xf32> -> vector<128x16xf32>
    %214 = arith.addf %203, %213 : vector<128x16xf32>
    %c2_144 = arith.constant 2 : index
    %c0_145 = arith.constant 0 : index
    %c0_146 = arith.constant 0 : index
    %215 = vector.load %arg13[%c2_144, %c0_145, %c0_146] : memref<9x16x16xbf16, #tpu.memory_space<vmem>>, vector<1x16x16xbf16>
    %216 = vector.shape_cast %215 : vector<1x16x16xbf16> to vector<16x16xbf16>
    %cst_147 = arith.constant dense<0.000000e+00> : vector<128x16xf32>
    %217 = tpu.matmul %206, %216, %cst_147 {dimension_numbers = #tpu.dot_dimension_numbers<[1], [0], [0], [1], [0, 0, 1, 1], [], []>} : vector<128x16xbf16>, vector<16x16xbf16>, vector<128x16xf32> -> vector<128x16xf32>
    %218 = arith.addf %204, %217 : vector<128x16xf32>
    %219 = vector.extract_strided_slice %201 {offsets = [1, 0, 0], sizes = [8, 16, 16], strides = [1, 1, 1]} : vector<10x16x16xbf16> to vector<8x16x16xbf16>
    %220 = vector.shape_cast %219 : vector<8x16x16xbf16> to vector<128x16xbf16>
    %c3_148 = arith.constant 3 : index
    %c0_149 = arith.constant 0 : index
    %c0_150 = arith.constant 0 : index
    %221 = vector.load %arg13[%c3_148, %c0_149, %c0_150] : memref<9x16x16xbf16, #tpu.memory_space<vmem>>, vector<1x16x16xbf16>
    %222 = vector.shape_cast %221 : vector<1x16x16xbf16> to vector<16x16xbf16>
    %cst_151 = arith.constant dense<0.000000e+00> : vector<128x16xf32>
    %223 = tpu.matmul %220, %222, %cst_151 {dimension_numbers = #tpu.dot_dimension_numbers<[1], [0], [0], [1], [0, 0, 1, 1], [], []>} : vector<128x16xbf16>, vector<16x16xbf16>, vector<128x16xf32> -> vector<128x16xf32>
    %224 = arith.addf %210, %223 : vector<128x16xf32>
    %c4_152 = arith.constant 4 : index
    %c0_153 = arith.constant 0 : index
    %c0_154 = arith.constant 0 : index
    %225 = vector.load %arg13[%c4_152, %c0_153, %c0_154] : memref<9x16x16xbf16, #tpu.memory_space<vmem>>, vector<1x16x16xbf16>
    %226 = vector.shape_cast %225 : vector<1x16x16xbf16> to vector<16x16xbf16>
    %cst_155 = arith.constant dense<0.000000e+00> : vector<128x16xf32>
    %227 = tpu.matmul %220, %226, %cst_155 {dimension_numbers = #tpu.dot_dimension_numbers<[1], [0], [0], [1], [0, 0, 1, 1], [], []>} : vector<128x16xbf16>, vector<16x16xbf16>, vector<128x16xf32> -> vector<128x16xf32>
    %228 = arith.addf %214, %227 : vector<128x16xf32>
    %c5_156 = arith.constant 5 : index
    %c0_157 = arith.constant 0 : index
    %c0_158 = arith.constant 0 : index
    %229 = vector.load %arg13[%c5_156, %c0_157, %c0_158] : memref<9x16x16xbf16, #tpu.memory_space<vmem>>, vector<1x16x16xbf16>
    %230 = vector.shape_cast %229 : vector<1x16x16xbf16> to vector<16x16xbf16>
    %cst_159 = arith.constant dense<0.000000e+00> : vector<128x16xf32>
    %231 = tpu.matmul %220, %230, %cst_159 {dimension_numbers = #tpu.dot_dimension_numbers<[1], [0], [0], [1], [0, 0, 1, 1], [], []>} : vector<128x16xbf16>, vector<16x16xbf16>, vector<128x16xf32> -> vector<128x16xf32>
    %232 = arith.addf %218, %231 : vector<128x16xf32>
    %233 = vector.extract_strided_slice %201 {offsets = [2, 0, 0], sizes = [8, 16, 16], strides = [1, 1, 1]} : vector<10x16x16xbf16> to vector<8x16x16xbf16>
    %234 = vector.shape_cast %233 : vector<8x16x16xbf16> to vector<128x16xbf16>
    %c6_160 = arith.constant 6 : index
    %c0_161 = arith.constant 0 : index
    %c0_162 = arith.constant 0 : index
    %235 = vector.load %arg13[%c6_160, %c0_161, %c0_162] : memref<9x16x16xbf16, #tpu.memory_space<vmem>>, vector<1x16x16xbf16>
    %236 = vector.shape_cast %235 : vector<1x16x16xbf16> to vector<16x16xbf16>
    %cst_163 = arith.constant dense<0.000000e+00> : vector<128x16xf32>
    %237 = tpu.matmul %234, %236, %cst_163 {dimension_numbers = #tpu.dot_dimension_numbers<[1], [0], [0], [1], [0, 0, 1, 1], [], []>} : vector<128x16xbf16>, vector<16x16xbf16>, vector<128x16xf32> -> vector<128x16xf32>
    %238 = arith.addf %224, %237 : vector<128x16xf32>
    %c7_164 = arith.constant 7 : index
    %c0_165 = arith.constant 0 : index
    %c0_166 = arith.constant 0 : index
    %239 = vector.load %arg13[%c7_164, %c0_165, %c0_166] : memref<9x16x16xbf16, #tpu.memory_space<vmem>>, vector<1x16x16xbf16>
    %240 = vector.shape_cast %239 : vector<1x16x16xbf16> to vector<16x16xbf16>
    %cst_167 = arith.constant dense<0.000000e+00> : vector<128x16xf32>
    %241 = tpu.matmul %234, %240, %cst_167 {dimension_numbers = #tpu.dot_dimension_numbers<[1], [0], [0], [1], [0, 0, 1, 1], [], []>} : vector<128x16xbf16>, vector<16x16xbf16>, vector<128x16xf32> -> vector<128x16xf32>
    %242 = arith.addf %228, %241 : vector<128x16xf32>
    %c8_168 = arith.constant 8 : index
    %c0_169 = arith.constant 0 : index
    %c0_170 = arith.constant 0 : index
    %243 = vector.load %arg13[%c8_168, %c0_169, %c0_170] : memref<9x16x16xbf16, #tpu.memory_space<vmem>>, vector<1x16x16xbf16>
    %244 = vector.shape_cast %243 : vector<1x16x16xbf16> to vector<16x16xbf16>
    %cst_171 = arith.constant dense<0.000000e+00> : vector<128x16xf32>
    %245 = tpu.matmul %234, %244, %cst_171 {dimension_numbers = #tpu.dot_dimension_numbers<[1], [0], [0], [1], [0, 0, 1, 1], [], []>} : vector<128x16xbf16>, vector<16x16xbf16>, vector<128x16xf32> -> vector<128x16xf32>
    %246 = arith.addf %232, %245 : vector<128x16xf32>
    %247 = vector.shape_cast %238 : vector<128x16xf32> to vector<8x16x16xf32>
    %248 = vector.shape_cast %242 : vector<128x16xf32> to vector<8x16x16xf32>
    %249 = vector.shape_cast %246 : vector<128x16xf32> to vector<8x16x16xf32>
    %cst_172 = arith.constant 0.000000e+00 : f32
    %250 = vector.broadcast %cst_172 : f32 to vector<8x1x16xf32>
    %251 = vector.extract_strided_slice %247 {offsets = [0, 0, 0], sizes = [8, 15, 16], strides = [1, 1, 1]} : vector<8x16x16xf32> to vector<8x15x16xf32>
    %252 = tpu.concatenate %250, %251 in 1 : vector<8x1x16xf32>, vector<8x15x16xf32> -> vector<8x16x16xf32>
    %253 = arith.addf %248, %252 : vector<8x16x16xf32>
    %254 = vector.extract_strided_slice %249 {offsets = [0, 1, 0], sizes = [8, 15, 16], strides = [1, 1, 1]} : vector<8x16x16xf32> to vector<8x15x16xf32>
    %255 = tpu.concatenate %254, %250 in 1 : vector<8x15x16xf32>, vector<8x1x16xf32> -> vector<8x16x16xf32>
    %256 = arith.addf %253, %255 : vector<8x16x16xf32>
    %c0_173 = arith.constant 0 : index
    %c0_174 = arith.constant 0 : index
    %257 = vector.load %arg14[%c0_173, %c0_174] : memref<1x16xf32, #tpu.memory_space<vmem>>, vector<1x16xf32>
    %258 = vector.shape_cast %257 : vector<1x16xf32> to vector<16xf32>
    %259 = vector.shape_cast %258 : vector<16xf32> to vector<1x1x16xf32>
    %260 = vector.broadcast %259 : vector<1x1x16xf32> to vector<8x16x16xf32>
    %261 = arith.addf %256, %260 : vector<8x16x16xf32>
    %cst_175 = arith.constant 0.000000e+00 : f32
    %262 = vector.broadcast %cst_175 : f32 to vector<8x16x16xf32>
    %263 = arith.maximumf %261, %262 : vector<8x16x16xf32>
    %c0_176 = arith.constant 0 : index
    %c0_177 = arith.constant 0 : index
    %c0_178 = arith.constant 0 : index
    %264 = vector.load %arg15[%c0_176, %c0_177, %c0_178] : memref<1x1x16xf32, #tpu.memory_space<vmem>>, vector<1x1x16xf32>
    %265 = vector.shape_cast %264 : vector<1x1x16xf32> to vector<16xf32>
    %266 = vector.shape_cast %265 : vector<16xf32> to vector<1x1x16xf32>
    %267 = vector.broadcast %266 : vector<1x1x16xf32> to vector<8x16x16xf32>
    %268 = arith.addf %263, %267 : vector<8x16x16xf32>
    %c0_179 = arith.constant 0 : index
    %c0_180 = arith.constant 0 : index
    %c0_181 = arith.constant 0 : index
    %c0_182 = arith.constant 0 : index
    %269 = vector.load %arg16[%c0_179, %c0_180, %c0_181, %c0_182] : memref<1x8x16x16xf32, #tpu.memory_space<vmem>>, vector<1x8x16x16xf32>
    %270 = vector.shape_cast %269 : vector<1x8x16x16xf32> to vector<8x16x16xf32>
    %271 = vector.shape_cast %268 : vector<8x16x16xf32> to vector<1x8x16x16xf32>
    tpu.vector_store %arg16[%c0_179, %c0_180, %c0_181, %c0_182], %271 {strides = array<i32>} : memref<1x8x16x16xf32, #tpu.memory_space<vmem>>, vector<1x8x16x16xf32>,
    return
  }
  func.func @transform_0(%arg0: i32, %arg1: i32) -> (i32, i32, i32, i32) {
    %c0_i32 = arith.constant 0 : i32
    %c0_i32_0 = arith.constant 0 : i32
    %c0_i32_1 = arith.constant 0 : i32
    return %arg0, %arg1, %c0_i32, %c0_i32_0 : i32, i32, i32, i32
  }
  func.func @transform_1(%arg0: i32, %arg1: i32) -> (i32, i32, i32, i32) {
    %c4_i32 = arith.constant 4 : i32
    %0 = arith.muli %arg1, %c4_i32 : i32
    %c1_i32 = arith.constant 1 : i32
    %1 = arith.subi %0, %c1_i32 : i32
    %c0_i32 = arith.constant 0 : i32
    %2 = arith.maxsi %1, %c0_i32 : i32
    %c0_i32_0 = arith.constant 0 : i32
    %c0_i32_1 = arith.constant 0 : i32
    %c0_i32_2 = arith.constant 0 : i32
    return %arg0, %2, %c0_i32_0, %c0_i32_1 : i32, i32, i32, i32
  }
  func.func @transform_2(%arg0: i32, %arg1: i32) -> (i32, i32, i32, i32) {
    %c1_i32 = arith.constant 1 : i32
    %0 = arith.addi %arg1, %c1_i32 : i32
    %c4_i32 = arith.constant 4 : i32
    %1 = arith.muli %0, %c4_i32 : i32
    %c7_i32 = arith.constant 7 : i32
    %2 = arith.minsi %1, %c7_i32 : i32
    %c0_i32 = arith.constant 0 : i32
    %c0_i32_0 = arith.constant 0 : i32
    %c0_i32_1 = arith.constant 0 : i32
    return %arg0, %2, %c0_i32, %c0_i32_0 : i32, i32, i32, i32
  }
  func.func @transform_3(%arg0: i32, %arg1: i32) -> (i32, i32, i32, i32) {
    %c0_i32 = arith.constant 0 : i32
    %c0_i32_0 = arith.constant 0 : i32
    %c0_i32_1 = arith.constant 0 : i32
    return %arg0, %arg1, %c0_i32, %c0_i32_0 : i32, i32, i32, i32
  }
  func.func @transform_4(%arg0: i32, %arg1: i32) -> (i32, i32, i32, i32) {
    %c4_i32 = arith.constant 4 : i32
    %0 = arith.muli %arg1, %c4_i32 : i32
    %c1_i32 = arith.constant 1 : i32
    %1 = arith.subi %0, %c1_i32 : i32
    %c0_i32 = arith.constant 0 : i32
    %2 = arith.maxsi %1, %c0_i32 : i32
    %c0_i32_0 = arith.constant 0 : i32
    %c0_i32_1 = arith.constant 0 : i32
    %c0_i32_2 = arith.constant 0 : i32
    return %arg0, %2, %c0_i32_0, %c0_i32_1 : i32, i32, i32, i32
  }
  func.func @transform_5(%arg0: i32, %arg1: i32) -> (i32, i32, i32, i32) {
    %c1_i32 = arith.constant 1 : i32
    %0 = arith.addi %arg1, %c1_i32 : i32
    %c4_i32 = arith.constant 4 : i32
    %1 = arith.muli %0, %c4_i32 : i32
    %c7_i32 = arith.constant 7 : i32
    %2 = arith.minsi %1, %c7_i32 : i32
    %c0_i32 = arith.constant 0 : i32
    %c0_i32_0 = arith.constant 0 : i32
    %c0_i32_1 = arith.constant 0 : i32
    return %arg0, %2, %c0_i32, %c0_i32_0 : i32, i32, i32, i32
  }
  func.func @transform_6(%arg0: i32, %arg1: i32) -> (i32, i32, i32) {
    %c0_i32 = arith.constant 0 : i32
    %c0_i32_0 = arith.constant 0 : i32
    %c0_i32_1 = arith.constant 0 : i32
    %c0_i32_2 = arith.constant 0 : i32
    return %c0_i32, %c0_i32_0, %c0_i32_1 : i32, i32, i32
  }
  func.func @transform_7(%arg0: i32, %arg1: i32) -> (i32, i32) {
    %c0_i32 = arith.constant 0 : i32
    %c0_i32_0 = arith.constant 0 : i32
    %c0_i32_1 = arith.constant 0 : i32
    return %c0_i32, %c0_i32_0 : i32, i32
  }
  func.func @transform_8(%arg0: i32, %arg1: i32) -> (i32, i32, i32) {
    %c0_i32 = arith.constant 0 : i32
    %c0_i32_0 = arith.constant 0 : i32
    %c0_i32_1 = arith.constant 0 : i32
    %c0_i32_2 = arith.constant 0 : i32
    return %c0_i32, %c0_i32_0, %c0_i32_1 : i32, i32, i32
  }
  func.func @transform_9(%arg0: i32, %arg1: i32) -> (i32, i32, i32) {
    %c0_i32 = arith.constant 0 : i32
    %c0_i32_0 = arith.constant 0 : i32
    %c0_i32_1 = arith.constant 0 : i32
    %c0_i32_2 = arith.constant 0 : i32
    return %c0_i32, %c0_i32_0, %c0_i32_1 : i32, i32, i32
  }
  func.func @transform_10(%arg0: i32, %arg1: i32) -> (i32, i32) {
    %c0_i32 = arith.constant 0 : i32
    %c0_i32_0 = arith.constant 0 : i32
    %c0_i32_1 = arith.constant 0 : i32
    return %c0_i32, %c0_i32_0 : i32, i32
  }
  func.func @transform_11(%arg0: i32, %arg1: i32) -> (i32, i32, i32) {
    %c0_i32 = arith.constant 0 : i32
    %c0_i32_0 = arith.constant 0 : i32
    %c0_i32_1 = arith.constant 0 : i32
    %c0_i32_2 = arith.constant 0 : i32
    return %c0_i32, %c0_i32_0, %c0_i32_1 : i32, i32, i32
  }
  func.func @transform_12(%arg0: i32, %arg1: i32) -> (i32, i32) {
    %c0_i32 = arith.constant 0 : i32
    %c0_i32_0 = arith.constant 0 : i32
    %c0_i32_1 = arith.constant 0 : i32
    return %c0_i32, %c0_i32_0 : i32, i32
  }
  func.func @transform_13(%arg0: i32, %arg1: i32) -> (i32, i32, i32) {
    %c0_i32 = arith.constant 0 : i32
    %c0_i32_0 = arith.constant 0 : i32
    %c0_i32_1 = arith.constant 0 : i32
    return %arg0, %c0_i32, %c0_i32_0 : i32, i32, i32
  }
  func.func @transform_14(%arg0: i32, %arg1: i32) -> (i32, i32, i32, i32) {
    %c0_i32 = arith.constant 0 : i32
    %c0_i32_0 = arith.constant 0 : i32
    %c0_i32_1 = arith.constant 0 : i32
    return %arg0, %arg1, %c0_i32, %c0_i32_0 : i32, i32, i32, i32
  }
}

</mosaic_0001>

<bundles_post_ra>
// kernel: upsampling_forward.1
= control target key start
LH: loop header
LB: loop body
LE: loop exit
PB: predicated region body
PF: predicated region fallthrough
CT: control target
= control target key end

     0   :  { %s10740_s0 = inlined_call_operand.hbm [shape: bf16[2,8,8,16], index: 0, kind: input, shape index: {}, may-alias: {0,1,2}]   ;;  %s10741_s1 = inlined_call_operand.hbm [shape: bf16[2,8,8,16], index: 1, kind: input, shape index: {}, may-alias: {0,1,2}]   ;;  %s10742_s2 = inlined_call_operand.hbm [shape: bf16[2,8,8,16], index: 2, kind: input, shape index: {}, may-alias: {0,1,2}]   ;;  %s10743_s3 = inlined_call_operand.hbm [shape: bf16[2,16,16,8], index: 3, kind: input, shape index: {}, may-alias: {3,4,5}]   ;;  %s10744_s4 = inlined_call_operand.hbm [shape: bf16[2,16,16,8], index: 4, kind: input, shape index: {}, may-alias: {3,4,5}]   ;;  %s10745_s5 = inlined_call_operand.hbm [shape: bf16[2,16,16,8], index: 5, kind: input, shape index: {}, may-alias: {3,4,5}]   ;;  %s10746_s6 = inlined_call_operand.hbm [shape: bf16[4,16,8], index: 6, kind: input, shape index: {}]   ;;  %s10747_s7 = inlined_call_operand.hbm [shape: f32[1,8], index: 7, kind: input, shape index: {}]   ;;  %s10748_s8 = inlined_call_operand.hbm [shape: bf16[9,8,16], index: 8, kind: input, shape index: {}]   ;;  %s10749_s9 = inlined_call_operand.hbm [shape: bf16[9,8,16], index: 9, kind: input, shape index: {}]   ;;  %s10750_s10 = inlined_call_operand.hbm [shape: f32[1,16], index: 10, kind: input, shape index: {}]   ;;  %s10751_s11 = inlined_call_operand.hbm [shape: bf16[9,16,16], index: 11, kind: input, shape index: {}]   ;;  %s10752_s12 = inlined_call_operand.hbm [shape: f32[1,16], index: 12, kind: input, shape index: {}]   ;;  %s10753_s13 = inlined_call_operand.hbm [shape: f32[2,1,16], index: 13, kind: input, shape index: {}]   ;;  %s10754_s14 = inlined_call_operand.hbm [shape: f32[2,16,16,16], index: 14, kind: output, shape index: {}]  }
   0x1   :  { %10815 = sst [smem:[#allocation65_spill]] %s10740_s0 }
   0x2   :  { %10816 = sst [smem:[#allocation66_spill]] %s10741_s1 }
   0x3   :  { %10817 = sst [smem:[#allocation67_spill]] %s10742_s2 }
   0x4   :  { %10818 = sst [smem:[#allocation68_spill]] %s10743_s3 }
   0x5   :  { %10819 = sst [smem:[#allocation69_spill]] %s10744_s4 }
   0x6   :  { %10820 = sst [smem:[#allocation70_spill]] %s10745_s5 }
   0x7   :  { %10821 = sst [smem:[#allocation71_spill]] %s10746_s6 }
   0x8   :  { %10822 = sst [smem:[#allocation72_spill]] %s10747_s7 }
   0x9   :  { %10823 = sst [smem:[#allocation73_spill]] %s10748_s8 }
   0xa   :  { %10824 = sst [smem:[#allocation74_spill]] %s10749_s9 }
   0xb   :  { %10825 = sst [smem:[#allocation75_spill]] %s10750_s10 }
   0xc   :  { %10826 = sst [smem:[#allocation76_spill]] %s10751_s11 }
   0xd   :  { %10827 = sst [smem:[#allocation77_spill]] %s10752_s12 }
   0xe   :  { %10828 = sst [smem:[#allocation78_spill]] %s10753_s13 }
   0xf   :  { %10829 = sst [smem:[#allocation79_spill]] %s10754_s14 }
  0x10   :  { %19 = vsyncpa [#allocation5], 0 }
  0x11   :  { %21 = vsyncpa [#allocation5 + $0x1], 0 }
  0x12   :  { %22 = vsyncpa [#allocation8], 0 }
  0x13   :  { %24 = vsyncpa [#allocation8 + $0x1], 0 }
  0x14   :  { %25 = vsyncpa [#allocation11], 0 }
  0x15   :  { %27 = vsyncpa [#allocation11 + $0x1], 0 }
  0x16   :  { %28 = vsyncpa [#allocation14], 0 }
  0x17   :  { %30 = vsyncpa [#allocation14 + $0x1], 0 }
  0x18   :  { %31 = vsyncpa [#allocation17], 0 }
  0x19   :  { %32 = vsyncpa [#allocation20], 0 }
  0x1a   :  { %33 = vsyncpa [#allocation23], 0 }
  0x1b   :  { %34 = vsyncpa [#allocation26], 0 }
  0x1c   :  { %36 = vsyncpa [#allocation26 + $0x1], 0 }
  0x1d   :  { %37 = vsyncpa [#allocation6], 0 }
  0x1e   :  { %39 = vsyncpa [#allocation6 + $0x1], 0  ;;  %s8584_s29 = smov 0   ;;  %s8586_s30 = smov 0  }
  0x1f   :  { %s8588_s15 = smov 0   ;;  %s8590_s16 = smov 0  }
  0x20   :  { %s8592_s17 = smov 0   ;;  %s8594_s18 = smov 0  }
  0x21   :  { %s8596_s19 = smov 0   ;;  %s8598_s20 = smov 0  }
  0x22   :  { %s8600_s21 = smov 0   ;;  %s8602_s22 = smov 0  }
  0x23   :  { %s8604_s23 = smov 0   ;;  %s8606_s24 = smov 0  }
  0x24   :  { %s8608_s25 = smov 0   ;;  %s8610_s26 = smov 0  }
  0x25   :  { %s8612_s27 = smov 0   ;;  %s8614_s28 = smov 0  }
  0x26   :  { %s8616_s14 = smov 0  }
  0x27 LB: > { %10830 = sst [smem:[#allocation40_spill]] %s8422_s29  ;;  %s8670_s13 = sadd.s32 4294967295, %s8486_s14   ;;  %s8486_s14 = sphi %s8616_s14, %s45_s14   ;;  %s8482_s28 = sphi %s8614_s28, %s11130_s28   ;;  %s8478_s27 = sphi %s8612_s27, %s11129_s27   ;;  %s8474_s26 = sphi %s8610_s26, %s11117_s26   ;;  %s8470_s25 = sphi %s8608_s25, %s11116_s25   ;;  %s8466_s24 = sphi %s8606_s24, %s11128_s24   ;;  %s8462_s23 = sphi %s8604_s23, %s11127_s23   ;;  %s8458_s22 = sphi %s8602_s22, %s11113_s22   ;;  %s8454_s21 = sphi %s8600_s21, %s11126_s21   ;;  %s8450_s20 = sphi %s8598_s20, %s11111_s20   ;;  %s8446_s19 = sphi %s8596_s19, %s11125_s19   ;;  %s8442_s18 = sphi %s8594_s18, %s11124_s18   ;;  %s8438_s17 = sphi %s8592_s17, %s11108_s17   ;;  %s8434_s16 = sphi %s8590_s16, %s11123_s16   ;;  %s8430_s15 = sphi %s8588_s15, %s11122_s15   ;;  %s8426_s30 = sphi %s8586_s30, %s11120_s30   ;;  %s8422_s29 = sphi %s8584_s29, %s11105_s29  }
  0x28   : > { %10831 = sst [smem:[#allocation41_spill]] %s8426_s30  ;;  %p5898_p0 = scmp.ge.s32.totalorder %s8486_s14, 1 }
  0x29   : > { %10832 = sst [smem:[#allocation42_spill]] %s8430_s15  ;;  %p10771_p1 = scmp.eq.s32.totalorder %s8670_s13, 0 }
  0x2a   : > { %10833 = sst [smem:[#allocation43_spill]] %s8434_s16  ;;  %p463_p2 = scmp.lt.s32.totalorder %s8486_s14, 5 }
  0x2b   : > { %10834 = sst [smem:[#allocation44_spill]] %s8438_s17  ;;  %s8489_s15 = smov [#allocation16]  }
  0x2c   : > { %10835 = sst [smem:[#allocation45_spill]] %s8442_s18  ;;  %p8675_p3 = pnand %p5898_p0, %p463_p2 }
  0x2d   : > { %10836 = sst [smem:[#allocation46_spill]] %s8450_s20  ;;  %s489_s5 = sshll.u32 %s8489_s15, 4  ;;  %s8689_s5 = int_to_ptr.vmem [resolvable:$true] %s489_s5 }
  0x2e   : > { %10837 = sst [smem:[#allocation47_spill]] %s8454_s21  ;;  %p7643_p4 = pneg %p8675_p3 }
  0x2f   : > { %10838 = sst [smem:[#allocation48_spill]] %s8458_s22  ;;  %s8490_s4 = smov [#allocation19]  }
  0x30   : > { %10839 = sst [smem:[#allocation49_spill]] %s8462_s23  ;;  %p8685_p5 = pnand %p7643_p4, %p10771_p1 }
  0x31   : > { %10840 = sst [smem:[#allocation50_spill]] %s8466_s24  ;;  %s8691_s2 = sshll.u32 %s8490_s4, 4  ;;  %s513_s2 = int_to_ptr.vmem [resolvable:$true] %s8691_s2 }
  0x32   : > { %10841 = sst [smem:[#allocation51_spill]] %s8470_s25  ;;  %s10848_s6 = sld [smem:[#allocation71_spill]] }
  0x33   : > { %10842 = sst [smem:[#allocation52_spill]] %s8474_s26  ;;  %s8488_s26 = smov [#allocation15]  }
  0x34   : > { %10843 = sst [smem:[#allocation53_spill]] %s8478_s27  ;;  %s475_s29 = sshll.u32 %s8488_s26, 4  ;;  %s8679_s29 = int_to_ptr.vmem [resolvable:$true] %s475_s29 }
  0x35   : > { %10844 = sst [smem:[#allocation54_spill]] %s8482_s28  ;;  %p8701_p7 = pneg %p8685_p5 }
  0x36   : > { %s10845_s25 = scalar_select %p8675_p3, 1, 0 }
  0x37   : > { %s10847_s30 = scalar_select %p8685_p5, 1, 0 }
  0x38   : > { %10846 = sst [smem:[#allocation55_spill]] %s10845_s25  ;;  %s7870_s26 = scalar_lea.hbm %s10848_s6, 512 }
  0x39   : > { %p7871_p6 = scmp.ne.s32.totalorder %s10848_s6, %s7870_s26  ;;  %p7877_p10 = scmp.lt.u32.totalorder %s7870_s26, %s10848_s6 }
  0x3b   : > { %p7873_p8 = pnand %p8701_p7, %p7871_p6 }
  0x3d   : > { %p7874_p9 = pneg %p7873_p8 }
  0x3f   : > { %p7879_p11 = pnand %p7877_p10, %p7874_p9 }
  0x41   : > { %7882 = shalt.err (!%p7879_p11)
}
  0x42   : > { %s7883_s16 = scalar_lea.vmem %s8679_s29, 512  ;;  %p7891_p2 = scmp.lt.s32.totalorder %s8679_s29, %s8679_s29 }
  0x43   : > { %p7884_p12 = scmp.ne.s32.totalorder %s8679_s29, %s7883_s16  ;;  %p7892_p4 = scmp.lt.s32.totalorder %s7883_s16, %s7883_s16 }
  0x45   : > { %p7886_p13 = pnand %p7884_p12, %p8701_p7  ;;  %p7893_p6 = por %p7892_p4, %p7891_p2 }
  0x47   : > { %p7887_p0 = pneg %p7886_p13 }
  0x49   : > { %p7894_p8 = pnand %p7893_p6, %p7887_p0 }
  0x4b   : > { %7897 = shalt.err (!%p7894_p8)
}
  0x4c   : > { %s10773_s17 = smov 64   ;;  %s10775_s18 = smov 4  }
  0x4d   : > { %7646 = dma.hbm_to_vmem [thread:$0]  (!%p8685_p5), %s10848_s6, 512, %s8679_s29, [#allocation14], %s10773_s17, %s10773_s17, %s10775_s18  }
  0x4e   : > { %s10850_s7 = sld [smem:[#allocation72_spill]] }
  0x54   : > { %s7898_s16 = scalar_lea.hbm %s10850_s7, 16 }
  0x55   : > { %p7899_p9 = scmp.ne.s32.totalorder %s10850_s7, %s7898_s16  ;;  %p7905_p12 = scmp.lt.u32.totalorder %s7898_s16, %s10850_s7 }
  0x57   : > { %p7901_p10 = pnand %p7899_p9, %p8701_p7 }
  0x59   : > { %p7902_p11 = pneg %p7901_p10 }
  0x5b   : > { %p7907_p13 = pnand %p7905_p12, %p7902_p11 }
  0x5d   : > { %7910 = shalt.err (!%p7907_p13)
}
  0x5e   : > { %s7911_s29 = scalar_lea.vmem %s8689_s5, 16  ;;  %s7918_s10 = scalar_lea.vmem %s8689_s5, 32 }
  0x5f   : > { %p7912_p0 = scmp.ne.s32.totalorder %s8689_s5, %s7911_s29  ;;  %p7919_p6 = scmp.lt.s32.totalorder %s8689_s5, %s8689_s5 }
  0x60   : > { %p7920_p8 = scmp.lt.s32.totalorder %s7918_s10, %s7911_s29 }
  0x61   : > { %p7914_p2 = pnand %p7912_p0, %p8701_p7 }
  0x62   : > { %p7921_p9 = por %p7920_p8, %p7919_p6 }
  0x63   : > { %p7915_p4 = pneg %p7914_p2 }
  0x65   : > { %p7922_p10 = pnand %p7921_p9, %p7915_p4 }
  0x67   : > { %7925 = shalt.err (!%p7922_p10)
}
  0x68   : > { %7649 = dma.hbm_to_vmem [thread:$0]  (!%p8685_p5), %s10850_s7, 16, %s8689_s5, [#allocation17]  }
  0x69   : > { %s10851_s9 = sld [smem:[#allocation74_spill]] }
  0x6f   : > { %s7926_s26 = scalar_lea.hbm %s10851_s9, 576 }
  0x70   : > { %p7927_p11 = scmp.ne.s32.totalorder %s10851_s9, %s7926_s26  ;;  %p7933_p0 = scmp.lt.u32.totalorder %s7926_s26, %s10851_s9 }
  0x72   : > { %p7929_p12 = pnand %p7927_p11, %p8701_p7 }
  0x74   : > { %p7930_p13 = pneg %p7929_p12 }
  0x76   : > { %p7935_p2 = pnand %p7933_p0, %p7930_p13 }
  0x78   : > { %7938 = shalt.err (!%p7935_p2)
}
  0x79   : > { %s7939_s10 = scalar_lea.vmem %s513_s2, 576  ;;  %p7947_p9 = scmp.lt.s32.totalorder %s513_s2, %s513_s2 }
  0x7a   : > { %p7940_p4 = scmp.ne.s32.totalorder %s513_s2, %s7939_s10  ;;  %p7948_p10 = scmp.lt.s32.totalorder %s7939_s10, %s7939_s10 }
  0x7c   : > { %p7942_p6 = pnand %p7940_p4, %p8701_p7  ;;  %p7949_p1 = por %p7948_p10, %p7947_p9 }
  0x7e   : > { %p7943_p8 = pneg %p7942_p6 }
  0x80   : > { %p7950_p3 = pnand %p7949_p1, %p7943_p8 }
  0x82   : > { %7953 = shalt.err (!%p7950_p3)
}
  0x83   : > { %7655 = dma.hbm_to_vmem [thread:$0]  (!%p8685_p5), %s10851_s9, 576, %s513_s2, [#allocation20], %s10773_s17, %s10773_s17, %s10775_s18  }
  0x84   : > { %s8493_s8 = smov [#allocation22]   ;;  %s10852_s11 = sld [smem:[#allocation76_spill]] }
  0x85   : > { %s536_s12 = sshll.u32 %s8493_s8, 4  ;;  %s537_s12 = int_to_ptr.vmem [resolvable:$true] %s536_s12 }
  0x8a   : > { %s7954_s15 = scalar_lea.hbm %s10852_s11, 1152 }
  0x8b   : > { %p7955_p1 = scmp.ne.s32.totalorder %s10852_s11, %s7954_s15  ;;  %p7961_p12 = scmp.lt.u32.totalorder %s7954_s15, %s10852_s11 }
  0x8d   : > { %p7957_p3 = pnand %p7955_p1, %p8701_p7 }
  0x8f   : > { %p7958_p11 = pneg %p7957_p3 }
  0x91   : > { %p7963_p13 = pnand %p7961_p12, %p7958_p11 }
  0x93   : > { %7966 = shalt.err (!%p7963_p13)
}
  0x94   : > { %s7967_s2 = scalar_lea.vmem %s537_s12, 1152  ;;  %p7975_p6 = scmp.lt.s32.totalorder %s537_s12, %s537_s12 }
  0x95   : > { %p7968_p0 = scmp.ne.s32.totalorder %s537_s12, %s7967_s2  ;;  %p7976_p8 = scmp.lt.s32.totalorder %s7967_s2, %s7967_s2 }
  0x97   : > { %p7970_p2 = pnand %p7968_p0, %p8701_p7  ;;  %p7977_p9 = por %p7976_p8, %p7975_p6 }
  0x99   : > { %p7971_p4 = pneg %p7970_p2 }
  0x9b   : > { %p7978_p10 = pnand %p7977_p9, %p7971_p4 }
  0x9d   : > { %7981 = shalt.err (!%p7978_p10)
}
  0x9e   : > { %7661 = dma.hbm_to_vmem [thread:$0]  (!%p8685_p5), %s10852_s11, 1152, %s537_s12, [#allocation23], %s10773_s17, %s10773_s17, %s10775_s18  }
  0x9f   : > { %s54_s8 = sadd.s32 1, %s8478_s27  ;;  %s57_s25 = sadd.s32 1, %s8482_s28 }
  0xa0   : > { %p55_p1 = scmp.ge.s32.totalorder %s54_s8, 2  ;;  %p10783_p3 = scmp.eq.s32.totalorder %s8486_s14, 0 }
  0xa1   : > { %s8796_s26 = sshll.u32 %s8478_s27, 2  ;;  %s102_s15 = sadd.s32 1, %s8454_s21 }
  0xa2   : > { %s11132_s8 = smov (%p55_p1, %s54_s8), 0  ;;  %s11134_s25 = smov (!%p55_p1, %s57_s25), %s8482_s28 }
  0xa3   : > { %10853 = sst [smem:[#allocation56_spill]] %s11132_s8  ;;  %s62_s4 = ssub.s32 %s8478_s27, %s11132_s8 }
  0xa4   : > { %s5887_s16 = sadd.s32 4294967295, %s8796_s26  ;;  %p59_p11 = scmp.ge.s32.totalorder %s11134_s25, 2 }
  0xa5   : > { %p91_p12 = scmp.gt.s32.totalorder %s5887_s16, 0  ;;  %s5888_s12 = sshll.u32 %s11132_s8, 2 }
  0xa6   : > { %p109_p13 = scmp.ne.s32.totalorder %s8454_s21, %s8450_s20  ;;  %s11136_s25 = smov (%p59_p11, %s11134_s25), 0 }
  0xa7   : > { %10854 = sst [smem:[#allocation57_spill]] %s11136_s25  ;;  %s11138_s16 = smov (!%p91_p12, %s5887_s16), 0 }
  0xa8   : > { %s8814_s29 = ssub.s32 %s8482_s28, %s11136_s25  ;;  %s5889_s10 = sadd.s32 4294967295, %s5888_s12 }
  0xa9   : > { %s8817_s2 = sor.u32 %s62_s4, %s8814_s29  ;;  %p95_p0 = scmp.gt.s32.totalorder %s5889_s10, 0 }
  0xaa   : > { %p8822_p4 = por %p109_p13, %p10783_p3  ;;  %p115_p6 = scmp.ne.s32.totalorder %s8450_s20, %s8446_s19 }
  0xab   : > { %s11140_s10 = smov (!%p95_p0, %s5889_s10), 0  ;;  %s8828_s3 = sadd.s32 4, %s5888_s12 }
  0xac   : > { %s98_s17 = ssub.s32 %s11138_s16, %s11140_s10  ;;  %p10856_p9 = scmp.eq.s32.totalorder %s8670_s13, 0 }
  0xad   : > { %s99_s4 = sor.u32 %s98_s17, %s8814_s29  ;;  %p10782_p11 = scmp.lt.s32.totalorder %s8486_s14, 4 }
  0xae   : > { %p8835_p10 = por %p115_p6, %p10856_p9  ;;  %p100_p1 = scmp.eq.s32.totalorder %s99_s4, 0 }
  0xaf   : > { %s8841_s6 = sshll.u32 %s8482_s28, 3  ;;  %s8844_s19 = sand.u32 1, %s8486_s14  }
  0xb0   : > { %s10857_s18 = scalar_select %p8835_p10, 1, 0 }
  0xb1   : > { %s8847_s12 = scalar_select %p100_p1, %s8454_s21, %s102_s15  }
  0xb2   : > { %10858 = sst [smem:[#allocation58_spill]] %s10857_s18  ;;  %s586_s7 = sand.u32 1, %s8454_s21  }
  0xb3   : > { %10859 = sst [smem:[#allocation59_spill]] %s8847_s12  ;;  %s597_s9 = sadd.s32 %s8841_s6, %s11138_s16 }
  0xb4   : > { %s5911_s17 = sshll.u32 %s586_s7, 2  ;;  %s5915_s11 = sshll.u32 %s597_s9, 6 }
  0xb5   : > { %s10860_s1 = sld [smem:[#allocation66_spill]]  ;;  %s588_s4 = scalar_lea.vmem [#allocation7], %s5911_s17 }
  0xb6   : > { %s601_s20 = sshll.u32 %s588_s4, 4  ;;  %p8863_p12 = pnand %p10782_p11, %p8822_p4  ;;  %s8867_s20 = int_to_ptr.vmem [resolvable:$true] %s601_s20 }
  0xb7   : > { %s8869_s9 = sshll.u32 %s586_s7, 4 }
  0xb8   : > { %s10861_s15 = scalar_select %p8863_p12, 1, 0 }
  0xb9   : > { %p10795_p0 = pneg %p8863_p12 }
  0xbb   : > { %s8857_s18 = scalar_lea.hbm %s10860_s1, %s5915_s11  ;;  %s10787_s11 = scalar_lea.sflag [#allocation8], %s8844_s19 }
  0xbc   : > { %s7982_s8 = scalar_lea.hbm %s8857_s18, 64  ;;  %s7987_s17 = scalar_lea.hbm %s10860_s1, 1024 }
  0xbd   : > { %p7983_p13 = scmp.ne.s32.totalorder %s8857_s18, %s7982_s8  ;;  %p7988_p4 = scmp.lt.u32.totalorder %s8857_s18, %s10860_s1 }
  0xbe   : > { %p7989_p1 = scmp.lt.u32.totalorder %s7987_s17, %s7982_s8  ;;  %p7991_p11 = scmp.lt.u32.totalorder %s7982_s8, %s8857_s18 }
  0xbf   : > { %p7985_p6 = pnand %p10795_p0, %p7983_p13 }
  0xc0   : > { %p7990_p8 = por %p7989_p1, %p7988_p4 }
  0xc1   : > { %p7986_p9 = pneg %p7985_p6 }
  0xc2   : > { %p7992_p3 = por %p7991_p11, %p7990_p8 }
  0xc4   : > { %p7993_p2 = pnand %p7992_p3, %p7986_p9 }
  0xc6   : > { %7996 = shalt.err (!%p7993_p2)
}
  0xc7   : > { %s7997_s7 = scalar_lea.vmem %s8867_s20, 64  ;;  %s8494_s25 = smov [#allocation7]  }
  0xc8   : > { %p7998_p13 = scmp.ne.s32.totalorder %s8867_s20, %s7997_s7  ;;  %s8002_s5 = sshll.u32 %s8494_s25, 4  ;;  %s8003_s5 = int_to_ptr.vmem [resolvable:$false] %s8002_s5 }
  0xc9   : > { %s8004_s10 = scalar_lea.vmem %s8003_s5, 128  ;;  %p8005_p5 = scmp.lt.s32.totalorder %s8867_s20, %s8003_s5 }
  0xca   : > { %p8000_p6 = pnand %p7998_p13, %p10795_p0  ;;  %p8006_p4 = scmp.lt.s32.totalorder %s8004_s10, %s7997_s7 }
  0xcc   : > { %p8001_p10 = pneg %p8000_p6  ;;  %p8007_p1 = por %p8006_p4, %p8005_p5 }
  0xce   : > { %p8008_p8 = pnand %p8007_p1, %p8001_p10 }
  0xd0   : > { %8011 = shalt.err (!%p8008_p8)
}
  0xd1   : > { %7671 = dma.hbm_to_vmem [thread:$0]  (!%p8863_p12), %s8857_s18, 64, %s8867_s20, %s10787_s11  }
  0xd2   : > { %s660_s17 = scalar_lea.vmem [#allocation12], %s8869_s9  ;;  %s5885_s7 = sadd.s32 4294967294, %s8486_s14  }
  0xd3   : > { %s674_s4 = sshll.u32 %s660_s17, 4  ;;  %s66_s25 = sadd.s32 1, %s8466_s24  ;;  %s8901_s4 = int_to_ptr.vmem [resolvable:$true] %s674_s4 }
  0xd4   : > { %10862 = sst [smem:[#allocation60_spill]] %s8901_s4  ;;  %p73_p5 = scmp.ne.s32.totalorder %s8466_s24, %s8462_s23 }
  0xd5   : > { %p10863_p3 = scmp.eq.s32.totalorder %s8817_s2, 0  ;;  %p10865_p2 = scmp.eq.s32.totalorder %s8486_s14, 0 }
  0xd6   : > { %p79_p11 = scmp.ne.s32.totalorder %s8462_s23, %s8458_s22  ;;  %p450_p9 = scmp.eq.s32.totalorder %s8670_s13, 3 }
  0xd7   : > { %s8910_s5 = scalar_select %p10863_p3, %s8466_s24, %s66_s25  }
  0xd8   : > { %p75_p10 = por %p10865_p2, %p73_p5  ;;  %p456_p13 = scmp.eq.s32.totalorder %s5885_s7, 3 }
  0xd9   : > { %10864 = sst [smem:[#allocation61_spill]] %s8910_s5  ;;  %p10866_p6 = scmp.eq.s32.totalorder %s8670_s13, 0 }
  0xda   : > { %s8924_s18 = sand.u32 1, %s8466_s24   ;;  %p8926_p1 = por %p450_p9, %p73_p5 }
  0xdb   : > { %p8919_p4 = por %p10866_p6, %p79_p11  ;;  %p8930_p8 = por %p456_p13, %p79_p11 }
  0xdc   : > { %s10869_s9 = scalar_select %p8926_p1, 1, 0 }
  0xdd   : > { %s10867_s20 = scalar_select %p8919_p4, 1, 0 }
  0xde   : > { %10870 = sst [smem:[#allocation63_spill]] %s10869_s9  ;;  %p10873_p3 = scmp.lt.s32.totalorder %s8486_s14, 4 }
  0xdf   : > { %10868 = sst [smem:[#allocation62_spill]] %s10867_s20  ;;  %s5920_s17 = sshll.u32 %s8924_s18, 6 }
  0xe0   : > { %s10871_s2 = scalar_select %p8930_p8, 1, 0 }
  0xe1   : > { %p8936_p2 = pnand %p10873_p3, %p75_p10  ;;  %s6270_s7 = sshll.u32 %s8478_s27, 4 }
  0xe2   : > { %10872 = sst [smem:[#allocation64_spill]] %s10871_s2  ;;  %s8943_s25 = sshll.u32 %s8482_s28, 5 }
  0xe3   : > { %s10874_s10 = scalar_select %p8936_p2, 1, 0 }
  0xe4   : > { %s643_s11 = sadd.s32 %s6270_s7, %s8943_s25  ;;  %s636_s8 = scalar_lea.vmem [#allocation10], %s5920_s17 }
  0xe5   : > { %s646_s1 = sshll.u32 %s636_s8, 4  ;;  %s5924_s5 = sshll.u32 %s643_s11, 6  ;;  %s8946_s1 = int_to_ptr.vmem [resolvable:$true] %s646_s1 }
  0xe6   : > { %s10875_s21 = sld [smem:[#allocation68_spill]]  ;;  %s10809_s9 = scalar_lea.sflag [#allocation11], %s8844_s19 }
  0xe7   : > { %p10806_p10 = pneg %p8936_p2 }
  0xec   : > { %s10876_s2 = smov %s10875_s21  ;;  %s8951_s22 = scalar_lea.hbm %s10875_s21, %s5924_s5 }
  0xed   : > { %s8012_s27 = scalar_lea.hbm %s8951_s22, 1024  ;;  %s8017_s17 = scalar_lea.hbm %s10876_s2, 4096 }
  0xee   : > { %p8013_p5 = scmp.ne.s32.totalorder %s8951_s22, %s8012_s27  ;;  %p8018_p13 = scmp.lt.u32.totalorder %s8951_s22, %s10876_s2 }
  0xef   : > { %p8019_p6 = scmp.lt.u32.totalorder %s8017_s17, %s8012_s27  ;;  %p8021_p0 = scmp.lt.u32.totalorder %s8012_s27, %s8951_s22 }
  0xf0   : > { %p8015_p11 = pnand %p10806_p10, %p8013_p5 }
  0xf1   : > { %p8020_p3 = por %p8019_p6, %p8018_p13 }
  0xf2   : > { %p8016_p9 = pneg %p8015_p11 }
  0xf3   : > { %p8022_p8 = por %p8021_p0, %p8020_p3 }
  0xf5   : > { %p8023_p1 = pnand %p8022_p8, %p8016_p9 }
  0xf7   : > { %8026 = shalt.err (!%p8023_p1)
}
  0xf8   : > { %s8027_s12 = scalar_lea.vmem %s8946_s1, 1024  ;;  %s8495_s5 = smov [#allocation10]  }
  0xf9   : > { %p8028_p5 = scmp.ne.s32.totalorder %s8946_s1, %s8027_s12  ;;  %s8032_s7 = sshll.u32 %s8495_s5, 4  ;;  %s8033_s7 = int_to_ptr.vmem [resolvable:$false] %s8032_s7 }
  0xfa   : > { %s8034_s11 = scalar_lea.vmem %s8033_s7, 2048  ;;  %p8035_p12 = scmp.lt.s32.totalorder %s8946_s1, %s8033_s7 }
  0xfb   : > { %p8030_p11 = pnand %p8028_p5, %p10806_p10  ;;  %p8036_p13 = scmp.lt.s32.totalorder %s8034_s11, %s8027_s12 }
  0xfd   : > { %p8031_p4 = pneg %p8030_p11  ;;  %p8037_p6 = por %p8036_p13, %p8035_p12 }
  0xff   : > { %p8038_p0 = pnand %p8037_p6, %p8031_p4 }
 0x101   : > { %8041 = shalt.err (!%p8038_p0)
}
 0x102   : > { %s10877_s27 = smov 4   ;;  %s10878_s8 = smov 64  }
 0x103   : > { %7677 = dma.hbm_to_vmem [thread:$0]  (!%p8936_p2), %s8951_s22, 1024, %s8946_s1, %s10809_s9, %s10878_s8, %s10878_s8, %s10877_s27  }
 0x104   : > { %s8496_s17 = smov [#allocation18]   ;;  %s8497_s21 = smov [#allocation21]  }
 0x105   : > { %s499_s24 = sshll.u32 %s8496_s17, 4  ;;  %s526_s5 = sshll.u32 %s8497_s21, 4  ;;  %s500_s24 = int_to_ptr.vmem [resolvable:$true] %s499_s24  ;;  %s527_s5 = int_to_ptr.vmem [resolvable:$true] %s526_s5 }
 0x106   : > { %s10879_s11 = sld [smem:[#allocation73_spill]] }
 0x10c   : > { %s8042_s2 = scalar_lea.hbm %s10879_s11, 576 }
 0x10d   : > { %p8043_p12 = scmp.ne.s32.totalorder %s10879_s11, %s8042_s2  ;;  %p8049_p8 = scmp.lt.u32.totalorder %s8042_s2, %s10879_s11 }
 0x10f   : > { %p8045_p4 = pnand %p8043_p12, %p8701_p7 }
 0x111   : > { %p8046_p1 = pneg %p8045_p4 }
 0x113   : > { %p8051_p9 = pnand %p8049_p8, %p8046_p1 }
 0x115   : > { %8054 = shalt.err (!%p8051_p9)
}
 0x116   : > { %s8055_s1 = scalar_lea.vmem %s500_s24, 576  ;;  %p8063_p13 = scmp.lt.s32.totalorder %s500_s24, %s500_s24 }
 0x117   : > { %p8056_p3 = scmp.ne.s32.totalorder %s500_s24, %s8055_s1  ;;  %p8064_p6 = scmp.lt.s32.totalorder %s8055_s1, %s8055_s1 }
 0x119   : > { %p8058_p5 = pnand %p8056_p3, %p8701_p7  ;;  %p8065_p0 = por %p8064_p6, %p8063_p13 }
 0x11b   : > { %p8059_p11 = pneg %p8058_p5 }
 0x11d   : > { %p8066_p10 = pnand %p8065_p0, %p8059_p11 }
 0x11f   : > { %8069 = shalt.err (!%p8066_p10)
}
 0x120   : > { %p10880_p12 = scmp.ne.s32.totalorder %s10847_s30, 0  ;;  %s10881_s20 = sld [smem:[#allocation75_spill]] }
 0x122   : > { %7652 = dma.hbm_to_vmem [thread:$0]  (!%p10880_p12), %s10879_s11, 576, %s500_s24, [#allocation17], %s10878_s8, %s10878_s8, %s10877_s27  }
 0x126   : > { %s10882_s2 = smov %s10881_s20  ;;  %s8070_s17 = scalar_lea.hbm %s10881_s20, 16 }
 0x127   : > { %p8071_p4 = scmp.ne.s32.totalorder %s10882_s2, %s8070_s17  ;;  %p8077_p8 = scmp.lt.u32.totalorder %s8070_s17, %s10882_s2 }
 0x129   : > { %p8073_p10 = pnand %p8071_p4, %p8701_p7 }
 0x12b   : > { %p8074_p1 = pneg %p8073_p10 }
 0x12d   : > { %p8079_p9 = pnand %p8077_p8, %p8074_p1 }
 0x12f   : > { %8082 = shalt.err (!%p8079_p9)
}
 0x130   : > { %s8083_s22 = scalar_lea.vmem %s527_s5, 16  ;;  %s8090_s24 = scalar_lea.vmem %s527_s5, 32 }
 0x131   : > { %p8084_p3 = scmp.ne.s32.totalorder %s527_s5, %s8083_s22  ;;  %p8091_p13 = scmp.lt.s32.totalorder %s527_s5, %s527_s5 }
 0x132   : > { %p8092_p6 = scmp.lt.s32.totalorder %s8090_s24, %s8083_s22 }
 0x133   : > { %p8086_p5 = pnand %p8084_p3, %p8701_p7 }
 0x134   : > { %p8093_p0 = por %p8092_p6, %p8091_p13 }
 0x135   : > { %p8087_p11 = pneg %p8086_p5 }
 0x137   : > { %p8094_p2 = pnand %p8093_p0, %p8087_p11 }
 0x139   : > { %8097 = shalt.err (!%p8094_p2)
}
 0x13a   : > { %7658 = dma.hbm_to_vmem [thread:$0]  (!%p10880_p12), %s10882_s2, 16, %s527_s5, [#allocation20]  }
 0x13b   : > { %s8498_s4 = smov [#allocation24]   ;;  %s5907_s17 = sshll.u32 %s8924_s18, 4 }
 0x13c   : > { %s550_s20 = sshll.u32 %s8498_s4, 4  ;;  %s10883_s7 = sld [smem:[#allocation77_spill]]  ;;  %s551_s20 = int_to_ptr.vmem [resolvable:$true] %s550_s20 }
 0x142   : > { %s8098_s1 = scalar_lea.hbm %s10883_s7, 16 }
 0x143   : > { %p8099_p2 = scmp.ne.s32.totalorder %s10883_s7, %s8098_s1  ;;  %p8105_p1 = scmp.lt.u32.totalorder %s8098_s1, %s10883_s7 }
 0x145   : > { %p8101_p4 = pnand %p8099_p2, %p8701_p7 }
 0x147   : > { %p8102_p10 = pneg %p8101_p4 }
 0x149   : > { %p8107_p8 = pnand %p8105_p1, %p8102_p10 }
 0x14b   : > { %8110 = shalt.err (!%p8107_p8)
}
 0x14c   : > { %s8111_s5 = scalar_lea.vmem %s551_s20, 16  ;;  %s8118_s28 = scalar_lea.vmem %s551_s20, 32 }
 0x14d   : > { %p8112_p9 = scmp.ne.s32.totalorder %s551_s20, %s8111_s5  ;;  %p8119_p11 = scmp.lt.s32.totalorder %s551_s20, %s551_s20 }
 0x14e   : > { %p8120_p13 = scmp.lt.s32.totalorder %s8118_s28, %s8111_s5 }
 0x14f   : > { %p8114_p3 = pnand %p8112_p9, %p8701_p7 }
 0x150   : > { %p8121_p6 = por %p8120_p13, %p8119_p11 }
 0x151   : > { %p8115_p5 = pneg %p8114_p3 }
 0x153   : > { %p8122_p0 = pnand %p8121_p6, %p8115_p5 }
 0x155   : > { %8125 = shalt.err (!%p8122_p0)
}
 0x156   : > { %7664 = dma.hbm_to_vmem [thread:$0]  (!%p10880_p12), %s10883_s7, 16, %s551_s20, [#allocation23]  }
 0x157   : > { %s10884_s9 = sadd.s32 %s8841_s6, %s8796_s26  ;;  %s10885_s22 = sld [smem:[#allocation65_spill]] }
 0x158   : > { %s5910_s0 = sshll.u32 %s10884_s9, 6  ;;  %s565_s30 = scalar_lea.vmem [#allocation4], %s5907_s17 }
 0x159   : > { %s574_s23 = sshll.u32 %s565_s30, 4  ;;  %s562_s5 = scalar_lea.sflag [#allocation5], %s8924_s18  ;;  %s9050_s23 = int_to_ptr.vmem [resolvable:$true] %s574_s23 }
 0x15a   : > { %p10887_p2 = scmp.ne.s32.totalorder %s10874_s10, 0 }
 0x15c   : > { %p10888_p12 = pneg %p10887_p2 }
 0x15d   : > { %s10886_s2 = smov %s10885_s22  ;;  %s9048_s24 = scalar_lea.hbm %s10885_s22, %s5910_s0 }
 0x15e   : > { %s8126_s28 = scalar_lea.hbm %s9048_s24, 256  ;;  %s8131_s21 = scalar_lea.hbm %s10886_s2, 1024 }
 0x15f   : > { %p8127_p7 = scmp.ne.s32.totalorder %s9048_s24, %s8126_s28  ;;  %p8132_p1 = scmp.lt.u32.totalorder %s9048_s24, %s10886_s2 }
 0x160   : > { %p8133_p8 = scmp.lt.u32.totalorder %s8131_s21, %s8126_s28  ;;  %p8135_p3 = scmp.lt.u32.totalorder %s8126_s28, %s9048_s24 }
 0x161   : > { %p8129_p4 = pnand %p8127_p7, %p10888_p12 }
 0x162   : > { %p8134_p9 = por %p8133_p8, %p8132_p1 }
 0x163   : > { %p8130_p10 = pneg %p8129_p4 }
 0x164   : > { %p8136_p5 = por %p8135_p3, %p8134_p9 }
 0x166   : > { %p8137_p11 = pnand %p8136_p5, %p8130_p10 }
 0x168   : > { %8140 = shalt.err (!%p8137_p11)
}
 0x169   : > { %s8141_s17 = scalar_lea.vmem %s9050_s23, 256  ;;  %p10889_p6 = pmov %p10888_p12 }
 0x16a   : > { %p8142_p13 = scmp.ne.s32.totalorder %s9050_s23, %s8141_s17  ;;  %s8499_s12 = smov [#allocation4]  }
 0x16b   : > { %s8146_s1 = sshll.u32 %s8499_s12, 4  ;;  %s8147_s1 = int_to_ptr.vmem [resolvable:$false] %s8146_s1 }
 0x16c   : > { %p8144_p0 = pnand %p8142_p13, %p10889_p6  ;;  %s8148_s22 = scalar_lea.vmem %s8147_s1, 512 }
 0x16d   : > { %p8149_p12 = scmp.lt.s32.totalorder %s9050_s23, %s8147_s1  ;;  %p8150_p4 = scmp.lt.s32.totalorder %s8148_s22, %s8141_s17 }
 0x16e   : > { %p8145_p7 = pneg %p8144_p0 }
 0x16f   : > { %p8151_p1 = por %p8150_p4, %p8149_p12 }
 0x171   : > { %p8152_p8 = pnand %p8151_p1, %p8145_p7 }
 0x173   : > { %8155 = shalt.err (!%p8152_p8)
}
 0x174   : > { %s10890_s30 = sld [smem:[#allocation45_spill]]  ;;  %s10891_s28 = sld [smem:[#allocation44_spill]] }
 0x175   : > { %s10892_s20 = sld [smem:[#allocation43_spill]]  ;;  %s6261_s10 = sadd.s32 4, %s8796_s26 }
 0x176   : > { %7668 = dma.hbm_to_vmem [thread:$0]  (!%p10887_p2), %s9048_s24, 256, %s9050_s23, %s562_s5, %s10878_s8, %s10878_s8, %s10877_s27  }
 0x177   : > { %p127_p10 = scmp.lt.s32.totalorder %s6261_s10, 7  ;;  %p10893_p9 = scmp.lt.s32.totalorder %s8828_s3, 7 }
 0x178   : > { %p10894_p11 = scmp.eq.s32.totalorder %s8486_s14, 0  ;;  %p10895_p6 = scmp.eq.s32.totalorder %s8670_s13, 0 }
 0x179   : > { %s11142_s3 = smov (!%p10893_p9, %s8828_s3), 7  ;;  %s11144_s10 = smov (!%p127_p10, %s6261_s10), 7 }
 0x17a   : > { %s138_s18 = sadd.s32 1, %s10890_s30  ;;  %p145_p3 = scmp.ne.s32.totalorder %s10890_s30, %s10891_s28 }
 0x17b   : > { %p151_p5 = scmp.ne.s32.totalorder %s10891_s28, %s10892_s20  ;;  %s134_s4 = ssub.s32 %s11144_s10, %s11142_s3 }
 0x17c   : > { %s610_s21 = sand.u32 1, %s10890_s30   ;;  %s135_s9 = sor.u32 %s134_s4, %s8814_s29 }
 0x17d   : > { %p147_p2 = por %p145_p3, %p10894_p11  ;;  %p136_p13 = scmp.eq.s32.totalorder %s135_s9, 0 }
 0x17e   : > { %p9099_p0 = por %p151_p5, %p10895_p6  ;;  %s5916_s24 = sshll.u32 %s610_s21, 2 }
 0x17f   : > { %s621_s23 = sadd.s32 %s8841_s6, %s11144_s10  ;;  %s11146_s30 = smov (!%p136_p13, %s10890_s30), %s138_s18 }
 0x180   : > { %s10896_s26 = scalar_select %p9099_p0, 1, 0 }
 0x181   : > { %s5919_s5 = sshll.u32 %s621_s23, 6  ;;  %s10897_s3 = sld [smem:[#allocation67_spill]] }
 0x182   : > { %s612_s1 = scalar_lea.vmem [#allocation9], %s5916_s24  ;;  %p10898_p7 = scmp.lt.s32.totalorder %s8486_s14, 4 }
 0x183   : > { %s625_s22 = sshll.u32 %s612_s1, 4  ;;  %s9121_s6 = sshll.u32 %s610_s21, 4  ;;  %s9113_s22 = int_to_ptr.vmem [resolvable:$true] %s625_s22 }
 0x184   : > { %p9117_p12 = pnand %p10898_p7, %p147_p2  ;;  %s10900_s20 = sshll.u32 %s11138_s16, 2 }
 0x185   : > { %s9126_s18 = sadd.s32 %s10900_s20, %s8943_s25 }
 0x186   : > { %p10811_p1 = pneg %p9117_p12 }
 0x187   : > { %s9111_s12 = scalar_lea.hbm %s10897_s3, %s5919_s5  ;;  %s8161_s23 = scalar_lea.hbm %s10897_s3, 1024 }
 0x188   : > { %s8156_s4 = scalar_lea.hbm %s9111_s12, 64  ;;  %p8162_p9 = scmp.lt.u32.totalorder %s9111_s12, %s10897_s3 }
 0x189   : > { %p8157_p4 = scmp.ne.s32.totalorder %s9111_s12, %s8156_s4  ;;  %p8163_p3 = scmp.lt.u32.totalorder %s8161_s23, %s8156_s4 }
 0x18a   : > { %p8165_p11 = scmp.lt.u32.totalorder %s8156_s4, %s9111_s12 }
 0x18b   : > { %p8159_p8 = pnand %p10811_p1, %p8157_p4  ;;  %p8164_p5 = por %p8163_p3, %p8162_p9 }
 0x18d   : > { %p8160_p10 = pneg %p8159_p8  ;;  %p8166_p2 = por %p8165_p11, %p8164_p5 }
 0x18f   : > { %p8167_p13 = pnand %p8166_p2, %p8160_p10 }
 0x191   : > { %8170 = shalt.err (!%p8167_p13)
}
 0x192   : > { %s8171_s16 = scalar_lea.vmem %s9113_s22, 64  ;;  %s8500_s21 = smov [#allocation9]  }
 0x193   : > { %p8172_p6 = scmp.ne.s32.totalorder %s9113_s22, %s8171_s16  ;;  %s8176_s17 = sshll.u32 %s8500_s21, 4  ;;  %s8177_s17 = int_to_ptr.vmem [resolvable:$false] %s8176_s17 }
 0x194   : > { %s8178_s1 = scalar_lea.vmem %s8177_s17, 128  ;;  %p8179_p8 = scmp.lt.s32.totalorder %s9113_s22, %s8177_s17 }
 0x195   : > { %p8174_p7 = pnand %p8172_p6, %p10811_p1  ;;  %p8180_p9 = scmp.lt.s32.totalorder %s8178_s1, %s8171_s16 }
 0x197   : > { %p8175_p4 = pneg %p8174_p7  ;;  %p8181_p3 = por %p8180_p9, %p8179_p8 }
 0x199   : > { %p8182_p5 = pnand %p8181_p3, %p8175_p4 }
 0x19b   : > { %8185 = shalt.err (!%p8182_p5)
}
 0x19c   : > { %s10901_s20 = scalar_lea.sflag [#allocation8], %s8844_s19  ;;  %s688_s4 = scalar_lea.vmem [#allocation13], %s9121_s6 }
 0x19d   : > { %7674 = dma.hbm_to_vmem [thread:$0]  (!%p9117_p12), %s9111_s12, 64, %s9113_s22, %s10901_s20  }
 0x19e   : > { %s702_s9 = sshll.u32 %s688_s4, 4  ;;  %s5931_s24 = sshll.u32 %s9126_s18, 6  ;;  %s9157_s9 = int_to_ptr.vmem [resolvable:$true] %s702_s9 }
 0x19f   : > { %s10902_s0 = sld [smem:[#allocation69_spill]]  ;;  %p10903_p11 = scmp.ne.s32.totalorder %s10861_s15, 0 }
 0x1a1   : > { %p10904_p2 = pneg %p10903_p11 }
 0x1a5   : > { %s9162_s16 = scalar_lea.hbm %s10902_s0, %s5931_s24  ;;  %s8191_s6 = scalar_lea.hbm %s10902_s0, 4096 }
 0x1a6   : > { %s8186_s21 = scalar_lea.hbm %s9162_s16, 256  ;;  %p8192_p7 = scmp.lt.u32.totalorder %s9162_s16, %s10902_s0 }
 0x1a7   : > { %p8187_p10 = scmp.ne.s32.totalorder %s9162_s16, %s8186_s21  ;;  %p8193_p4 = scmp.lt.u32.totalorder %s8191_s6, %s8186_s21 }
 0x1a8   : > { %p8195_p9 = scmp.lt.u32.totalorder %s8186_s21, %s9162_s16 }
 0x1a9   : > { %p8189_p13 = pnand %p8187_p10, %p10904_p2  ;;  %p8194_p8 = por %p8193_p4, %p8192_p7 }
 0x1ab   : > { %p8190_p6 = pneg %p8189_p13  ;;  %p8196_p3 = por %p8195_p9, %p8194_p8 }
 0x1ad   : > { %p8197_p5 = pnand %p8196_p3, %p8190_p6 }
 0x1af   : > { %8200 = shalt.err (!%p8197_p5)
}
 0x1b0   : > { %s10905_s1 = sld [smem:[#allocation60_spill]]  ;;  %s8501_s4 = smov [#allocation12]  }
 0x1b1   : > { %s8206_s24 = sshll.u32 %s8501_s4, 4  ;;  %s8207_s24 = int_to_ptr.vmem [resolvable:$false] %s8206_s24 }
 0x1b2   : > { %s8208_s23 = scalar_lea.vmem %s8207_s24, 512 }
 0x1b6   : > { %s8201_s20 = scalar_lea.vmem %s10905_s1, 256  ;;  %p8209_p0 = scmp.lt.s32.totalorder %s10905_s1, %s8207_s24 }
 0x1b7   : > { %p8202_p10 = scmp.ne.s32.totalorder %s10905_s1, %s8201_s20  ;;  %p8210_p7 = scmp.lt.s32.totalorder %s8208_s23, %s8201_s20 }
 0x1b9   : > { %p8204_p13 = pnand %p8202_p10, %p10904_p2  ;;  %p8211_p4 = por %p8210_p7, %p8209_p0 }
 0x1bb   : > { %p8205_p1 = pneg %p8204_p13 }
 0x1bd   : > { %p8212_p8 = pnand %p8211_p4, %p8205_p1 }
 0x1bf   : > { %8215 = shalt.err (!%p8212_p8)
}
 0x1c0   : > { %s10906_s5 = scalar_lea.sflag [#allocation11], %s8844_s19  ;;  %s6274_s21 = sshll.u32 %s11144_s10, 2 }
 0x1c1   : > { %7680 = dma.hbm_to_vmem [thread:$0]  (!%p10903_p11), %s9162_s16, 256, %s10905_s1, %s10906_s5, %s10878_s8, %s10878_s8, %s10877_s27  }
 0x1c2   : > { %s699_s12 = sadd.s32 %s6274_s21, %s8943_s25  ;;  %s10907_s17 = sld [smem:[#allocation70_spill]] }
 0x1c3   : > { %s5937_s22 = sshll.u32 %s699_s12, 6  ;;  %s685_s15 = scalar_lea.sflag [#allocation14], %s8844_s19 }
 0x1c4   : > { %p10909_p1 = pneg %p9117_p12 }
 0x1c8   : > { %s10908_s4 = smov %s10907_s17  ;;  %s9197_s20 = scalar_lea.hbm %s10907_s17, %s5937_s22 }
 0x1c9   : > { %s8216_s24 = scalar_lea.hbm %s9197_s20, 256  ;;  %s8221_s25 = scalar_lea.hbm %s10908_s4, 4096 }
 0x1ca   : > { %p8217_p0 = scmp.ne.s32.totalorder %s9197_s20, %s8216_s24  ;;  %p8222_p11 = scmp.lt.u32.totalorder %s9197_s20, %s10908_s4 }
 0x1cb   : > { %p8223_p3 = scmp.lt.u32.totalorder %s8221_s25, %s8216_s24  ;;  %p8225_p10 = scmp.lt.u32.totalorder %s8216_s24, %s9197_s20 }
 0x1cc   : > { %p8219_p6 = pnand %p8217_p0, %p10909_p1 }
 0x1cd   : > { %p8224_p5 = por %p8223_p3, %p8222_p11 }
 0x1ce   : > { %p8220_p9 = pneg %p8219_p6 }
 0x1cf   : > { %p8226_p2 = por %p8225_p10, %p8224_p5 }
 0x1d1   : > { %p8227_p13 = pnand %p8226_p2, %p8220_p9 }
 0x1d3   : > { %8230 = shalt.err (!%p8227_p13)
}
 0x1d4   : > { %s8231_s5 = scalar_lea.vmem %s9157_s9, 256  ;;  %p10910_p4 = pmov %p10909_p1 }
 0x1d5   : > { %p8232_p7 = scmp.ne.s32.totalorder %s9157_s9, %s8231_s5  ;;  %s8502_s21 = smov [#allocation13]  }
 0x1d6   : > { %s8236_s12 = sshll.u32 %s8502_s21, 4  ;;  %s8237_s12 = int_to_ptr.vmem [resolvable:$false] %s8236_s12 }
 0x1d7   : > { %p8234_p8 = pnand %p8232_p7, %p10910_p4  ;;  %s8238_s22 = scalar_lea.vmem %s8237_s12, 512 }
 0x1d8   : > { %p8239_p1 = scmp.lt.s32.totalorder %s9157_s9, %s8237_s12  ;;  %p8240_p6 = scmp.lt.s32.totalorder %s8238_s22, %s8231_s5 }
 0x1d9   : > { %p8235_p0 = pneg %p8234_p8 }
 0x1da   : > { %p8241_p11 = por %p8240_p6, %p8239_p1 }
 0x1dc   : > { %p8242_p3 = pnand %p8241_p11, %p8235_p0 }
 0x1de   : > { %8245 = shalt.err (!%p8242_p3)
}
 0x1df   : > { %s10911_s6 = sld [smem:[#allocation42_spill]]  ;;  %s10912_s18 = sld [smem:[#allocation41_spill]] }
 0x1e0   : > { %s10913_s17 = sld [smem:[#allocation40_spill]]  ;;  %s10914_s24 = sld [smem:[#allocation54_spill]] }
 0x1e1   : > { %7683 = dma.hbm_to_vmem [thread:$0]  (!%p9117_p12), %s9197_s20, 256, %s9157_s9, %s685_s15, %s10878_s8, %s10878_s8, %s10877_s27  }
 0x1e2   : > { %p409_p9 = scmp.eq.s32.totalorder %s8814_s29, 0  ;;  %p10915_p2 = scmp.eq.s32.totalorder %s8486_s14, 0 }
 0x1e3   : > { %p10916_p7 = scmp.eq.s32.totalorder %s8670_s13, 0  ;;  %s10918_s5 = sld [smem:[#allocation78_spill]] }
 0x1e4   : > { %p10919_p12 = scmp.lt.s32.totalorder %s8486_s14, 4 }
 0x1e5   : > { %s411_s28 = sadd.s32 1, %s10911_s6  ;;  %p418_p5 = scmp.ne.s32.totalorder %s10911_s6, %s10912_s18 }
 0x1e6   : > { %p424_p10 = scmp.ne.s32.totalorder %s10912_s18, %s10913_s17  ;;  %s712_s10 = sand.u32 1, %s10911_s6  }
 0x1e7   : > { %s9235_s19 = scalar_select %p409_p9, %s10911_s6, %s411_s28  }
 0x1e8   : > { %p420_p13 = por %p418_p5, %p10915_p2  ;;  %p9241_p4 = por %p424_p10, %p10916_p7 }
 0x1e9   : > { %s5938_s25 = sshll.u32 %s10914_s24, 4  ;;  %s715_s29 = scalar_lea.vmem [#allocation25], %s712_s10 }
 0x1ea   : > { %s9250_s21 = scalar_lea.hbm %s10918_s5, %s5938_s25  ;;  %s722_s27 = sshll.u32 %s715_s29, 4  ;;  %s9252_s27 = int_to_ptr.vmem [resolvable:$true] %s722_s27 }
 0x1eb   : > { %p9256_p8 = pnand %p10919_p12, %p420_p13  ;;  %s713_s9 = scalar_lea.sflag [#allocation26], %s712_s10 }
 0x1ec   : > { %s8246_s20 = scalar_lea.hbm %s9250_s21, 16  ;;  %s8251_s22 = scalar_lea.hbm %s10918_s5, 32 }
 0x1ed   : > { %p8247_p0 = scmp.ne.s32.totalorder %s9250_s21, %s8246_s20  ;;  %p8248_p1 = pneg %p9256_p8 }
 0x1ee   : > { %p8252_p3 = scmp.lt.u32.totalorder %s9250_s21, %s10918_s5  ;;  %p8253_p9 = scmp.lt.u32.totalorder %s8251_s22, %s8246_s20 }
 0x1ef   : > { %p8249_p6 = pnand %p8248_p1, %p8247_p0  ;;  %p8255_p10 = scmp.lt.u32.totalorder %s8246_s20, %s9250_s21 }
 0x1f0   : > { %p8254_p5 = por %p8253_p9, %p8252_p3 }
 0x1f1   : > { %p8250_p11 = pneg %p8249_p6 }
 0x1f2   : > { %p8256_p2 = por %p8255_p10, %p8254_p5 }
 0x1f4   : > { %p8257_p13 = pnand %p8256_p2, %p8250_p11 }
 0x1f6   : > { %8260 = shalt.err (!%p8257_p13)
}
 0x1f7   : > { %s8261_s17 = scalar_lea.vmem %s9252_s27, 16  ;;  %s8503_s24 = smov [#allocation25]  }
 0x1f8   : > { %p8262_p7 = scmp.ne.s32.totalorder %s9252_s27, %s8261_s17  ;;  %s8266_s28 = sshll.u32 %s8503_s24, 4  ;;  %s8267_s28 = int_to_ptr.vmem [resolvable:$false] %s8266_s28 }
 0x1f9   : > { %s8268_s10 = scalar_lea.vmem %s8267_s28, 32  ;;  %p8269_p6 = scmp.lt.s32.totalorder %s9252_s27, %s8267_s28 }
 0x1fa   : > { %p8264_p12 = pnand %p8262_p7, %p8248_p1  ;;  %p8270_p3 = scmp.lt.s32.totalorder %s8268_s10, %s8261_s17 }
 0x1fc   : > { %p8265_p0 = pneg %p8264_p12  ;;  %p8271_p9 = por %p8270_p3, %p8269_p6 }
 0x1fe   : > { %p8272_p5 = pnand %p8271_p9, %p8265_p0 }
 0x200   : > { %8275 = shalt.err (!%p8272_p5)
}
 0x201   : > { %7686 = dma.hbm_to_vmem [thread:$0]  (!%p9256_p8), %s9250_s21, 16, %s9252_s27, %s713_s9  }
 0x202   : > { %s10921_s25 = sld [smem:[#allocation55_spill]] }
 0x208   : > { %p10922_p11 = scmp.ne.s32.totalorder %s10921_s25, 0 }
 0x209   : > { %s10923_s1 = sld [smem:[#allocation49_spill]] (!%p10922_p11) }
 0x20a   : > { %731 = sbr.rel (%p10922_p11) target bundleno = 2069 (0x815), region = 76  ;;  %s10924_s23 = sld [smem:[#allocation62_spill]] (!%p10922_p11) }
 0x20f   : > { %s9288_s29 = sand.u32 (!%p10922_p11), 1, %s10923_s1  }
 0x210   : > { %s5940_s20 = sshll.u32 (!%p10922_p11), %s9288_s29, 4  ;;  %s734_s15 = scalar_lea.sflag (!%p10922_p11), [#allocation5], %s9288_s29 }
 0x211   : > { %s9292_s12 = scalar_lea.vmem [#allocation4], %s5940_s20  ;;  %p10925_p1 = scmp.ne.s32.totalorder %s10924_s23, 0 }
 0x213   : > { %8373 = dma.done.wait (%p10925_p1), %s734_s15, 256  }
 0x214   : > { %8375 = vsyncadd (%p10925_p1), %s734_s15, 4294967040  ;;  %s10926_s21 = sld [smem:[#allocation46_spill]]  ;;  %s742_s8 = sand.u32 1, %s8670_s13  }
 0x215   : > { %s10927_s27 = sld [smem:[#allocation58_spill]]  ;;  %s743_s6 = scalar_lea.sflag [#allocation8], %s742_s8 }
 0x21a   : > { %s744_s9 = sand.u32 1, %s10926_s21  }
 0x21b   : > { %s9300_s22 = sshll.u32 %s744_s9, 2  ;;  %p10928_p8 = scmp.ne.s32.totalorder %s10927_s27, 0 }
 0x21c   : > { %s746_s18 = scalar_lea.vmem [#allocation7], %s9300_s22 }
 0x21d   : > { %8377 = dma.done.wait (%p10928_p8), %s743_s6, 64  }
 0x21e   : > { %8379 = vsyncadd (%p10928_p8), %s743_s6, 4294967232  ;;  %s10929_s17 = sld [smem:[#allocation44_spill]]  ;;  %p10930_p10 = scmp.ne.s32.totalorder %s10896_s26, 0 }
 0x224   : > { %s753_s24 = sand.u32 1, %s10929_s17  }
 0x225   : > { %s9308_s28 = sshll.u32 %s753_s24, 2 }
 0x226   : > { %8381 = dma.done.wait (%p10930_p10), %s743_s6, 64  }
 0x227   : > { %8383 = vsyncadd (%p10930_p10), %s743_s6, 4294967232  ;;  %s5943_s25 = sshll.u32 %s9288_s29, 6  ;;  %s761_s1 = scalar_lea.sflag [#allocation11], %s742_s8 }
 0x228   : > { %s9316_s20 = scalar_lea.vmem [#allocation10], %s5943_s25 }
 0x229   : > { %8385 = dma.done.wait (%p10925_p1), %s761_s1, 1024  }
 0x22a   : > { %8387 = vsyncadd (%p10925_p1), %s761_s1, 4294966272  ;;  %s5944_s15 = sshll.u32 %s744_s9, 4 }
 0x22b   : > { %s9322_s21 = scalar_lea.vmem [#allocation12], %s5944_s15 }
 0x22c   : > { %8389 = dma.done.wait (%p10928_p8), %s761_s1, 256  }
 0x22d   : > { %8391 = vsyncadd (%p10928_p8), %s761_s1, 4294967040  ;;  %s5945_s6 = sshll.u32 %s753_s24, 4  ;;  %s779_s17 = scalar_lea.sflag [#allocation14], %s742_s8 }
 0x22e   : > { %s9328_s10 = scalar_lea.vmem [#allocation13], %s5945_s6 }
 0x22f   : > { %8393 = dma.done.wait (%p10930_p10), %s779_s17, 256  }
 0x230   : > { %8395 = vsyncadd (%p10930_p10), %s779_s17, 4294967040  ;;  %p10931_p2 = scmp.eq.s32.totalorder %s8670_s13, 0 }
 0x232   : > { %8397 = dma.done.wait (%p10931_p2), [#allocation14], 512   ;;  %p10932_p13 = pmov %p10931_p2 }
 0x233   : > { %p10933_p7 = pmov %p10931_p2 }
 0x234   : > { %8399 = vsyncadd (%p10932_p13), [#allocation14], 4294966784 }
 0x235   : > { %8401 = dma.done.wait (%p10933_p7), [#allocation17], 592   ;;  %p10934_p12 = pmov %p10931_p2 }
 0x236   : > { %p10935_p0 = pmov %p10931_p2 }
 0x237   : > { %8403 = vsyncadd (%p10934_p12), [#allocation17], 4294966704 }
 0x238   : > { %8405 = dma.done.wait (%p10935_p0), [#allocation20], 592   ;;  %p10936_p6 = pmov %p10935_p0 }
 0x239   : > { %p10937_p3 = pmov %p10935_p0 }
 0x23a   : > { %8407 = vsyncadd (%p10936_p6), [#allocation20], 4294966704 }
 0x23b   : > { %8409 = dma.done.wait (%p10937_p3), [#allocation23], 1168   ;;  %p10938_p9 = pmov %p10935_p0 }
 0x23c   : > { %s10939_s26 = sld [smem:[#allocation41_spill]] }
 0x23d   : > { %8411 = vsyncadd (%p10938_p9), [#allocation23], 4294966128 }
 0x242   : > { %s815_s23 = sand.u32 1, %s10939_s26  }
 0x243   : > { %s816_s27 = scalar_lea.sflag [#allocation26], %s815_s23  ;;  %s9351_s8 = scalar_lea.vmem [#allocation25], %s815_s23 }
 0x244   : > { %8413 = dma.done.wait (%p9241_p4), %s816_s27, 16  }
 0x245   : > { %8415 = vsyncadd (%p9241_p4), %s816_s27, 4294967280  ;;  %v8504_v0 = vmov 0.0   ;;  %vm8505_vm0 = vmmov 0   ;;  %v7856_v1 = vld [vmem:[#allocation15] sm:$0xff]   ;;  %v915_v2 = vld [vmem:[%s746_s18] sm:$0xf] }
 0x246   : > { %6571 = vmatprep.subr.bf16.mxu0 %v8504_v0  ;;  %6573 = vmatprep.mubr.msk.bf16.mxu0 %vm8505_vm0, %v8504_v0  ;;  %v916_v3 = vld [vmem:[%s9292_s12] sm:$0xf]  ;;  %vm10813_vm1 = vcmask 130048   ;;  %v7859_v6 = vld [vmem:[#allocation15 + $0x18] sm:$0xff]   ;;  %s10940_s13 = scalar_lea.vmem [#allocation9], %s9308_s28  ;;  %v7860_v11 = vld [vmem:[#allocation15 + $0x8] sm:$0xff]  }
 0x247   : > { %6613 = vmatprep.subr.bf16.mxu1 %v8504_v0  ;;  %6615 = vmatprep.mubr.msk.bf16.mxu1 %vm8505_vm0, %v8504_v0  ;;  %v5956_v4 = vcombine.low %v915_v2, %v916_v3  ;;  %v7857_v5 = vld [vmem:[#allocation15 + $0x10] sm:$0xff]   ;;  %v919_v8 = vld [vmem:[%s9292_s12 + $0xc] sm:$0xf]  ;;  %v920_v9 = vld [vmem:[%s10940_s13] sm:$0xf]  ;;  %vm10814_vm2 = vcmask 1043456  }
 0x248   : > { %6572 = vmatpush3.bf16.msra.mxu0 %v7856_v1  ;;  %v7858_v7 = vld [vmem:[%s9292_s12 + $0x4] sm:$0xff]   ;;  %6614 = vmatpush3.bf16.msra.mxu1 %v7859_v6  ;;  %v5958_v10 = vcombine.low %v919_v8, %v920_v9  ;;  %v1450_v12 = vld [vmem:[#allocation18 + $0xc] sm:$0xf]  ;;  %v9400_v18 = vld [vmem:[#allocation16] ss:$0 sm:$0xff]  ;;  %s10941_s16 = sld [smem:[#allocation51_spill]] }
 0x249   : > { %6585 = vmatprep.subr.bf16.mxu0 %v8504_v0  ;;  %v1484_v13 = vsel %vm10814_vm2, %v1450_v12, 0  ;;  %v1719_v14 = vld [vmem:[#allocation18 + $0x10] sm:$0xf]  ;;  %v9392_v16 = vld [vmem:[#allocation18] sm:$0xf]  ;;  %vm1451_vm6 = vcmask 64512  }
 0x24a   : > { %7583 = vmatprep.subr.msk.bf16.mxu1 %vm10814_vm2, %v1719_v14  ;;  %v1721_v15 = vsel %vm10814_vm2, %v1719_v14, 0  ;;  %v9396_v17 = vld [vmem:[#allocation18 + $0x4] sm:$0xf]  ;;  %s5953_s18 = sshll.u32 %s9288_s29, 7  ;;  %s11089_s28 = sld [smem:[#allocation52_spill]] }
 0x24b   : > { %6574 = vmatmul.mubr.msk.bf16.vlgmr.msra.gmra.mrb[0].mxu0 %vm10813_vm1, %v5956_v4  ;;  %6616 = vmatmul.mubr.msk.bf16.vlgmr.msra.gmra.mrb[0].mxu1 %vm10813_vm1, %v5956_v4  ;;  %s10565_s24 = scalar_lea.vmem [#allocation27], %s5953_s18  ;;  %s11094_s26 = sld [smem:[#allocation79_spill]] }
 0x24c   : > { %6586 = vmatpush3.bf16.msra.mxu0 %v7857_v5  ;;  %6577 = vmatprep.mubr.msk.bf16.mxu0 %vm8505_vm0, %v8504_v0  ;;  %s5586_s15 = sshll.u32 %s10565_s24, 4  ;;  %s5570_s27 = scalar_lea.sflag [#allocation6], %s9288_s29  ;;  %s10643_s15 = int_to_ptr.vmem [resolvable:$true] %s5586_s15 }
 0x24d   : > { %6599 = vmatprep.subr.bf16.mxu0 %v8504_v0  ;;  %6619 = vmatprep.mubr.msk.bf16.mxu1 %vm8505_vm0, %v8504_v0  ;;  %s8276_s13 = scalar_lea.vmem %s10643_s15, 2048 }
 0x24e   : > { %6672 = vmatpush3.bf16.msra.mxu1 %v1721_v15  ;;  %s5954_s12 = sshll.u32 %s10941_s16, 3  ;;  %p8277_p4 = scmp.ne.s32.totalorder %s10643_s15, %s8276_s13 }
 0x24f   : > { %7584 = vmatprep.subr.msk.bf16.mxu1 %vm10814_vm2, %v9396_v17  ;;  %s5975_s9 = sadd.s32 4294967294, %s5954_s12  ;;  %s6169_s22 = sadd.s32 4294967295, %s5954_s12 }
 0x250   : > { %v9415_v50 = vstv %s5975_s9  ;;  %s6256_s25 = sshll.u32 %s11089_s28, 5 }
 0x251   : > { %v1265_v59 = vadd.s32 1, %v9415_v50 }
 0x253   : > { %6578 = vmatmul.mubr.msk.bf16.gmra.mrb[4].mxu0 %vm10813_vm1, %v7858_v7  ;;  %6620 = vmatmul.mubr.msk.bf16.gmra.mrb[4].mxu1 %vm10813_vm1, %v7858_v7  ;;  %vm1277_vm3 = vcmp.ge.s32.totalorder %v1265_v59, 0  ;;  %vm1289_vm4 = vcmp.lt.s32.totalorder %v1265_v59, 16  ;;  %v1271_v59 = vadd.s32 7, %v9415_v50 }
 0x254   : > { %6581 = vmatprep.mubr.msk.bf16.mxu0 %vm8505_vm0, %v8504_v0  ;;  %6623 = vmatprep.mubr.msk.bf16.mxu1 %vm8505_vm0, %v8504_v0  ;;  %vm9422_vm5 = vmand %vm1277_vm3, %vm1289_vm4 }
 0x25b   : > { %6582 = vmatmul.mubr.msk.bf16.gmra.mrb[8].mxu0 %vm10813_vm1, %v5958_v10  ;;  %6624 = vmatmul.mubr.msk.bf16.gmra.mrb[8].mxu1 %vm10813_vm1, %v5958_v10 }
 0x25c   : > { %6587 = vmatprep.mubr.msk.bf16.mxu0 %vm8505_vm0, %v8504_v0 }
 0x263   : > { %6588 = vmatmul.mubr.msk.bf16.vlgmr.msra.gmra.mrb[12].mxu0 %vm10813_vm1, %v5956_v4 }
 0x264   : > { %6600 = vmatpush3.bf16.msra.mxu0 %v7860_v11  ;;  %6591 = vmatprep.mubr.msk.bf16.mxu0 %vm8505_vm0, %v8504_v0 }
 0x265   : > { %7581 = vmatprep.subr.msk.bf16.mxu0 %vm10814_vm2, %v1450_v12 }
 0x26b   : > { %6592 = vmatmul.mubr.msk.bf16.gmra.mrb[16].mxu0 %vm10813_vm1, %v7858_v7 }
 0x26c   : > { %6595 = vmatprep.mubr.msk.bf16.mxu0 %vm8505_vm0, %v8504_v0 }
 0x273   : > { %6596 = vmatmul.mubr.msk.bf16.gmra.mrb[20].mxu0 %vm10813_vm1, %v5958_v10 }
 0x274   : > { %6601 = vmatprep.mubr.msk.bf16.mxu0 %vm8505_vm0, %v8504_v0 }
 0x27b   : > { %6602 = vmatmul.mubr.msk.bf16.vlgmr.msra.gmra.mrb[24].mxu0 %vm10813_vm1, %v5956_v4 }
 0x27c   : > { %6605 = vmatprep.mubr.msk.bf16.mxu0 %vm8505_vm0, %v8504_v0  ;;  %6628 = vmatpush3.bf16.msra.mxu0 %v1484_v13 }
 0x27d   : > { %7582 = vmatprep.subr.msk.bf16.mxu0 %vm10814_vm2, %v9392_v16 }
 0x283   : > { %6606 = vmatmul.mubr.msk.bf16.gmra.mrb[28].mxu0 %vm10813_vm1, %v7858_v7 }
 0x284   : > { %6609 = vmatprep.mubr.msk.bf16.mxu0 %vm8505_vm0, %v8504_v0  ;;  %v2466_v0 = vld [vmem:[#allocation18 + $0x20] sm:$0xf] }
 0x28b   : > { %6610 = vmatmul.mubr.msk.bf16.gmra.mrb[32].mxu0 %vm10813_vm1, %v5958_v10 }
 0x31e   : > { %v995_v19 = vpop.f32.mrb[0].mxu0  ;;  %v1216_v25 = vpop.f32.mrb[0].mxu1 }
 0x31f   : > { %v996_v20 = vadd.f32 %v9400_v18, %v995_v19  ;;  %v6575_v21 = vpop.f32.mrb[1].mxu0  ;;  %v1217_v26 = vadd.f32 %v9400_v18, %v1216_v25  ;;  %v6617_v27 = vpop.f32.mrb[1].mxu1 }
 0x320   : > { %v998_v22 = vpop.f32.mrb[2].mxu0  ;;  %v1219_v28 = vpop.f32.mrb[2].mxu1 }
 0x321   : > { %1084 = vst [vmem:[#allocation2] ss:$2 sm:$0xff] %v996_v20  ;;  %v999_v23 = vadd.f32 %v9400_v18, %v998_v22  ;;  %v6576_v24 = vpop.f32.mrb[3].mxu0  ;;  %1242 = vst [vmem:[#allocation2 + $0x11] ss:$2 sm:$0xff] %v1217_v26  ;;  %v1220_v30 = vadd.f32 %v9400_v18, %v1219_v28  ;;  %v6618_v31 = vpop.f32.mrb[3].mxu1 }
 0x322   : > { %v1266_v26 = vadd.s32 2, %v9415_v50 }
 0x323   : > { %1088 = vst [vmem:[#allocation2 + $0x20] ss:$2 sm:$0xff] %v999_v23  ;;  %1246 = vst [vmem:[#allocation2 + $0x31] ss:$2 sm:$0xff] %v1220_v30  ;;  %v1267_v23 = vadd.s32 3, %v9415_v50 }
 0x324   : > { %vm1278_vm9 = vcmp.ge.s32.totalorder %v1266_v26, 0  ;;  %vm1290_vm10 = vcmp.lt.s32.totalorder %v1266_v26, 16 }
 0x325   : > { %vm1279_vm7 = vcmp.ge.s32.totalorder %v1267_v23, 0  ;;  %vm1291_vm8 = vcmp.lt.s32.totalorder %v1267_v23, 16  ;;  %vm9451_vm12 = vmand %vm1278_vm9, %vm1290_vm10  ;;  %vm1283_vm9 = vcmp.ge.s32.totalorder %v1271_v59, 0  ;;  %vm1295_vm10 = vcmp.lt.s32.totalorder %v1271_v59, 16  ;;  %v1448_v59 = vld [vmem:[#allocation18 + $0x8] sm:$0xf] }
 0x326   : > { %v1003_v29 = vpop.f32.mrb[4].mxu0  ;;  %v1224_v37 = vpop.f32.mrb[4].mxu1  ;;  %vm9444_vm11 = vmand %vm1279_vm7, %vm1291_vm8 }
 0x327   : > { %v1004_v32 = vadd.f32 %v9400_v18, %v1003_v29  ;;  %v6579_v33 = vpop.f32.mrb[5].mxu0  ;;  %v1225_v38 = vadd.f32 %v9400_v18, %v1224_v37  ;;  %v6621_v39 = vpop.f32.mrb[5].mxu1  ;;  %v1406_v29 = vld [vmem:[%s9316_s20 + $0x18] sm:$0xf] }
 0x328   : > { %v1006_v34 = vpop.f32.mrb[6].mxu0  ;;  %v1227_v40 = vpop.f32.mrb[6].mxu1  ;;  %v1268_v33 = vadd.s32 4, %v9415_v50 }
 0x329   : > { %1092 = vst [vmem:[#allocation2 + $0x40] ss:$2 sm:$0xff] %v1004_v32  ;;  %v1007_v35 = vadd.f32 %v9400_v18, %v1006_v34  ;;  %v6580_v36 = vpop.f32.mrb[7].mxu0  ;;  %1250 = vst [vmem:[#allocation2 + $0x51] ss:$2 sm:$0xff] %v1225_v38  ;;  %v1228_v42 = vadd.f32 %v9400_v18, %v1227_v40  ;;  %v6622_v43 = vpop.f32.mrb[7].mxu1 }
 0x32a   : > { %vm1280_vm13 = vcmp.ge.s32.totalorder %v1268_v33, 0  ;;  %vm1292_vm14 = vcmp.lt.s32.totalorder %v1268_v33, 16  ;;  %v3665_v36 = vld [vmem:[#allocation19 + $0x1c] sm:$0xf] }
 0x32b   : > { %1096 = vst [vmem:[#allocation2 + $0x60] ss:$2 sm:$0xff] %v1007_v35  ;;  %1254 = vst [vmem:[#allocation2 + $0x71] ss:$2 sm:$0xff] %v1228_v42  ;;  %v1269_v35 = vadd.s32 5, %v9415_v50 }
 0x32c   : > { %vm9472_vm3 = vmand %vm1280_vm13, %vm1292_vm14 }
 0x32d   : > { %vm1281_vm15 = vcmp.ge.s32.totalorder %v1269_v35, 0  ;;  %vm1293_vm0 = vcmp.lt.s32.totalorder %v1269_v35, 16  ;;  %vm9520_vm14 = vmand %vm1283_vm9, %vm1295_vm10 }
 0x32e   : > { %v1011_v41 = vpop.f32.mrb[8].mxu0  ;;  %v1232_v49 = vpop.f32.mrb[8].mxu1  ;;  %vm9484_vm4 = vmand %vm1281_vm15, %vm1293_vm0 }
 0x32f   : > { %v1012_v44 = vadd.f32 %v9400_v18, %v1011_v41  ;;  %v6583_v45 = vpop.f32.mrb[9].mxu0  ;;  %v1233_v51 = vadd.f32 %v9400_v18, %v1232_v49  ;;  %v6625_v52 = vpop.f32.mrb[9].mxu1  ;;  %v1837_v49 = vsel %vm10814_vm2, %v9396_v17, 0 }
 0x330   : > { %v1014_v46 = vpop.f32.mrb[10].mxu0  ;;  %v1235_v53 = vpop.f32.mrb[10].mxu1 }
 0x331   : > { %1100 = vst [vmem:[#allocation2 + $0x80] ss:$2 sm:$0xff] %v1012_v44  ;;  %v1015_v47 = vadd.f32 %v9400_v18, %v1014_v46  ;;  %v6584_v48 = vpop.f32.mrb[11].mxu0  ;;  %1258 = vst [vmem:[#allocation2 + $0x91] ss:$2 sm:$0xff] %v1233_v51  ;;  %v1236_v55 = vadd.f32 %v9400_v18, %v1235_v53  ;;  %v6626_v56 = vpop.f32.mrb[11].mxu1 }
 0x332   : > { %v9480_v53 = vld [vmem:[#allocation18 + $0x14] sm:$0xf]  ;;  %v1270_v56 = vadd.s32 6, %v9415_v50  ;;  %v1430_v51 = vsel %vm9484_vm4, %v1406_v29, 0 }
 0x333   : > { %1104 = vst [vmem:[#allocation2 + $0xa0] ss:$2 sm:$0xff] %v1015_v47  ;;  %1262 = vst [vmem:[#allocation2 + $0xb1] ss:$2 sm:$0xff] %v1236_v55  ;;  %v1603_v47 = vsel %vm10814_vm2, %v9392_v16, 0 }
 0x334   : > { %vm1282_vm7 = vcmp.ge.s32.totalorder %v1270_v56, 0  ;;  %vm1294_vm8 = vcmp.lt.s32.totalorder %v1270_v56, 16 }
 0x335   : > { %vm9512_vm13 = vmand %vm1282_vm7, %vm1294_vm8 }
 0x336   : > { %v1061_v54 = vpop.f32.mrb[12].mxu0 }
 0x337   : > { %v1062_v57 = vadd.f32 %v9400_v18, %v1061_v54  ;;  %v6589_v58 = vpop.f32.mrb[13].mxu0  ;;  %v9482_v54 = vld [vmem:[#allocation18 + $0x1c] sm:$0xf] }
 0x338   : > { %v1064_v60 = vpop.f32.mrb[14].mxu0 }
 0x339   : > { %1086 = vst [vmem:[#allocation2 + $0x10] ss:$2 sm:$0xff] %v1062_v57  ;;  %v1065_v61 = vadd.f32 %v9400_v18, %v1064_v60  ;;  %v6590_v62 = vpop.f32.mrb[15].mxu0 }
 0x33b   : > { %1090 = vst [vmem:[#allocation2 + $0x30] ss:$2 sm:$0xff] %v1065_v61 }
 0x33e   : > { %v1069_v63 = vpop.f32.mrb[16].mxu0 }
 0x33f   : > { %v1070_v1 = vadd.f32 %v9400_v18, %v1069_v63  ;;  %v6593_v2 = vpop.f32.mrb[17].mxu0 }
 0x340   : > { %v1072_v3 = vpop.f32.mrb[18].mxu0  ;;  %v1314_v4 = vld [vmem:[#allocation2 + $0x10] sm:$0xff]  ;;  %v1315_v5 = vld [vmem:[#allocation2 + $0x18] sm:$0xff] }
 0x341   : > { %1094 = vst [vmem:[#allocation2 + $0x50] ss:$2 sm:$0xff] %v1070_v1  ;;  %v1073_v6 = vadd.f32 %v9400_v18, %v1072_v3  ;;  %v6594_v7 = vpop.f32.mrb[19].mxu0  ;;  %v1362_v8 = vsel %vm9422_vm5, %v1314_v4, 0.0  ;;  %v1363_v9 = vsel %vm9422_vm5, %v1315_v5, 0.0 }
 0x342   : > { %v9432_v10 = vpack.c.bf16 %v1363_v9, %v1362_v8  ;;  %v1318_v30 = vld [vmem:[#allocation2 + $0x30] sm:$0xff]  ;;  %v1319_v31 = vld [vmem:[#allocation2 + $0x38] sm:$0xff] }
 0x343   : > { %1098 = vst [vmem:[#allocation2 + $0x70] ss:$2 sm:$0xff] %v1073_v6  ;;  %v1366_v40 = vsel %vm9444_vm11, %v1318_v30, 0.0  ;;  %v1367_v41 = vsel %vm9444_vm11, %v1319_v31, 0.0 }
 0x344   : > { %6629 = vmatprep.mubr.msk.bf16.mxu0 %vm1451_vm6, %v9432_v10  ;;  %6673 = vmatprep.mubr.msk.bf16.mxu1 %vm1451_vm6, %v9432_v10  ;;  %v9468_v48 = vpack.c.bf16 %v1367_v41, %v1366_v40  ;;  %v3381_v40 = vld [vmem:[#allocation19 + $0x14] sm:$0xf] }
 0x346   : > { %v1077_v11 = vpop.f32.mrb[20].mxu0 }
 0x347   : > { %v1078_v12 = vadd.f32 %v9400_v18, %v1077_v11  ;;  %v6597_v13 = vpop.f32.mrb[21].mxu0 }
 0x348   : > { %v1080_v14 = vpop.f32.mrb[22].mxu0  ;;  %v1322_v17 = vld [vmem:[#allocation2 + $0x50] sm:$0xff]  ;;  %v1323_v55 = vld [vmem:[#allocation2 + $0x58] sm:$0xff] }
 0x349   : > { %1102 = vst [vmem:[#allocation2 + $0x90] ss:$2 sm:$0xff] %v1078_v12  ;;  %v1081_v15 = vadd.f32 %v9400_v18, %v1080_v14  ;;  %v6598_v19 = vpop.f32.mrb[23].mxu0  ;;  %v1370_v4 = vsel %vm9484_vm4, %v1322_v17, 0.0  ;;  %v1371_v5 = vsel %vm9484_vm4, %v1323_v55, 0.0  ;;  %v1272_v14 = vadd.s32 8, %v9415_v50 }
 0x34a   : > { %v1326_v12 = vld [vmem:[#allocation2 + $0x70] sm:$0xff]  ;;  %v1327_v13 = vld [vmem:[#allocation2 + $0x78] sm:$0xff] }
 0x34b   : > { %1106 = vst [vmem:[#allocation2 + $0xb0] ss:$2 sm:$0xff] %v1081_v15  ;;  %v1273_v15 = vadd.s32 9, %v9415_v50  ;;  %vm1284_vm15 = vcmp.ge.s32.totalorder %v1272_v14, 0  ;;  %vm1296_vm0 = vcmp.lt.s32.totalorder %v1272_v14, 16 }
 0x34c   : > { %vm9542_vm9 = vmand %vm1284_vm15, %vm1296_vm0 }
 0x34d   : > { %vm1285_vm7 = vcmp.ge.s32.totalorder %v1273_v15, 0  ;;  %vm1297_vm8 = vcmp.lt.s32.totalorder %v1273_v15, 16  ;;  %v1398_v15 = vld [vmem:[%s9322_s21 + $0x8] sm:$0xf] }
 0x34e   : > { %v1150_v20 = vpop.f32.mrb[24].mxu0  ;;  %vm9550_vm10 = vmand %vm1285_vm7, %vm1297_vm8  ;;  %vm1276_vm7 = vcmp.ge.s32.totalorder %v9415_v50, 0  ;;  %vm1288_vm8 = vcmp.lt.s32.totalorder %v9415_v50, 16 }
 0x34f   : > { %v1151_v21 = vadd.f32 %v9400_v18, %v1150_v20  ;;  %v6603_v22 = vpop.f32.mrb[25].mxu0 }
 0x350   : > { %v1153_v24 = vpop.f32.mrb[26].mxu0  ;;  %v1375_v22 = vsel %vm9520_vm14, %v1327_v13, 0.0  ;;  %v1330_v30 = vld [vmem:[#allocation2 + $0x90] sm:$0xff]  ;;  %v1331_v31 = vld [vmem:[#allocation2 + $0x98] sm:$0xff] }
 0x351   : > { %1240 = vst [vmem:[#allocation2 + $0x1] ss:$2 sm:$0xff] %v1151_v21  ;;  %v1154_v25 = vadd.f32 %v9400_v18, %v1153_v24  ;;  %v6604_v27 = vpop.f32.mrb[27].mxu0  ;;  %v1374_v21 = vsel %vm9520_vm14, %v1326_v12, 0.0  ;;  %v1378_v35 = vsel %vm9550_vm10, %v1330_v30, 0.0 }
 0x352   : > { %v9540_v24 = vpack.c.bf16 %v1375_v22, %v1374_v21  ;;  %v1401_v21 = vld [vmem:[%s9316_s20 + $0x4] sm:$0xf]  ;;  %v1422_v22 = vsel %vm9422_vm5, %v1398_v15, 0 }
 0x353   : > { %1244 = vst [vmem:[#allocation2 + $0x21] ss:$2 sm:$0xff] %v1154_v25  ;;  %v1425_v30 = vsel %vm9451_vm12, %v1401_v21, 0 }
 0x356   : > { %v1158_v28 = vpop.f32.mrb[28].mxu0 }
 0x357   : > { %v1159_v32 = vadd.f32 %v9400_v18, %v1158_v28  ;;  %v6607_v34 = vpop.f32.mrb[29].mxu0  ;;  %v2603_v28 = vld [vmem:[#allocation19] sm:$0xf] }
 0x358   : > { %v1161_v37 = vpop.f32.mrb[30].mxu0 }
 0x359   : > { %1248 = vst [vmem:[#allocation2 + $0x41] ss:$2 sm:$0xff] %v1159_v32  ;;  %v1162_v38 = vadd.f32 %v9400_v18, %v1161_v37  ;;  %v6608_v39 = vpop.f32.mrb[31].mxu0  ;;  %v1274_v32 = vadd.s32 10, %v9415_v50  ;;  %v1379_v37 = vsel %vm9550_vm10, %v1331_v31, 0.0 }
 0x35a   : > { %v1316_v42 = vld [vmem:[#allocation2 + $0x20] sm:$0xff]  ;;  %v1317_v43 = vld [vmem:[#allocation2 + $0x28] sm:$0xff]  ;;  %v9571_v39 = vpack.c.bf16 %v1379_v37, %v1378_v35  ;;  %v1404_v37 = vld [vmem:[%s9316_s20 + $0x10] sm:$0xf] }
 0x35b   : > { %v1364_v44 = vsel %vm9451_vm12, %v1316_v42, 0.0  ;;  %v1365_v45 = vsel %vm9451_vm12, %v1317_v43, 0.0  ;;  %1252 = vst [vmem:[#allocation2 + $0x61] ss:$2 sm:$0xff] %v1162_v38  ;;  %vm1286_vm15 = vcmp.ge.s32.totalorder %v1274_v32, 0  ;;  %vm1298_vm0 = vcmp.lt.s32.totalorder %v1274_v32, 16 }
 0x35c   : > { %v9464_v46 = vpack.c.bf16 %v1365_v45, %v1364_v44  ;;  %vm9577_vm1 = vmand %vm1286_vm15, %vm1298_vm0  ;;  %v1312_v44 = vld [vmem:[#allocation2] sm:$0xff]  ;;  %v1313_v45 = vld [vmem:[#allocation2 + $0x8] sm:$0xff]  ;;  %vm10964_vm15 = vcmask 1043456  }
 0x35d   : > { %vm10965_vm0 = vmmov %vm10964_vm15  ;;  %v1403_v35 = vld [vmem:[%s9316_s20 + $0xc] sm:$0xf] }
 0x35e   : > { %v1166_v52 = vpop.f32.mrb[32].mxu0  ;;  %6630 = vmatmul.mubr.msk.bf16.vlgmr.msra.gmra.mrb[36].mxu0 %vm1451_vm6, %v9464_v46  ;;  %6674 = vmatmul.mubr.msk.bf16.vlgmr.msra.gmra.mrb[12].mxu1 %vm1451_vm6, %v9464_v46 }
 0x35f   : > { %v1167_v57 = vadd.f32 %v9400_v18, %v1166_v52  ;;  %v6611_v58 = vpop.f32.mrb[33].mxu0  ;;  %6633 = vmatprep.mubr.msk.bf16.mxu0 %vm1451_vm6, %v9468_v48  ;;  %6650 = vmatpush3.bf16.msra.mxu0 %v1603_v47 }
 0x360   : > { %v1320_v60 = vld [vmem:[#allocation2 + $0x40] sm:$0xff]  ;;  %v1321_v61 = vld [vmem:[#allocation2 + $0x48] sm:$0xff]  ;;  %6677 = vmatprep.mubr.msk.bf16.mxu1 %vm1451_vm6, %v9468_v48  ;;  %v1169_v62 = vpop.f32.mrb[34].mxu0  ;;  %6694 = vmatpush3.bf16.msra.mxu1 %v1837_v49  ;;  %v2330_v58 = vsel %vm10965_vm0, %v9482_v54, 0 }
 0x361   : > { %v1368_v63 = vsel %vm9472_vm3, %v1320_v60, 0.0  ;;  %v1369_v1 = vsel %vm9472_vm3, %v1321_v61, 0.0  ;;  %1256 = vst [vmem:[#allocation2 + $0x81] ss:$2 sm:$0xff] %v1167_v57  ;;  %v1170_v2 = vadd.f32 %v9400_v18, %v1169_v62  ;;  %v6612_v3 = vpop.f32.mrb[35].mxu0  ;;  %7585 = vmatprep.subr.msk.bf16.mxu0 %vm10814_vm2, %v9480_v53  ;;  %7588 = vmatprep.subr.msk.bf16.mxu1 %vm10814_vm2, %v9482_v54  ;;  %v9510_v18 = vpack.c.bf16 %v1371_v5, %v1370_v4  ;;  %vm9585_vm2 = vmand %vm1276_vm7, %vm1288_vm8  ;;  %v1334_v4 = vld [vmem:[#allocation2 + $0xb0] sm:$0xff] }
 0x362   : > { %v9508_v6 = vpack.c.bf16 %v1369_v1, %v1368_v63  ;;  %v1324_v8 = vld [vmem:[#allocation2 + $0x60] sm:$0xff]  ;;  %v1325_v9 = vld [vmem:[#allocation2 + $0x68] sm:$0xff]  ;;  %v1360_v52 = vsel %vm9585_vm2, %v1312_v44, 0.0  ;;  %v1361_v17 = vsel %vm9585_vm2, %v1313_v45, 0.0  ;;  %v1955_v57 = vsel %vm10964_vm15, %v9480_v53, 0  ;;  %vm10966_vm7 = vmmov %vm10965_vm0 }
 0x363   : > { %1260 = vst [vmem:[#allocation2 + $0xa1] ss:$2 sm:$0xff] %v1170_v2  ;;  %v1372_v19 = vsel %vm9512_vm13, %v1324_v8, 0.0  ;;  %v1373_v20 = vsel %vm9512_vm13, %v1325_v9, 0.0  ;;  %v9599_v56 = vpack.c.bf16 %v1361_v17, %v1360_v52  ;;  %v2821_v60 = vld [vmem:[#allocation19 + $0x4] sm:$0xf]  ;;  %vm10967_vm8 = vmmov %vm10965_vm0 }
 0x364   : > { %v9538_v23 = vpack.c.bf16 %v1373_v20, %v1372_v19  ;;  %vm10968_vm15 = vmmov %vm10965_vm0  ;;  %v2823_v54 = vsel %vm10965_vm0, %v2821_v60, 0  ;;  %v2187_v61 = vld [vmem:[#allocation18 + $0x18] sm:$0xf]  ;;  %v3243_v62 = vld [vmem:[#allocation19 + $0x10] sm:$0xf]  ;;  %v1275_v63 = vadd.s32 11, %v9415_v50 }
 0x365   : > { %v2071_v53 = vsel %vm10968_vm15, %v1448_v59, 0  ;;  %v1396_v1 = vld [vmem:[%s9322_s21] sm:$0xf]  ;;  %v1397_v2 = vld [vmem:[%s9322_s21 + $0x4] sm:$0xf]  ;;  %v1335_v50 = vld [vmem:[#allocation2 + $0xb8] sm:$0xff] }
 0x366   : > { %6634 = vmatmul.mubr.msk.bf16.gmra.mrb[40].mxu0 %vm1451_vm6, %v9508_v6  ;;  %6678 = vmatmul.mubr.msk.bf16.gmra.mrb[16].mxu1 %vm1451_vm6, %v9508_v6  ;;  %vm1287_vm15 = vcmp.ge.s32.totalorder %v1275_v63, 0  ;;  %v1420_v5 = vsel %vm9585_vm2, %v1396_v1, 0  ;;  %v1421_v8 = vsel %vm9585_vm2, %v1397_v2, 0  ;;  %v1399_v19 = vld [vmem:[%s9322_s21 + $0xc] sm:$0xf]  ;;  %v1427_v44 = vsel %vm9444_vm11, %v1403_v35, 0 }
 0x367   : > { %6637 = vmatprep.mubr.msk.bf16.mxu0 %vm1451_vm6, %v9510_v18  ;;  %6681 = vmatprep.mubr.msk.bf16.mxu1 %vm1451_vm6, %v9510_v18  ;;  %v9706_v13 = vcombine.low %v1420_v5, %v1421_v8  ;;  %v1400_v20 = vld [vmem:[%s9316_s20] sm:$0xf]  ;;  %v1407_v52 = vld [vmem:[%s9316_s20 + $0x1c] sm:$0xf]  ;;  %v1414_v5 = vld [vmem:[%s9316_s20 + $0x38] sm:$0xf] }
 0x368   : > { %v1328_v26 = vld [vmem:[#allocation2 + $0x80] sm:$0xff]  ;;  %v1329_v27 = vld [vmem:[#allocation2 + $0x88] sm:$0xff]  ;;  %v1415_v8 = vld [vmem:[%s9316_s20 + $0x3c] sm:$0xf]  ;;  %v1438_v11 = vsel %vm9550_vm10, %v1414_v5, 0  ;;  %s11093_s21 = sld [smem:[#allocation63_spill]] }
 0x369   : > { %v1376_v33 = vsel %vm9542_vm9, %v1328_v26, 0.0  ;;  %v1377_v34 = vsel %vm9542_vm9, %v1329_v27, 0.0  ;;  %v1423_v26 = vsel %vm9422_vm5, %v1399_v19, 0  ;;  %v1424_v27 = vsel %vm9451_vm12, %v1400_v20, 0  ;;  %v1408_v17 = vld [vmem:[%s9316_s20 + $0x20] sm:$0xf] }
 0x36a   : > { %v9567_v38 = vpack.c.bf16 %v1377_v34, %v1376_v33  ;;  %v1332_v41 = vld [vmem:[#allocation2 + $0xa0] sm:$0xff]  ;;  %v1333_v42 = vld [vmem:[#allocation2 + $0xa8] sm:$0xff]  ;;  %v9730_v31 = vcombine.low %v1422_v22, %v1423_v26  ;;  %v9733_v33 = vcombine.low %v1424_v27, %v1425_v30  ;;  %v1439_v25 = vsel %vm9550_vm10, %v1415_v8, 0 }
 0x36b   : > { %v1380_v47 = vsel %vm9577_vm1, %v1332_v41, 0.0  ;;  %v1381_v49 = vsel %vm9577_vm1, %v1333_v42, 0.0  ;;  %v1402_v34 = vld [vmem:[%s9316_s20 + $0x8] sm:$0xf]  ;;  %v1405_v41 = vld [vmem:[%s9316_s20 + $0x14] sm:$0xf] }
 0x36c   : > { %v9597_v55 = vpack.c.bf16 %v1381_v49, %v1380_v47  ;;  %v1426_v43 = vsel %vm9444_vm11, %v1402_v34, 0  ;;  %v1429_v45 = vsel %vm9472_vm3, %v1405_v41, 0  ;;  %v1416_v19 = vld [vmem:[%s9328_s10] sm:$0xf]  ;;  %v1417_v20 = vld [vmem:[%s9328_s10 + $0x4] sm:$0xf] }
 0x36d   : > { %v9758_v47 = vcombine.low %v1426_v43, %v1427_v44  ;;  %v1440_v21 = vsel %vm9577_vm1, %v1416_v19, 0  ;;  %v1441_v22 = vsel %vm9577_vm1, %v1417_v20, 0  ;;  %v2959_v30 = vld [vmem:[#allocation19 + $0x8] sm:$0xf]  ;;  %v3519_v3 = vld [vmem:[#allocation19 + $0x18] sm:$0xf] }
 0x36e   : > { %6638 = vmatmul.mubr.msk.bf16.gmra.mrb[44].mxu0 %vm1451_vm6, %v9538_v23  ;;  %6682 = vmatmul.mubr.msk.bf16.gmra.mrb[20].mxu1 %vm1451_vm6, %v9538_v23  ;;  %v9875_v26 = vcombine.low %v1440_v21, %v1441_v22  ;;  %p11100_p5 = scmp.ne.s32.totalorder %s11093_s21, 0 }
 0x36f   : > { %6641 = vmatprep.mubr.msk.bf16.mxu0 %vm1451_vm6, %v9540_v24  ;;  %6685 = vmatprep.mubr.msk.bf16.mxu1 %vm1451_vm6, %v9540_v24 }
 0x370   : > { %p8278_p11 = pnand %p8277_p4, %p11100_p5 }
 0x372   : > { %p8279_p1 = pneg %p8278_p11 }
 0x376   : > { %6642 = vmatmul.mubr.msk.bf16.gmra.mrb[48].mxu0 %vm1451_vm6, %v9567_v38  ;;  %6686 = vmatmul.mubr.msk.bf16.gmra.mrb[24].mxu1 %vm1451_vm6, %v9567_v38 }
 0x377   : > { %6645 = vmatprep.mubr.msk.bf16.mxu0 %vm1451_vm6, %v9571_v39  ;;  %6689 = vmatprep.mubr.msk.bf16.mxu1 %vm1451_vm6, %v9571_v39 }
 0x37e   : > { %6646 = vmatmul.mubr.msk.bf16.gmra.mrb[52].mxu0 %vm1451_vm6, %v9597_v55  ;;  %6690 = vmatmul.mubr.msk.bf16.gmra.mrb[28].mxu1 %vm1451_vm6, %v9597_v55 }
 0x37f   : > { %6651 = vmatprep.mubr.msk.bf16.mxu0 %vm1451_vm6, %v9599_v56  ;;  %6695 = vmatprep.mubr.msk.bf16.mxu1 %vm1451_vm6, %v9599_v56 }
 0x386   : > { %6652 = vmatmul.mubr.msk.bf16.vlgmr.msra.gmra.mrb[36].mxu0 %vm1451_vm6, %v9432_v10  ;;  %6696 = vmatmul.mubr.msk.bf16.vlgmr.msra.gmra.mrb[12].mxu1 %vm1451_vm6, %v9432_v10 }
 0x387   : > { %6655 = vmatprep.mubr.msk.bf16.mxu0 %vm1451_vm6, %v9464_v46  ;;  %6699 = vmatprep.mubr.msk.bf16.mxu1 %vm1451_vm6, %v9464_v46 }
 0x388   : > { %6716 = vmatpush3.bf16.msra.mxu0 %v1955_v57  ;;  %6782 = vmatpush3.bf16.msra.mxu1 %v2330_v58  ;;  %v1431_v57 = vsel %vm9484_vm4, %v1407_v52, 0  ;;  %v1432_v58 = vsel %vm9512_vm13, %v1408_v17, 0 }
 0x389   : > { %7586 = vmatprep.subr.msk.bf16.mxu0 %vm10966_vm7, %v1448_v59  ;;  %7591 = vmatprep.subr.msk.bf16.mxu1 %vm10967_vm8, %v2821_v60  ;;  %vm10969_vm7 = vmmov %vm10965_vm0  ;;  %v9782_v60 = vcombine.low %v1430_v51, %v1431_v57 }
 0x38a   : > { %vm10970_vm8 = vmmov %vm10965_vm0  ;;  %vm1299_vm0 = vcmp.lt.s32.totalorder %v1275_v63, 16  ;;  %v1413_v63 = vld [vmem:[%s9316_s20 + $0x34] sm:$0xf] }
 0x38b   : > { %vm10973_vm2 = vmmov %vm10970_vm8  ;;  %v1437_v2 = vsel %vm9542_vm9, %v1413_v63, 0 }
 0x38c   : > { %v2192_v32 = vsel %vm10973_vm2, %v2187_v61, 0  ;;  %vm10975_vm5 = vmmov %vm10973_vm2 }
 0x38d   : > { %vm10976_vm12 = vmmov %vm10973_vm2 }
 0x38e   : > { %6656 = vmatmul.mubr.msk.bf16.gmra.mrb[40].mxu0 %vm1451_vm6, %v9468_v48  ;;  %6700 = vmatmul.mubr.msk.bf16.gmra.mrb[16].mxu1 %vm1451_vm6, %v9468_v48  ;;  %vm10977_vm11 = vmmov %vm10973_vm2 }
 0x38f   : > { %6659 = vmatprep.mubr.msk.bf16.mxu0 %vm1451_vm6, %v9508_v6  ;;  %6703 = vmatprep.mubr.msk.bf16.mxu1 %vm1451_vm6, %v9508_v6  ;;  %vm10979_vm4 = vmmov %vm10973_vm2 }
 0x390   : > { %vm10981_vm1 = vmmov %vm10973_vm2 }
 0x391   : > { %vm10984_vm10 = vmmov %vm10981_vm1 }
 0x396   : > { %6660 = vmatmul.mubr.msk.bf16.gmra.mrb[44].mxu0 %vm1451_vm6, %v9510_v18  ;;  %6704 = vmatmul.mubr.msk.bf16.gmra.mrb[20].mxu1 %vm1451_vm6, %v9510_v18 }
 0x397   : > { %6663 = vmatprep.mubr.msk.bf16.mxu0 %vm1451_vm6, %v9538_v23  ;;  %6707 = vmatprep.mubr.msk.bf16.mxu1 %vm1451_vm6, %v9538_v23 }
 0x39e   : > { %6664 = vmatmul.mubr.msk.bf16.gmra.mrb[48].mxu0 %vm1451_vm6, %v9540_v24  ;;  %6708 = vmatmul.mubr.msk.bf16.gmra.mrb[24].mxu1 %vm1451_vm6, %v9540_v24 }
 0x39f   : > { %6667 = vmatprep.mubr.msk.bf16.mxu0 %vm1451_vm6, %v9567_v38  ;;  %6711 = vmatprep.mubr.msk.bf16.mxu1 %vm1451_vm6, %v9567_v38 }
 0x3a6   : > { %6668 = vmatmul.mubr.msk.bf16.gmra.mrb[52].mxu0 %vm1451_vm6, %v9571_v39  ;;  %6712 = vmatmul.mubr.msk.bf16.gmra.mrb[28].mxu1 %vm1451_vm6, %v9571_v39 }
 0x3a7   : > { %6717 = vmatprep.mubr.msk.bf16.mxu0 %vm1451_vm6, %v9432_v10  ;;  %6783 = vmatprep.mubr.msk.bf16.mxu1 %vm1451_vm6, %v9464_v46 }
 0x3ae   : > { %6718 = vmatmul.mubr.msk.bf16.vlgmr.msra.gmra.mrb[56].mxu0 %vm1451_vm6, %v9464_v46  ;;  %6784 = vmatmul.mubr.msk.bf16.vlgmr.msra.gmra.mrb[12].mxu1 %vm1451_vm6, %v9468_v48 }
 0x3af   : > { %6721 = vmatprep.mubr.msk.bf16.mxu0 %vm1451_vm6, %v9468_v48  ;;  %6738 = vmatpush3.bf16.msra.mxu0 %v2071_v53 }
 0x3b0   : > { %6787 = vmatprep.mubr.msk.bf16.mxu1 %vm1451_vm6, %v9508_v6  ;;  %6848 = vmatpush3.bf16.msra.mxu1 %v2823_v54  ;;  %v1410_v54 = vld [vmem:[%s9316_s20 + $0x28] sm:$0xf] }
 0x3b1   : > { %7587 = vmatprep.subr.msk.bf16.mxu0 %vm10969_vm7, %v2187_v61  ;;  %7594 = vmatprep.subr.msk.bf16.mxu1 %vm10970_vm8, %v3243_v62  ;;  %vm9690_vm7 = vmand %vm1287_vm15, %vm1299_vm0  ;;  %v1411_v61 = vld [vmem:[%s9316_s20 + $0x2c] sm:$0xf]  ;;  %v1434_v16 = vsel %vm9520_vm14, %v1410_v54, 0 }
 0x3b2   : > { %v1382_v9 = vsel %vm9690_vm7, %v1334_v4, 0.0  ;;  %v1383_v12 = vsel %vm9690_vm7, %v1335_v50, 0.0  ;;  %vm10974_vm8 = vmmov %vm10973_vm2  ;;  %v1435_v7 = vsel %vm9520_vm14, %v1411_v61, 0 }
 0x3b3   : > { %v9708_v14 = vpack.c.bf16 %v1383_v12, %v1382_v9  ;;  %v3245_v42 = vsel %vm10974_vm8, %v3243_v62, 0  ;;  %v1412_v62 = vld [vmem:[%s9316_s20 + $0x30] sm:$0xf]  ;;  %v9806_v4 = vcombine.low %v1434_v16, %v1435_v7  ;;  %v9824_v9 = vcombine.low %v1438_v11, %v1439_v25  ;;  %vm10982_vm14 = vmmov %vm10981_vm1 }
 0x3b4   : > { %v1436_v1 = vsel %vm9542_vm9, %v1412_v62, 0  ;;  %v2468_v12 = vsel %vm10977_vm11, %v2466_v0, 0  ;;  %vm10983_vm9 = vmmov %vm10981_vm1 }
 0x3b5   : > { %v9808_v50 = vcombine.low %v1436_v1, %v1437_v2  ;;  %vm10985_vm15 = vmmov %vm10981_vm1 }
 0x3b6   : > { %6722 = vmatmul.mubr.msk.bf16.gmra.mrb[60].mxu0 %vm1451_vm6, %v9508_v6  ;;  %6788 = vmatmul.mubr.msk.bf16.gmra.mrb[16].mxu1 %vm1451_vm6, %v9510_v18  ;;  %vm10986_vm0 = vmmov %vm10981_vm1 }
 0x3b7   : > { %6725 = vmatprep.mubr.msk.bf16.mxu0 %vm1451_vm6, %v9510_v18  ;;  %6791 = vmatprep.mubr.msk.bf16.mxu1 %vm1451_vm6, %v9538_v23  ;;  %vm10989_vm8 = vmmov %vm10986_vm0 }
 0x3be   : > { %6726 = vmatmul.mubr.msk.bf16.gmra.mrb[64].mxu0 %vm1451_vm6, %v9538_v23  ;;  %6792 = vmatmul.mubr.msk.bf16.gmra.mrb[20].mxu1 %vm1451_vm6, %v9540_v24 }
 0x3bf   : > { %6729 = vmatprep.mubr.msk.bf16.mxu0 %vm1451_vm6, %v9540_v24  ;;  %6795 = vmatprep.mubr.msk.bf16.mxu1 %vm1451_vm6, %v9567_v38 }
 0x3c6   : > { %6730 = vmatmul.mubr.msk.bf16.gmra.mrb[68].mxu0 %vm1451_vm6, %v9567_v38  ;;  %6796 = vmatmul.mubr.msk.bf16.gmra.mrb[24].mxu1 %vm1451_vm6, %v9571_v39 }
 0x3c7   : > { %6733 = vmatprep.mubr.msk.bf16.mxu0 %vm1451_vm6, %v9571_v39  ;;  %6799 = vmatprep.mubr.msk.bf16.mxu1 %vm1451_vm6, %v9597_v55 }
 0x3ce   : > { %6734 = vmatmul.mubr.msk.bf16.gmra.mrb[72].mxu0 %vm1451_vm6, %v9597_v55  ;;  %6800 = vmatmul.mubr.msk.bf16.gmra.mrb[28].mxu1 %vm1451_vm6, %v9708_v14 }
 0x3cf   : > { %6739 = vmatprep.mubr.msk.bf16.mxu0 %vm1451_vm6, %v9599_v56  ;;  %6849 = vmatprep.mubr.msk.bf16.mxu1 %vm1451_vm6, %v9706_v13  ;;  %v1409_v56 = vld [vmem:[%s9316_s20 + $0x24] sm:$0xf] }
 0x3d0   : > { %v1433_v59 = vsel %vm9512_vm13, %v1409_v56, 0  ;;  %vm10980_vm13 = vmmov %vm10973_vm2 }
 0x3d1   : > { %v9784_v53 = vcombine.low %v1432_v58, %v1433_v59  ;;  %v2685_v27 = vsel %vm10980_vm13, %v2603_v28, 0 }
 0x3d6   : > { %6740 = vmatmul.mubr.msk.bf16.vlgmr.msra.gmra.mrb[56].mxu0 %vm1451_vm6, %v9432_v10  ;;  %6850 = vmatmul.mubr.msk.bf16.vlgmr.msra.gmra.mrb[12].mxu1 %vm1451_vm6, %v9730_v31  ;;  %v1428_v10 = vsel %vm9472_vm3, %v1404_v37, 0  ;;  %vm10978_vm3 = vmmov %vm10973_vm2 }
 0x3d7   : > { %6743 = vmatprep.mubr.msk.bf16.mxu0 %vm1451_vm6, %v9464_v46  ;;  %6760 = vmatpush3.bf16.msra.mxu0 %v2192_v32  ;;  %v9760_v49 = vcombine.low %v1428_v10, %v1429_v45  ;;  %v3667_v15 = vsel %vm10978_vm3, %v3665_v36, 0  ;;  %vm10988_vm2 = vmmov %vm10986_vm0 }
 0x3d8   : > { %6853 = vmatprep.mubr.msk.bf16.mxu1 %vm1451_vm6, %v9733_v33  ;;  %6914 = vmatpush3.bf16.msra.mxu1 %v3245_v42 }
 0x3d9   : > { %7589 = vmatprep.subr.msk.bf16.mxu0 %vm10975_vm5, %v2466_v0  ;;  %7597 = vmatprep.subr.msk.bf16.mxu1 %vm10976_vm12, %v3665_v36  ;;  %vm10990_vm5 = vmmov %vm10986_vm0  ;;  %vm3960_vm12 = vcmask 1040384  }
 0x3de   : > { %6744 = vmatmul.mubr.msk.bf16.gmra.mrb[60].mxu0 %vm1451_vm6, %v9468_v48  ;;  %6854 = vmatmul.mubr.msk.bf16.gmra.mrb[16].mxu1 %vm1451_vm6, %v9758_v47 }
 0x3df   : > { %6747 = vmatprep.mubr.msk.bf16.mxu0 %vm1451_vm6, %v9508_v6  ;;  %6857 = vmatprep.mubr.msk.bf16.mxu1 %vm1451_vm6, %v9760_v49 }
 0x3e6   : > { %6748 = vmatmul.mubr.msk.bf16.gmra.mrb[64].mxu0 %vm1451_vm6, %v9510_v18  ;;  %6858 = vmatmul.mubr.msk.bf16.gmra.mrb[20].mxu1 %vm1451_vm6, %v9782_v60 }
 0x3e7   : > { %6751 = vmatprep.mubr.msk.bf16.mxu0 %vm1451_vm6, %v9538_v23  ;;  %6861 = vmatprep.mubr.msk.bf16.mxu1 %vm1451_vm6, %v9784_v53 }
 0x3ee   : > { %6752 = vmatmul.mubr.msk.bf16.gmra.mrb[68].mxu0 %vm1451_vm6, %v9540_v24  ;;  %6862 = vmatmul.mubr.msk.bf16.gmra.mrb[24].mxu1 %vm1451_vm6, %v9806_v4 }
 0x3ef   : > { %6755 = vmatprep.mubr.msk.bf16.mxu0 %vm1451_vm6, %v9567_v38  ;;  %6865 = vmatprep.mubr.msk.bf16.mxu1 %vm1451_vm6, %v9808_v50 }
 0x3f6   : > { %6756 = vmatmul.mubr.msk.bf16.gmra.mrb[72].mxu0 %vm1451_vm6, %v9571_v39  ;;  %6866 = vmatmul.mubr.msk.bf16.gmra.mrb[28].mxu1 %vm1451_vm6, %v9824_v9 }
 0x3f7   : > { %6761 = vmatprep.mubr.msk.bf16.mxu0 %vm1451_vm6, %v9464_v46  ;;  %6915 = vmatprep.mubr.msk.bf16.mxu1 %vm1451_vm6, %v9730_v31 }
 0x3fe   : > { %6762 = vmatmul.mubr.msk.bf16.vlgmr.msra.gmra.mrb[36].mxu0 %vm1451_vm6, %v9468_v48  ;;  %6916 = vmatmul.mubr.msk.bf16.vlgmr.msra.gmra.mrb[12].mxu1 %vm1451_vm6, %v9733_v33 }
 0x3ff   : > { %6765 = vmatprep.mubr.msk.bf16.mxu0 %vm1451_vm6, %v9508_v6  ;;  %6804 = vmatpush3.bf16.msra.mxu0 %v2468_v12 }
 0x400   : > { %6919 = vmatprep.mubr.msk.bf16.mxu1 %vm1451_vm6, %v9758_v47  ;;  %6980 = vmatpush3.bf16.msra.mxu1 %v3667_v15 }
 0x401   : > { %7590 = vmatprep.subr.msk.bf16.mxu0 %vm10979_vm4, %v2603_v28 }
 0x406   : > { %6766 = vmatmul.mubr.msk.bf16.gmra.mrb[40].mxu0 %vm1451_vm6, %v9510_v18  ;;  %6920 = vmatmul.mubr.msk.bf16.gmra.mrb[16].mxu1 %vm1451_vm6, %v9760_v49 }
 0x407   : > { %6769 = vmatprep.mubr.msk.bf16.mxu0 %vm1451_vm6, %v9538_v23  ;;  %6923 = vmatprep.mubr.msk.bf16.mxu1 %vm1451_vm6, %v9782_v60 }
 0x40e   : > { %6770 = vmatmul.mubr.msk.bf16.gmra.mrb[44].mxu0 %vm1451_vm6, %v9540_v24  ;;  %6924 = vmatmul.mubr.msk.bf16.gmra.mrb[20].mxu1 %vm1451_vm6, %v9784_v53 }
 0x40f   : > { %6773 = vmatprep.mubr.msk.bf16.mxu0 %vm1451_vm6, %v9567_v38  ;;  %6927 = vmatprep.mubr.msk.bf16.mxu1 %vm1451_vm6, %v9806_v4 }
 0x416   : > { %6774 = vmatmul.mubr.msk.bf16.gmra.mrb[48].mxu0 %vm1451_vm6, %v9571_v39  ;;  %6928 = vmatmul.mubr.msk.bf16.gmra.mrb[24].mxu1 %vm1451_vm6, %v9808_v50 }
 0x417   : > { %6777 = vmatprep.mubr.msk.bf16.mxu0 %vm1451_vm6, %v9597_v55  ;;  %6931 = vmatprep.mubr.msk.bf16.mxu1 %vm1451_vm6, %v9824_v9 }
 0x41e   : > { %6778 = vmatmul.mubr.msk.bf16.gmra.mrb[52].mxu0 %vm1451_vm6, %v9708_v14  ;;  %6932 = vmatmul.mubr.msk.bf16.gmra.mrb[28].mxu1 %vm1451_vm6, %v9875_v26 }
 0x41f   : > { %6805 = vmatprep.mubr.msk.bf16.mxu0 %vm1451_vm6, %v9464_v46  ;;  %6981 = vmatprep.mubr.msk.bf16.mxu1 %vm1451_vm6, %v9733_v33  ;;  %v1418_v46 = vld [vmem:[%s9328_s10 + $0x8] sm:$0xf] }
 0x426   : > { %6806 = vmatmul.mubr.msk.bf16.vlgmr.msra.gmra.mrb[56].mxu0 %vm1451_vm6, %v9468_v48  ;;  %6982 = vmatmul.mubr.msk.bf16.vlgmr.msra.gmra.mrb[12].mxu1 %vm1451_vm6, %v9758_v47  ;;  %v1419_v48 = vld [vmem:[%s9328_s10 + $0xc] sm:$0xf]  ;;  %s6275_s10 = sshll.u32 %s10941_s16, 4  ;;  %s8506_s16 = smov [#allocation27]  }
 0x427   : > { %6809 = vmatprep.mubr.msk.bf16.mxu0 %vm1451_vm6, %v9508_v6  ;;  %6826 = vmatpush3.bf16.msra.mxu0 %v2685_v27  ;;  %v1442_v6 = vsel %vm9690_vm7, %v1418_v46, 0  ;;  %s5583_s1 = sadd.s32 %s6275_s10, %s6256_s25  ;;  %s8280_s12 = sshll.u32 %s8506_s16, 4  ;;  %s8281_s12 = int_to_ptr.vmem [resolvable:$false] %s8280_s12 }
 0x428   : > { %6985 = vmatprep.mubr.msk.bf16.mxu1 %vm1451_vm6, %v9760_v49  ;;  %7592 = vmatprep.subr.msk.bf16.mxu0 %vm10981_vm1, %v2959_v30  ;;  %s6257_s20 = sshll.u32 %s5583_s1, 7  ;;  %s8282_s9 = scalar_lea.vmem %s8281_s12, 4096 }
 0x429   : > { %s10641_s23 = scalar_lea.hbm %s11094_s26, %s6257_s20  ;;  %p8283_p8 = scmp.lt.s32.totalorder %s10643_s15, %s8281_s12 }
 0x42a   : > { %p8284_p10 = scmp.lt.s32.totalorder %s8282_s9, %s8276_s13 }
 0x42c   : > { %p8285_p2 = por %p8284_p10, %p8283_p8 }
 0x42e   : > { %6810 = vmatmul.mubr.msk.bf16.gmra.mrb[60].mxu0 %vm1451_vm6, %v9510_v18  ;;  %6986 = vmatmul.mubr.msk.bf16.gmra.mrb[16].mxu1 %vm1451_vm6, %v9782_v60  ;;  %v1443_v18 = vsel %vm9690_vm7, %v1419_v48, 0  ;;  %vm10987_vm7 = vmmov %vm10986_vm0  ;;  %p8286_p13 = pnand %p8285_p2, %p8279_p1 }
 0x42f   : > { %6813 = vmatprep.mubr.msk.bf16.mxu0 %vm1451_vm6, %v9538_v23  ;;  %6989 = vmatprep.mubr.msk.bf16.mxu1 %vm1451_vm6, %v9784_v53  ;;  %v9925_v23 = vcombine.low %v1442_v6, %v1443_v18 }
 0x436   : > { %6814 = vmatmul.mubr.msk.bf16.gmra.mrb[64].mxu0 %vm1451_vm6, %v9540_v24  ;;  %6990 = vmatmul.mubr.msk.bf16.gmra.mrb[20].mxu1 %vm1451_vm6, %v9806_v4  ;;  %v2961_v24 = vsel %vm10982_vm14, %v2959_v30, 0 }
 0x437   : > { %6817 = vmatprep.mubr.msk.bf16.mxu0 %vm1451_vm6, %v9567_v38  ;;  %6993 = vmatprep.mubr.msk.bf16.mxu1 %vm1451_vm6, %v9808_v50  ;;  %v3097_v38 = vld [vmem:[#allocation19 + $0xc] sm:$0xf] }
 0x43e   : > { %6818 = vmatmul.mubr.msk.bf16.gmra.mrb[68].mxu0 %vm1451_vm6, %v9571_v39  ;;  %6994 = vmatmul.mubr.msk.bf16.gmra.mrb[24].mxu1 %vm1451_vm6, %v9824_v9  ;;  %v3107_v39 = vsel %vm10984_vm10, %v3097_v38, 0 }
 0x43f   : > { %6821 = vmatprep.mubr.msk.bf16.mxu0 %vm1451_vm6, %v9597_v55  ;;  %6997 = vmatprep.mubr.msk.bf16.mxu1 %vm1451_vm6, %v9875_v26  ;;  %v3383_v55 = vsel %vm10986_vm0, %v3381_v40, 0  ;;  %vm10993_vm0 = vcmask 130048  }
 0x446   : > { %6822 = vmatmul.mubr.msk.bf16.gmra.mrb[72].mxu0 %vm1451_vm6, %v9708_v14  ;;  %6998 = vmatmul.mubr.msk.bf16.gmra.mrb[28].mxu1 %vm1451_vm6, %v9925_v23  ;;  %v3803_v14 = vld [vmem:[#allocation19 + $0x20] sm:$0xf] }
 0x447   : > { %6827 = vmatprep.mubr.msk.bf16.mxu0 %vm1451_vm6, %v9706_v13 }
 0x44e   : > { %6828 = vmatmul.mubr.msk.bf16.vlgmr.msra.gmra.mrb[36].mxu0 %vm1451_vm6, %v9730_v31 }
 0x44f   : > { %6870 = vmatpush3.bf16.msra.mxu0 %v2961_v24  ;;  %6831 = vmatprep.mubr.msk.bf16.mxu0 %vm1451_vm6, %v9733_v33 }
 0x450   : > { %7593 = vmatprep.subr.msk.bf16.mxu0 %vm10983_vm9, %v3097_v38 }
 0x456   : > { %6832 = vmatmul.mubr.msk.bf16.gmra.mrb[40].mxu0 %vm1451_vm6, %v9758_v47 }
 0x457   : > { %6835 = vmatprep.mubr.msk.bf16.mxu0 %vm1451_vm6, %v9760_v49 }
 0x45e   : > { %6836 = vmatmul.mubr.msk.bf16.gmra.mrb[44].mxu0 %vm1451_vm6, %v9782_v60 }
 0x45f   : > { %6839 = vmatprep.mubr.msk.bf16.mxu0 %vm1451_vm6, %v9784_v53 }
 0x466   : > { %6840 = vmatmul.mubr.msk.bf16.gmra.mrb[48].mxu0 %vm1451_vm6, %v9806_v4 }
 0x467   : > { %6843 = vmatprep.mubr.msk.bf16.mxu0 %vm1451_vm6, %v9808_v50 }
 0x46e   : > { %6844 = vmatmul.mubr.msk.bf16.gmra.mrb[52].mxu0 %vm1451_vm6, %v9824_v9 }
 0x46f   : > { %6871 = vmatprep.mubr.msk.bf16.mxu0 %vm1451_vm6, %v9706_v13  ;;  %v3529_v13 = vsel %vm10988_vm2, %v3519_v3, 0  ;;  %vm10994_vm2 = vmmov %vm10993_vm0 }
 0x476   : > { %6872 = vmatmul.mubr.msk.bf16.vlgmr.msra.gmra.mrb[56].mxu0 %vm1451_vm6, %v9730_v31 }
 0x477   : > { %6892 = vmatpush3.bf16.msra.mxu0 %v3107_v39  ;;  %6875 = vmatprep.mubr.msk.bf16.mxu0 %vm1451_vm6, %v9733_v33 }
 0x478   : > { %7595 = vmatprep.subr.msk.bf16.mxu0 %vm10985_vm15, %v3381_v40 }
 0x47e   : > { %6876 = vmatmul.mubr.msk.bf16.gmra.mrb[60].mxu0 %vm1451_vm6, %v9758_v47 }
 0x47f   : > { %6879 = vmatprep.mubr.msk.bf16.mxu0 %vm1451_vm6, %v9760_v49 }
 0x486   : > { %6880 = vmatmul.mubr.msk.bf16.gmra.mrb[64].mxu0 %vm1451_vm6, %v9782_v60 }
 0x487   : > { %6883 = vmatprep.mubr.msk.bf16.mxu0 %vm1451_vm6, %v9784_v53 }
 0x48e   : > { %6884 = vmatmul.mubr.msk.bf16.gmra.mrb[68].mxu0 %vm1451_vm6, %v9806_v4 }
 0x48f   : > { %6887 = vmatprep.mubr.msk.bf16.mxu0 %vm1451_vm6, %v9808_v50 }
 0x496   : > { %6888 = vmatmul.mubr.msk.bf16.gmra.mrb[72].mxu0 %vm1451_vm6, %v9824_v9 }
 0x497   : > { %6893 = vmatprep.mubr.msk.bf16.mxu0 %vm1451_vm6, %v9730_v31 }
 0x49e   : > { %6894 = vmatmul.mubr.msk.bf16.vlgmr.msra.gmra.mrb[36].mxu0 %vm1451_vm6, %v9733_v33 }
 0x49f   : > { %6936 = vmatpush3.bf16.msra.mxu0 %v3383_v55  ;;  %6897 = vmatprep.mubr.msk.bf16.mxu0 %vm1451_vm6, %v9758_v47 }
 0x4a0   : > { %7596 = vmatprep.subr.msk.bf16.mxu0 %vm10987_vm7, %v3519_v3 }
 0x4a6   : > { %6898 = vmatmul.mubr.msk.bf16.gmra.mrb[40].mxu0 %vm1451_vm6, %v9760_v49 }
 0x4a7   : > { %6901 = vmatprep.mubr.msk.bf16.mxu0 %vm1451_vm6, %v9782_v60 }
 0x4ae   : > { %6902 = vmatmul.mubr.msk.bf16.gmra.mrb[44].mxu0 %vm1451_vm6, %v9784_v53 }
 0x4af   : > { %6905 = vmatprep.mubr.msk.bf16.mxu0 %vm1451_vm6, %v9806_v4 }
 0x4b6   : > { %6906 = vmatmul.mubr.msk.bf16.gmra.mrb[48].mxu0 %vm1451_vm6, %v9808_v50 }
 0x4b7   : > { %6909 = vmatprep.mubr.msk.bf16.mxu0 %vm1451_vm6, %v9824_v9 }
 0x4be   : > { %6910 = vmatmul.mubr.msk.bf16.gmra.mrb[52].mxu0 %vm1451_vm6, %v9875_v26 }
 0x4bf   : > { %6937 = vmatprep.mubr.msk.bf16.mxu0 %vm1451_vm6, %v9730_v31  ;;  %v3805_v31 = vsel %vm10990_vm5, %v3803_v14, 0 }
 0x4c6   : > { %6938 = vmatmul.mubr.msk.bf16.vlgmr.msra.gmra.mrb[56].mxu0 %vm1451_vm6, %v9733_v33 }
 0x4c7   : > { %6958 = vmatpush3.bf16.msra.mxu0 %v3529_v13  ;;  %6941 = vmatprep.mubr.msk.bf16.mxu0 %vm1451_vm6, %v9758_v47 }
 0x4c8   : > { %7598 = vmatprep.subr.msk.bf16.mxu0 %vm10989_vm8, %v3803_v14 }
 0x4ce   : > { %6942 = vmatmul.mubr.msk.bf16.gmra.mrb[60].mxu0 %vm1451_vm6, %v9760_v49 }
 0x4cf   : > { %6945 = vmatprep.mubr.msk.bf16.mxu0 %vm1451_vm6, %v9782_v60 }
 0x4d6   : > { %6946 = vmatmul.mubr.msk.bf16.gmra.mrb[64].mxu0 %vm1451_vm6, %v9784_v53 }
 0x4d7   : > { %6949 = vmatprep.mubr.msk.bf16.mxu0 %vm1451_vm6, %v9806_v4 }
 0x4de   : > { %6950 = vmatmul.mubr.msk.bf16.gmra.mrb[68].mxu0 %vm1451_vm6, %v9808_v50 }
 0x4df   : > { %6953 = vmatprep.mubr.msk.bf16.mxu0 %vm1451_vm6, %v9824_v9 }
 0x4e6   : > { %6954 = vmatmul.mubr.msk.bf16.gmra.mrb[72].mxu0 %vm1451_vm6, %v9875_v26 }
 0x4e7   : > { %6959 = vmatprep.mubr.msk.bf16.mxu0 %vm1451_vm6, %v9733_v33 }
 0x4ee   : > { %6960 = vmatmul.mubr.msk.bf16.vlgmr.msra.gmra.mrb[36].mxu0 %vm1451_vm6, %v9758_v47 }
 0x4ef   : > { %7002 = vmatpush3.bf16.msra.mxu0 %v3805_v31  ;;  %6963 = vmatprep.mubr.msk.bf16.mxu0 %vm1451_vm6, %v9760_v49 }
 0x4f6   : > { %6964 = vmatmul.mubr.msk.bf16.gmra.mrb[40].mxu0 %vm1451_vm6, %v9782_v60 }
 0x4f7   : > { %6967 = vmatprep.mubr.msk.bf16.mxu0 %vm1451_vm6, %v9784_v53 }
 0x4f9   : > { %v6983_v32 = vpop.f32.mrb[12].mxu1 }
 0x4fa   : > { %v3703_v34 = vpop.f32.mrb[13].mxu1 }
 0x4fb   : > { %v6984_v35 = vpop.f32.mrb[14].mxu1 }
 0x4fc   : > { %v3706_v37 = vpop.f32.mrb[15].mxu1 }
 0x4fe   : > { %6968 = vmatmul.mubr.msk.bf16.gmra.mrb[44].mxu0 %vm1451_vm6, %v9806_v4 }
 0x4ff   : > { %6971 = vmatprep.mubr.msk.bf16.mxu0 %vm1451_vm6, %v9808_v50 }
 0x501   : > { %v6987_v41 = vpop.f32.mrb[16].mxu1 }
 0x502   : > { %v3719_v42 = vpop.f32.mrb[17].mxu1 }
 0x503   : > { %v10034_v0 = vpop.f32.mrb[18].mxu1 }
 0x504   : > { %v10036_v36 = vpop.f32.mrb[19].mxu1 }
 0x506   : > { %6972 = vmatmul.mubr.msk.bf16.gmra.mrb[48].mxu0 %vm1451_vm6, %v9824_v9 }
 0x507   : > { %6975 = vmatprep.mubr.msk.bf16.mxu0 %vm1451_vm6, %v9875_v26 }
 0x509   : > { %v10042_v43 = vpop.f32.mrb[20].mxu1 }
 0x50a   : > { %v10044_v44 = vpop.f32.mrb[21].mxu1 }
 0x50b   : > { %v10046_v10 = vpop.f32.mrb[22].mxu1 }
 0x50c   : > { %v10048_v45 = vpop.f32.mrb[23].mxu1 }
 0x50e   : > { %6976 = vmatmul.mubr.msk.bf16.gmra.mrb[52].mxu0 %vm1451_vm6, %v9925_v23 }
 0x50f   : > { %7003 = vmatprep.mubr.msk.bf16.mxu0 %vm1451_vm6, %v9733_v33 }
 0x511   : > { %v10054_v29 = vpop.f32.mrb[24].mxu1 }
 0x512   : > { %v10056_v52 = vpop.f32.mrb[25].mxu1 }
 0x513   : > { %v10058_v17 = vpop.f32.mrb[26].mxu1 }
 0x514   : > { %v10060_v56 = vpop.f32.mrb[27].mxu1 }
 0x516   : > { %7004 = vmatmul.mubr.msk.bf16.vlgmr.msra.gmra.mrb[56].mxu0 %vm1451_vm6, %v9758_v47  ;;  %v7861_v47 = vld [vmem:[#allocation22 + $0x18] sm:$0xff]  }
 0x517   : > { %7007 = vmatprep.mubr.msk.bf16.mxu0 %vm1451_vm6, %v9760_v49  ;;  %7023 = vmatprep.subr.bf16.mxu1 %v7861_v47  ;;  %v10088_v49 = vld [vmem:[#allocation22] sm:$0xff]  }
 0x518   : > { %7024 = vmatpush3.bf16.msra.mxu1 %v7861_v47 }
 0x519   : > { %v10066_v51 = vpop.f32.mrb[28].mxu1  ;;  %7041 = vmatprep.subr.bf16.mxu1 %v10088_v49 }
 0x51a   : > { %v10068_v57 = vpop.f32.mrb[29].mxu1 }
 0x51b   : > { %v10070_v58 = vpop.f32.mrb[30].mxu1 }
 0x51c   : > { %v10072_v33 = vpop.f32.mrb[31].mxu1 }
 0x51e   : > { %7008 = vmatmul.mubr.msk.bf16.gmra.mrb[60].mxu0 %vm1451_vm6, %v9782_v60 }
 0x51f   : > { %7011 = vmatprep.mubr.msk.bf16.mxu0 %vm1451_vm6, %v9784_v53 }
 0x526   : > { %7012 = vmatmul.mubr.msk.bf16.gmra.mrb[64].mxu0 %vm1451_vm6, %v9806_v4 }
 0x527   : > { %7015 = vmatprep.mubr.msk.bf16.mxu0 %vm1451_vm6, %v9808_v50 }
 0x52e   : > { %7016 = vmatmul.mubr.msk.bf16.gmra.mrb[68].mxu0 %vm1451_vm6, %v9824_v9 }
 0x52f   : > { %7019 = vmatprep.mubr.msk.bf16.mxu0 %vm1451_vm6, %v9875_v26 }
 0x536   : > { %7020 = vmatmul.mubr.msk.bf16.gmra.mrb[72].mxu0 %vm1451_vm6, %v9925_v23  ;;  %vm4061_vm6 = vcmask 1046528  }
 0x5c1   : > { %v6961_v59 = vpop.f32.mrb[36].mxu0 }
 0x5c2   : > { %v3964_v60 = vrot.slane %v6961_v59, 7  ;;  %v3565_v53 = vpop.f32.mrb[37].mxu0 }
 0x5c3   : > { %v3961_v54 = vrot.slane %v3565_v53, 7  ;;  %v6962_v61 = vpop.f32.mrb[38].mxu0 }
 0x5c4   : > { %v4012_v62 = vsel %vm3960_vm12, 0.0, %v3964_v60  ;;  %v3965_v63 = vrot.slane %v6962_v61, 7  ;;  %v3568_v16 = vpop.f32.mrb[39].mxu0 }
 0x5c5   : > { %v10092_v7 = vadd.f32 %v6983_v32, %v4012_v62  ;;  %v4011_v1 = vsel %vm3960_vm12, 0.0, %v3961_v54  ;;  %v3962_v2 = vrot.slane %v3568_v16, 7 }
 0x5c6   : > { %v10095_v4 = vadd.f32 %v4011_v1, %v3703_v34  ;;  %v3966_v50 = vsel %vm3960_vm12, %v3964_v60, %v3965_v63 }
 0x5c7   : > { %v3963_v5 = vsel %vm3960_vm12, %v3961_v54, %v3962_v2  ;;  %v10099_v8 = vadd.f32 %v6984_v35, %v3966_v50 }
 0x5c8   : > { %v10101_v11 = vadd.f32 %v3963_v5, %v3706_v37 }
 0x5c9   : > { %v6965_v25 = vpop.f32.mrb[40].mxu0 }
 0x5ca   : > { %v3970_v9 = vrot.slane %v6965_v25, 7  ;;  %v3581_v12 = vpop.f32.mrb[41].mxu0 }
 0x5cb   : > { %v3967_v15 = vrot.slane %v3581_v12, 7  ;;  %v6966_v28 = vpop.f32.mrb[42].mxu0 }
 0x5cc   : > { %v4014_v19 = vsel %vm3960_vm12, 0.0, %v3970_v9  ;;  %v3971_v20 = vrot.slane %v6966_v28, 7  ;;  %v3584_v21 = vpop.f32.mrb[43].mxu0 }
 0x5cd   : > { %v10104_v22 = vadd.f32 %v6987_v41, %v4014_v19  ;;  %v4013_v26 = vsel %vm3960_vm12, 0.0, %v3967_v15  ;;  %v3968_v27 = vrot.slane %v3584_v21, 7 }
 0x5ce   : > { %v10107_v30 = vadd.f32 %v4013_v26, %v3719_v42  ;;  %v3972_v46 = vsel %vm3960_vm12, %v3970_v9, %v3971_v20  ;;  %v10160_v20 = vstv %s6169_s22 }
 0x5cf   : > { %v3969_v48 = vsel %vm3960_vm12, %v3967_v15, %v3968_v27  ;;  %v10112_v6 = vadd.f32 %v10034_v0, %v3972_v46  ;;  %v4191_v46 = vadd.s32 1, %v10160_v20  ;;  %vm4200_vm4 = vcmp.ge.s32.totalorder %v10160_v20, 0 }
 0x5d0   : > { %v10115_v18 = vadd.f32 %v3969_v48, %v10036_v36  ;;  %vm4210_vm13 = vcmp.lt.s32.totalorder %v10160_v20, 16 }
 0x5d1   : > { %v6969_v23 = vpop.f32.mrb[44].mxu0  ;;  %vm4201_vm11 = vcmp.ge.s32.totalorder %v4191_v46, 0  ;;  %vm4211_vm3 = vcmp.lt.s32.totalorder %v4191_v46, 16  ;;  %vm4220_vm15 = vmand %vm4200_vm4, %vm4210_vm13 }
 0x5d2   : > { %v3976_v24 = vrot.slane %v6969_v23, 7  ;;  %v3597_v38 = vpop.f32.mrb[45].mxu0  ;;  %vm10187_vm14 = vmand %vm4201_vm11, %vm4211_vm3 }
 0x5d3   : > { %v3973_v39 = vrot.slane %v3597_v38, 7  ;;  %v6970_v40 = vpop.f32.mrb[46].mxu0 }
 0x5d4   : > { %v4016_v55 = vsel %vm3960_vm12, 0.0, %v3976_v24  ;;  %v3977_v3 = vrot.slane %v6970_v40, 7  ;;  %v3600_v13 = vpop.f32.mrb[47].mxu0 }
 0x5d5   : > { %v10119_v14 = vadd.f32 %v10042_v43, %v4016_v55  ;;  %v4015_v31 = vsel %vm3960_vm12, 0.0, %v3973_v39  ;;  %v3974_v32 = vrot.slane %v3600_v13, 7  ;;  %v4193_v55 = vadd.s32 3, %v10160_v20 }
 0x5d6   : > { %v10123_v34 = vadd.f32 %v4015_v31, %v10044_v44  ;;  %v3978_v35 = vsel %vm3960_vm12, %v3976_v24, %v3977_v3  ;;  %v4192_v13 = vadd.s32 2, %v10160_v20 }
 0x5d7   : > { %v3975_v37 = vsel %vm3960_vm12, %v3973_v39, %v3974_v32  ;;  %v10128_v41 = vadd.f32 %v10046_v10, %v3978_v35  ;;  %vm4203_vm1 = vcmp.ge.s32.totalorder %v4193_v55, 0  ;;  %vm4213_vm9 = vcmp.lt.s32.totalorder %v4193_v55, 16 }
 0x5d8   : > { %v10131_v42 = vadd.f32 %v3975_v37, %v10048_v45  ;;  %vm4202_vm10 = vcmp.ge.s32.totalorder %v4192_v13, 0  ;;  %vm4212_vm7 = vcmp.lt.s32.totalorder %v4192_v13, 16  ;;  %vm10218_vm5 = vmand %vm4203_vm1, %vm4213_vm9 }
 0x5d9   : > { %v6973_v0 = vpop.f32.mrb[48].mxu0  ;;  %vm10227_vm4 = vmand %vm4202_vm10, %vm4212_vm7 }
 0x5da   : > { %v3982_v36 = vrot.slane %v6973_v0, 7  ;;  %v3613_v43 = vpop.f32.mrb[49].mxu0  ;;  %vm10999_vm1 = vmmov %vm10993_vm0 }
 0x5db   : > { %v3979_v47 = vrot.slane %v3613_v43, 7  ;;  %v6974_v59 = vpop.f32.mrb[50].mxu0  ;;  %vm11001_vm9 = vmmov %vm10993_vm0 }
 0x5dc   : > { %v4018_v60 = vsel %vm3960_vm12, 0.0, %v3982_v36  ;;  %v3983_v44 = vrot.slane %v6974_v59, 7  ;;  %v3616_v53 = vpop.f32.mrb[51].mxu0 }
 0x5dd   : > { %v10135_v54 = vadd.f32 %v10054_v29, %v4018_v60  ;;  %v4017_v61 = vsel %vm3960_vm12, 0.0, %v3979_v47  ;;  %v3980_v10 = vrot.slane %v3616_v53, 7 }
 0x5de   : > { %v10139_v62 = vadd.f32 %v4017_v61, %v10056_v52  ;;  %v3984_v45 = vsel %vm3960_vm12, %v3982_v36, %v3983_v44  ;;  %v10194_v61 = vadd.s32 5, %v10160_v20 }
 0x5df   : > { %v3981_v63 = vsel %vm3960_vm12, %v3979_v47, %v3980_v10  ;;  %v10144_v16 = vadd.f32 %v10058_v17, %v3984_v45  ;;  %v10197_v10 = vadd.s32 4, %v10160_v20 }
 0x5e0   : > { %v10147_v1 = vadd.f32 %v3981_v63, %v10060_v56  ;;  %vm4205_vm8 = vcmp.ge.s32.totalorder %v10194_v61, 0  ;;  %vm4215_vm11 = vcmp.lt.s32.totalorder %v10194_v61, 16 }
 0x5e1   : > { %v6977_v2 = vpop.f32.mrb[52].mxu0  ;;  %vm4204_vm3 = vcmp.ge.s32.totalorder %v10197_v10, 0  ;;  %vm4214_vm13 = vcmp.lt.s32.totalorder %v10197_v10, 16  ;;  %vm10266_vm10 = vmand %vm4205_vm8, %vm4215_vm11 }
 0x5e2   : > { %v3988_v50 = vrot.slane %v6977_v2, 7  ;;  %v3629_v29 = vpop.f32.mrb[53].mxu0  ;;  %vm4224_vm8 = vmand %vm4204_vm3, %vm4214_vm13 }
 0x5e3   : > { %v3985_v5 = vrot.slane %v3629_v29, 7  ;;  %v6978_v25 = vpop.f32.mrb[54].mxu0  ;;  %vm11005_vm11 = vmmov %vm10999_vm1 }
 0x5e4   : > { %v4020_v52 = vsel %vm3960_vm12, 0.0, %v3988_v50  ;;  %v3989_v9 = vrot.slane %v6978_v25, 7  ;;  %v3632_v12 = vpop.f32.mrb[55].mxu0 }
 0x5e5   : > { %v10153_v15 = vadd.f32 %v10066_v51, %v4020_v52  ;;  %v4019_v17 = vsel %vm3960_vm12, 0.0, %v3985_v5  ;;  %v3986_v28 = vrot.slane %v3632_v12, 7 }
 0x5e6   : > { %v10157_v56 = vadd.f32 %v4019_v17, %v10068_v57  ;;  %v3990_v19 = vsel %vm3960_vm12, %v3988_v50, %v3989_v9 }
 0x5e7   : > { %v3987_v21 = vsel %vm3960_vm12, %v3985_v5, %v3986_v28  ;;  %v10164_v26 = vadd.f32 %v10070_v58, %v3990_v19 }
 0x5e8   : > { %v10167_v27 = vadd.f32 %v3987_v21, %v10072_v33  ;;  %v10173_v33 = vld [vmem:[#allocation21] ss:$0 sm:$0xff] }
 0x5e9   : > { %v7005_v51 = vpop.f32.mrb[56].mxu0 }
 0x5ea   : > { %v3841_v48 = vpop.f32.mrb[57].mxu0  ;;  %v4065_v57 = vrot.slane %v7005_v51, 1 }
 0x5eb   : > { %v7006_v23 = vpop.f32.mrb[58].mxu0  ;;  %v4062_v39 = vrot.slane %v3841_v48, 1 }
 0x5ec   : > { %v4066_v24 = vrot.slane %v7006_v23, 1  ;;  %v3844_v38 = vpop.f32.mrb[59].mxu0 }
 0x5ed   : > { %v4063_v40 = vrot.slane %v3844_v38, 1 }
 0x5ee   : > { %v4067_v58 = vsel %vm4061_vm6, %v4065_v57, %v4066_v24  ;;  %v4113_v3 = vsel %vm4061_vm6, %v4066_v24, 0.0 }
 0x5ef   : > { %v4124_v31 = vadd.f32 %v4067_v58, %v10092_v7  ;;  %v4125_v32 = vadd.f32 %v4113_v3, %v10099_v8  ;;  %v4064_v35 = vsel %vm4061_vm6, %v4062_v39, %v4063_v40  ;;  %v4112_v37 = vsel %vm4061_vm6, %v4063_v40, 0.0 }
 0x5f0   : > { %v4122_v0 = vadd.f32 %v4064_v35, %v10095_v4  ;;  %v4123_v36 = vadd.f32 %v4112_v37, %v10101_v11  ;;  %v10235_v35 = vadd.s32 6, %v10160_v20 }
 0x5f1   : > { %v4151_v43 = vadd.f32 %v10173_v33, %v4124_v31  ;;  %v4152_v47 = vadd.f32 %v10173_v33, %v4125_v32  ;;  %v7009_v59 = vpop.f32.mrb[60].mxu0  ;;  %v10232_v32 = vadd.s32 7, %v10160_v20 }
 0x5f2   : > { %v4149_v8 = vadd.f32 %v10173_v33, %v4122_v0  ;;  %v4150_v4 = vadd.f32 %v10173_v33, %v4123_v36  ;;  %v3857_v11 = vpop.f32.mrb[61].mxu0  ;;  %v4071_v2 = vrot.slane %v7009_v59, 1  ;;  %vm4206_vm7 = vcmp.ge.s32.totalorder %v10235_v35, 0 }
 0x5f3   : > { %v4171_v60 = vmax.f32 %v4151_v43, 0.0  ;;  %v4172_v44 = vmax.f32 %v4152_v47, 0.0  ;;  %v7010_v53 = vpop.f32.mrb[62].mxu0  ;;  %v4068_v52 = vrot.slane %v3857_v11, 1 }
 0x5f4   : > { %v4169_v45 = vmax.f32 %v4149_v8, 0.0  ;;  %v4170_v63 = vmax.f32 %v4150_v4, 0.0  ;;  %v4072_v50 = vrot.slane %v7010_v53, 1  ;;  %v3860_v29 = vpop.f32.mrb[63].mxu0 }
 0x5f5   : > { %v4252_v5 = vsel %vm10187_vm14, %v4171_v60, 0.0  ;;  %v4253_v25 = vsel %vm10187_vm14, %v4172_v44, 0.0  ;;  %v4069_v9 = vrot.slane %v3860_v29, 1  ;;  %vm11000_vm14 = vmmov %vm10993_vm0 }
 0x5f6   : > { %v4271_v12 = vpack.c.bf16 %v4253_v25, %v4252_v5  ;;  %v4250_v17 = vsel %vm4220_vm15, %v4169_v45, 0.0  ;;  %v4251_v28 = vsel %vm4220_vm15, %v4170_v63, 0.0  ;;  %v4073_v19 = vsel %vm4061_vm6, %v4071_v2, %v4072_v50 }
 0x5f7   : > { %v4270_v21 = vpack.c.bf16 %v4251_v28, %v4250_v17  ;;  %v4115_v51 = vsel %vm4061_vm6, %v4072_v50, 0.0  ;;  %v4128_v46 = vadd.f32 %v4073_v19, %v10104_v22  ;;  %v4070_v48 = vsel %vm4061_vm6, %v4068_v52, %v4069_v9 }
 0x5f8   : > { %4281 = vst.msk [vmem:[#allocation3 + $0x8] sm:$0xff] %vm10993_vm0, %v4271_v12  ;;  %v4129_v23 = vadd.f32 %v4115_v51, %v10112_v6  ;;  %v4114_v57 = vsel %vm4061_vm6, %v4069_v9, 0.0  ;;  %v4126_v24 = vadd.f32 %v4070_v48, %v10107_v30  ;;  %vm4207_vm15 = vcmp.ge.s32.totalorder %v10232_v32, 0 }
 0x5f9   : > { %4280 = vst.msk [vmem:[#allocation3] sm:$0xff] %vm10994_vm2, %v4270_v21  ;;  %v4155_v38 = vadd.f32 %v10173_v33, %v4128_v46  ;;  %v4127_v39 = vadd.f32 %v4114_v57, %v10115_v18  ;;  %v7013_v40 = vpop.f32.mrb[64].mxu0  ;;  %vm4217_vm0 = vcmp.lt.s32.totalorder %v10232_v32, 16  ;;  %vm4216_vm2 = vcmp.lt.s32.totalorder %v10235_v35, 16 }
 0x5fa   : > { %v4156_v22 = vadd.f32 %v10173_v33, %v4129_v23  ;;  %v4153_v30 = vadd.f32 %v10173_v33, %v4126_v24  ;;  %v3873_v58 = vpop.f32.mrb[65].mxu0  ;;  %v4077_v36 = vrot.slane %v7013_v40, 1  ;;  %v10281_v57 = vadd.s32 9, %v10160_v20  ;;  %vm10308_vm3 = vmand %vm4207_vm15, %vm4217_vm0 }
 0x5fb   : > { %v4175_v3 = vmax.f32 %v4155_v38, 0.0  ;;  %v4154_v18 = vadd.f32 %v10173_v33, %v4127_v39  ;;  %v7014_v55 = vpop.f32.mrb[66].mxu0  ;;  %v4074_v7 = vrot.slane %v3873_v58, 1 }
 0x5fc   : > { %v4176_v37 = vmax.f32 %v4156_v22, 0.0  ;;  %v4173_v0 = vmax.f32 %v4153_v30, 0.0  ;;  %v4078_v43 = vrot.slane %v7014_v55, 1  ;;  %v3876_v47 = vpop.f32.mrb[67].mxu0  ;;  %vm4209_vm13 = vcmp.ge.s32.totalorder %v10281_v57, 0 }
 0x5fd   : > { %v4256_v59 = vsel %vm10218_vm5, %v4175_v3, 0.0  ;;  %v4174_v13 = vmax.f32 %v4154_v18, 0.0  ;;  %v4075_v8 = vrot.slane %v3876_v47, 1 }
 0x5fe   : > { %v4257_v4 = vsel %vm10218_vm5, %v4176_v37, 0.0  ;;  %v4254_v11 = vsel %vm10227_vm4, %v4173_v0, 0.0  ;;  %v4079_v60 = vsel %vm4061_vm6, %v4077_v36, %v4078_v43  ;;  %v4117_v44 = vsel %vm4061_vm6, %v4078_v43, 0.0  ;;  %vm11004_vm5 = vmmov %vm10999_vm1  ;;  %v10295_v43 = vld [vmem:[#allocation22 + $0x20] sm:$0xff]  }
 0x5ff   : > { %v4273_v53 = vpack.c.bf16 %v4257_v4, %v4256_v59  ;;  %v4255_v45 = vsel %vm10227_vm4, %v4174_v13, 0.0  ;;  %v4132_v63 = vadd.f32 %v4079_v60, %v10119_v14  ;;  %v4133_v2 = vadd.f32 %v4117_v44, %v10128_v41  ;;  %v10249_v50 = vld [vmem:[#allocation3 + $0x8] sm:$0xff]  ;;  %vm11008_vm4 = vmmov %vm10999_vm1 }
 0x600   : > { %v4272_v29 = vpack.c.bf16 %v4255_v45, %v4254_v11  ;;  %v4076_v5 = vsel %vm4061_vm6, %v4074_v7, %v4075_v8  ;;  %v4116_v25 = vsel %vm4061_vm6, %v4075_v8, 0.0  ;;  %7025 = vmatprep.mubr.msk.bf16.mxu1 %vm10999_vm1, %v10249_v50  ;;  %v4198_v36 = vadd.s32 8, %v10160_v20  ;;  %vm11012_vm15 = vmmov %vm11008_vm4 }
 0x601   : > { %4283 = vst.msk [vmem:[#allocation3 + $0x18] sm:$0xff] %vm11000_vm14, %v4273_v53  ;;  %v4159_v52 = vadd.f32 %v10173_v33, %v4132_v63  ;;  %v4160_v14 = vadd.f32 %v10173_v33, %v4133_v2  ;;  %v4130_v41 = vadd.f32 %v4076_v5, %v10123_v34  ;;  %v4131_v9 = vadd.f32 %v4116_v25, %v10131_v42  ;;  %v7017_v12 = vpop.f32.mrb[68].mxu0  ;;  %vm11009_vm14 = vmmov %vm11008_vm4 }
 0x602   : > { %4282 = vst.msk [vmem:[#allocation3 + $0x10] sm:$0xff] %vm11001_vm9, %v4272_v29  ;;  %v3889_v28 = vpop.f32.mrb[69].mxu0  ;;  %v4083_v51 = vrot.slane %v7017_v12, 1  ;;  %vm4219_vm1 = vcmp.lt.s32.totalorder %v10281_v57, 16  ;;  %vm10327_vm9 = vmand %vm4206_vm7, %vm4216_vm2  ;;  %vm4218_vm0 = vcmp.lt.s32.totalorder %v4198_v36, 16 }
 0x603   : > { %v4179_v34 = vmax.f32 %v4159_v52, 0.0  ;;  %v4180_v42 = vmax.f32 %v4160_v14, 0.0  ;;  %v4157_v19 = vadd.f32 %v10173_v33, %v4130_v41  ;;  %v4158_v21 = vadd.f32 %v10173_v33, %v4131_v9  ;;  %v7018_v61 = vpop.f32.mrb[70].mxu0  ;;  %vm11013_vm7 = vmmov %vm11008_vm4 }
 0x604   : > { %v4080_v46 = vrot.slane %v3889_v28, 1  ;;  %v4084_v48 = vrot.slane %v7018_v61, 1  ;;  %v3892_v23 = vpop.f32.mrb[71].mxu0  ;;  %vm4229_vm2 = vmand %vm4209_vm13, %vm4219_vm1 }
 0x605   : > { %v4260_v24 = vsel %vm10266_vm10, %v4179_v34, 0.0  ;;  %v4261_v38 = vsel %vm10266_vm10, %v4180_v42, 0.0  ;;  %v4177_v39 = vmax.f32 %v4157_v19, 0.0  ;;  %v4178_v40 = vmax.f32 %v4158_v21, 0.0 }
 0x606   : > { %v4275_v22 = vpack.c.bf16 %v4261_v38, %v4260_v24  ;;  %v4085_v6 = vsel %vm4061_vm6, %v4083_v51, %v4084_v48  ;;  %v4119_v10 = vsel %vm4061_vm6, %v4084_v48, 0.0  ;;  %v4081_v30 = vrot.slane %v3892_v23, 1 }
 0x607   : > { %v4258_v58 = vsel %vm4224_vm8, %v4177_v39, 0.0  ;;  %v4259_v3 = vsel %vm4224_vm8, %v4178_v40, 0.0  ;;  %v4136_v18 = vadd.f32 %v4085_v6, %v10135_v54  ;;  %v4137_v31 = vadd.f32 %v4119_v10, %v10144_v16  ;;  %vm11014_vm8 = vmmov %vm11008_vm4 }
 0x608   : > { %4285 = vst.msk [vmem:[#allocation3 + $0x28] sm:$0xff] %vm11004_vm5, %v4275_v22  ;;  %v4274_v55 = vpack.c.bf16 %v4259_v3, %v4258_v58  ;;  %v4082_v37 = vsel %vm4061_vm6, %v4080_v46, %v4081_v30  ;;  %v4118_v0 = vsel %vm4061_vm6, %v4081_v30, 0.0  ;;  %vm4208_vm10 = vcmp.ge.s32.totalorder %v4198_v36, 0  ;;  %vm11015_vm5 = vmmov %vm11008_vm4  ;;  %v4290_v3 = vld [vmem:[#allocation3] sm:$0xff] }
 0x609   : > { %v4163_v47 = vadd.f32 %v10173_v33, %v4136_v18  ;;  %v4164_v59 = vadd.f32 %v10173_v33, %v4137_v31  ;;  %v4134_v13 = vadd.f32 %v4082_v37, %v10139_v62  ;;  %v4135_v54 = vadd.f32 %v4118_v0, %v10147_v1  ;;  %v7021_v16 = vpop.f32.mrb[72].mxu0  ;;  %v10301_v7 = vld [vmem:[#allocation3 + $0x10] sm:$0xff]  ;;  %v10314_v62 = vld [vmem:[#allocation3 + $0x18] sm:$0xff]  ;;  %v7868_v0 = vld [vmem:[#allocation22 + $0x38] sm:$0xff]  }
 0x60a   : > { %4284 = vst.msk [vmem:[#allocation3 + $0x20] sm:$0xff] %vm11005_vm11, %v4274_v55  ;;  %7026 = vmatmul.mubr.msk.bf16.vlgmr.msra.gmra.mrb[32].mxu1 %vm11008_vm4, %v10301_v7  ;;  %v3905_v8 = vpop.f32.mrb[73].mxu0  ;;  %v4089_v53 = vrot.slane %v7021_v16, 1  ;;  %vm4228_vm11 = vmand %vm4208_vm10, %vm4218_vm0  ;;  %v7864_v18 = vld [vmem:[#allocation22 + $0x8] sm:$0xff]   ;;  %v7866_v55 = vld [vmem:[#allocation22 + $0x10] sm:$0xff]  }
 0x60b   : > { %v4183_v1 = vmax.f32 %v4163_v47, 0.0  ;;  %v4184_v4 = vmax.f32 %v4164_v59, 0.0  ;;  %v4161_v11 = vadd.f32 %v10173_v33, %v4134_v13  ;;  %v4162_v32 = vadd.f32 %v10173_v33, %v4135_v54  ;;  %7029 = vmatprep.mubr.msk.bf16.mxu1 %vm11009_vm14, %v10314_v62  ;;  %7042 = vmatpush3.bf16.msra.mxu1 %v10088_v49  ;;  %v7022_v60 = vpop.f32.mrb[74].mxu0  ;;  %v7865_v31 = vld [vmem:[#allocation22 + $0x28] sm:$0xff]   ;;  %v7867_v37 = vld [vmem:[#allocation22 + $0x30] sm:$0xff]  }
 0x60c   : > { %v4086_v45 = vrot.slane %v3905_v8, 1  ;;  %v4090_v63 = vrot.slane %v7022_v60, 1  ;;  %v3908_v2 = vpop.f32.mrb[75].mxu0  ;;  %7059 = vmatprep.subr.bf16.mxu1 %v10295_v43 }
 0x60d   : > { %v4264_v29 = vsel %vm10308_vm3, %v4183_v1, 0.0  ;;  %v4265_v49 = vsel %vm10308_vm3, %v4184_v4, 0.0  ;;  %v4181_v5 = vmax.f32 %v4161_v11, 0.0  ;;  %v4182_v25 = vmax.f32 %v4162_v32, 0.0  ;;  %vm11016_vm3 = vmmov %vm11008_vm4 }
 0x60e   : > { %v4277_v35 = vpack.c.bf16 %v4265_v49, %v4264_v29  ;;  %v4091_v52 = vsel %vm4061_vm6, %v4089_v53, %v4090_v63  ;;  %v4121_v14 = vsel %vm4061_vm6, %v4090_v63, 0.0  ;;  %v4087_v41 = vrot.slane %v3908_v2, 1  ;;  %vm11017_vm4 = vmmov %vm11016_vm3 }
 0x60f   : > { %v4262_v9 = vsel %vm10327_vm9, %v4181_v5, 0.0  ;;  %v4263_v12 = vsel %vm10327_vm9, %v4182_v25, 0.0  ;;  %v4140_v17 = vadd.f32 %v4091_v52, %v10153_v15  ;;  %v4141_v28 = vadd.f32 %v4121_v14, %v10164_v26  ;;  %v10360_v15 = vld [vmem:[#allocation3 + $0x28] sm:$0xff]  ;;  %vm11018_vm13 = vmmov %vm11016_vm3 }
 0x610   : > { %4287 = vst.msk [vmem:[#allocation3 + $0x38] sm:$0xff] %vm11012_vm15, %v4277_v35  ;;  %v4276_v34 = vpack.c.bf16 %v4263_v12, %v4262_v9  ;;  %v4088_v42 = vsel %vm4061_vm6, %v4086_v45, %v4087_v41  ;;  %v4120_v19 = vsel %vm4061_vm6, %v4087_v41, 0.0  ;;  %vm11019_vm1 = vmmov %vm11016_vm3 }
 0x611   : > { %v4167_v21 = vadd.f32 %v10173_v33, %v4140_v17  ;;  %v4168_v61 = vadd.f32 %v10173_v33, %v4141_v28  ;;  %v4138_v51 = vadd.f32 %v4088_v42, %v10157_v56  ;;  %v4139_v46 = vadd.f32 %v4120_v19, %v10167_v27  ;;  %v10351_v48 = vld [vmem:[#allocation3 + $0x20] sm:$0xff]  ;;  %vm11020_vm14 = vmmov %vm11019_vm1 }
 0x612   : > { %4286 = vst.msk [vmem:[#allocation3 + $0x30] sm:$0xff] %vm11013_vm7, %v4276_v34  ;;  %7030 = vmatmul.mubr.msk.bf16.gmra.mrb[36].mxu1 %vm11014_vm8, %v10351_v48  ;;  %vm11021_vm9 = vmmov %vm11019_vm1 }
 0x613   : > { %v4187_v26 = vmax.f32 %v4167_v21, 0.0  ;;  %v4188_v23 = vmax.f32 %v4168_v61, 0.0  ;;  %v4165_v56 = vadd.f32 %v10173_v33, %v4138_v51  ;;  %v4166_v27 = vadd.f32 %v10173_v33, %v4139_v46  ;;  %7033 = vmatprep.mubr.msk.bf16.mxu1 %vm11015_vm5, %v10360_v15  ;;  %vm11022_vm10 = vmmov %vm11019_vm1 }
 0x614   : > { %vm11023_vm15 = vmmov %vm11019_vm1 }
 0x615   : > { %v4268_v24 = vsel %vm4229_vm2, %v4187_v26, 0.0  ;;  %v4269_v57 = vsel %vm4229_vm2, %v4188_v23, 0.0  ;;  %v4185_v38 = vmax.f32 %v4165_v56, 0.0  ;;  %v4186_v39 = vmax.f32 %v4166_v27, 0.0  ;;  %vm11024_vm0 = vmmov %vm11019_vm1 }
 0x616   : > { %v4279_v40 = vpack.c.bf16 %v4269_v57, %v4268_v24  ;;  %vm11025_vm7 = vmmov %vm11024_vm0 }
 0x617   : > { %v4266_v22 = vsel %vm4228_vm11, %v4185_v38, 0.0  ;;  %v4267_v6 = vsel %vm4228_vm11, %v4186_v39, 0.0  ;;  %v10374_v33 = vld [vmem:[#allocation3 + $0x38] sm:$0xff]  ;;  %vm11026_vm2 = vmmov %vm11024_vm0 }
 0x618   : > { %4289 = vst.msk [vmem:[#allocation3 + $0x48] sm:$0xff] %vm11016_vm3, %v4279_v40  ;;  %v4278_v10 = vpack.c.bf16 %v4267_v6, %v4266_v22  ;;  %vm11027_vm8 = vmmov %vm11024_vm0 }
 0x619   : > { %v10369_v30 = vld [vmem:[#allocation3 + $0x30] sm:$0xff]  ;;  %vm11028_vm5 = vmmov %vm11024_vm0 }
 0x61a   : > { %4288 = vst.msk [vmem:[#allocation3 + $0x40] sm:$0xff] %vm11017_vm4, %v4278_v10  ;;  %7034 = vmatmul.mubr.msk.bf16.gmra.mrb[40].mxu1 %vm11018_vm13, %v10369_v30  ;;  %vm11029_vm11 = vmmov %vm11024_vm0 }
 0x61b   : > { %7037 = vmatprep.mubr.msk.bf16.mxu1 %vm11019_vm1, %v10374_v33  ;;  %vm11030_vm3 = vmmov %vm11024_vm0 }
 0x61c   : > { %vm11031_vm4 = vmmov %vm11024_vm0 }
 0x61d   : > { %vm11032_vm13 = vmmov %vm11024_vm0 }
 0x61e   : > { %vm11033_vm1 = vmmov %vm11024_vm0 }
 0x61f   : > { %v4299_v36 = vld [vmem:[#allocation3 + $0x48] sm:$0xff] }
 0x621   : > { %v10378_v58 = vld [vmem:[#allocation3 + $0x40] sm:$0xff] }
 0x622   : > { %7038 = vmatmul.mubr.msk.bf16.gmra.mrb[44].mxu1 %vm11020_vm14, %v10378_v58  ;;  %vm11034_vm14 = vmmov %vm11024_vm0 }
 0x623   : > { %7043 = vmatprep.mubr.msk.bf16.mxu1 %vm11021_vm9, %v4290_v3  ;;  %vm11035_vm9 = vmmov %vm11024_vm0 }
 0x62a   : > { %7044 = vmatmul.mubr.msk.bf16.vlgmr.msra.gmra.mrb[32].mxu1 %vm11022_vm10, %v10249_v50  ;;  %vm11036_vm10 = vmmov %vm11024_vm0 }
 0x62b   : > { %7047 = vmatprep.mubr.msk.bf16.mxu1 %vm11023_vm15, %v10301_v7  ;;  %7060 = vmatpush3.bf16.msra.mxu1 %v10295_v43  ;;  %vm11037_vm15 = vmmov %vm11024_vm0 }
 0x62c   : > { %7077 = vmatprep.subr.bf16.mxu1 %v7864_v18 }
 0x632   : > { %7048 = vmatmul.mubr.msk.bf16.gmra.mrb[36].mxu1 %vm11024_vm0, %v10314_v62 }
 0x633   : > { %7051 = vmatprep.mubr.msk.bf16.mxu1 %vm11025_vm7, %v10351_v48  ;;  %vm11038_vm7 = vmmov %vm11024_vm0 }
 0x63a   : > { %7052 = vmatmul.mubr.msk.bf16.gmra.mrb[40].mxu1 %vm11026_vm2, %v10360_v15  ;;  %vm11039_vm2 = vmmov %vm11024_vm0 }
 0x63b   : > { %7055 = vmatprep.mubr.msk.bf16.mxu1 %vm11027_vm8, %v10369_v30  ;;  %vm11040_vm8 = vmmov %vm11024_vm0 }
 0x642   : > { %7056 = vmatmul.mubr.msk.bf16.gmra.mrb[44].mxu1 %vm11028_vm5, %v10374_v33  ;;  %vm11041_vm5 = vmmov %vm11024_vm0 }
 0x643   : > { %7061 = vmatprep.mubr.msk.bf16.mxu1 %vm11029_vm11, %v10249_v50  ;;  %vm11042_vm11 = vmmov %vm11024_vm0 }
 0x64a   : > { %7062 = vmatmul.mubr.msk.bf16.vlgmr.msra.gmra.mrb[48].mxu1 %vm11030_vm3, %v10301_v7  ;;  %vm11043_vm3 = vmmov %vm11024_vm0 }
 0x64b   : > { %7065 = vmatprep.mubr.msk.bf16.mxu1 %vm11031_vm4, %v10314_v62  ;;  %7078 = vmatpush3.bf16.msra.mxu1 %v7864_v18  ;;  %vm11044_vm4 = vmmov %vm11024_vm0 }
 0x64c   : > { %7095 = vmatprep.subr.bf16.mxu1 %v7865_v31 }
 0x652   : > { %7066 = vmatmul.mubr.msk.bf16.gmra.mrb[52].mxu1 %vm11032_vm13, %v10351_v48  ;;  %vm11045_vm13 = vmmov %vm11024_vm0 }
 0x653   : > { %7069 = vmatprep.mubr.msk.bf16.mxu1 %vm11033_vm1, %v10360_v15  ;;  %vm11046_vm1 = vmmov %vm11024_vm0 }
 0x65a   : > { %7070 = vmatmul.mubr.msk.bf16.gmra.mrb[56].mxu1 %vm11034_vm14, %v10369_v30  ;;  %vm11047_vm14 = vmmov %vm11024_vm0 }
 0x65b   : > { %7073 = vmatprep.mubr.msk.bf16.mxu1 %vm11035_vm9, %v10374_v33  ;;  %vm11048_vm9 = vmmov %vm11024_vm0 }
 0x662   : > { %7074 = vmatmul.mubr.msk.bf16.gmra.mrb[60].mxu1 %vm11036_vm10, %v10378_v58  ;;  %vm11049_vm10 = vmmov %vm11024_vm0 }
 0x663   : > { %7079 = vmatprep.mubr.msk.bf16.mxu1 %vm11037_vm15, %v4290_v3  ;;  %vm11050_vm15 = vmmov %vm11024_vm0 }
 0x66a   : > { %7080 = vmatmul.mubr.msk.bf16.vlgmr.msra.gmra.mrb[48].mxu1 %vm11024_vm0, %v10249_v50 }
 0x66b   : > { %7083 = vmatprep.mubr.msk.bf16.mxu1 %vm11038_vm7, %v10301_v7  ;;  %7096 = vmatpush3.bf16.msra.mxu1 %v7865_v31  ;;  %vm11051_vm7 = vmmov %vm11024_vm0 }
 0x66c   : > { %7113 = vmatprep.subr.bf16.mxu1 %v7866_v55 }
 0x672   : > { %7084 = vmatmul.mubr.msk.bf16.gmra.mrb[52].mxu1 %vm11039_vm2, %v10314_v62  ;;  %vm11052_vm2 = vmmov %vm11024_vm0 }
 0x673   : > { %7087 = vmatprep.mubr.msk.bf16.mxu1 %vm11040_vm8, %v10351_v48  ;;  %vm11053_vm8 = vmmov %vm11024_vm0 }
 0x67a   : > { %7088 = vmatmul.mubr.msk.bf16.gmra.mrb[56].mxu1 %vm11041_vm5, %v10360_v15  ;;  %vm11054_vm5 = vmmov %vm11024_vm0 }
 0x67b   : > { %7091 = vmatprep.mubr.msk.bf16.mxu1 %vm11042_vm11, %v10369_v30  ;;  %vm11055_vm11 = vmmov %vm11024_vm0 }
 0x682   : > { %7092 = vmatmul.mubr.msk.bf16.gmra.mrb[60].mxu1 %vm11043_vm3, %v10374_v33  ;;  %vm11056_vm3 = vmmov %vm11024_vm0 }
 0x683   : > { %7097 = vmatprep.mubr.msk.bf16.mxu1 %vm11044_vm4, %v10249_v50  ;;  %vm11057_vm4 = vmmov %vm11024_vm0 }
 0x68a   : > { %7098 = vmatmul.mubr.msk.bf16.vlgmr.msra.gmra.mrb[64].mxu1 %vm11045_vm13, %v10301_v7  ;;  %vm11058_vm13 = vmmov %vm11024_vm0 }
 0x68b   : > { %7101 = vmatprep.mubr.msk.bf16.mxu1 %vm11046_vm1, %v10314_v62  ;;  %7114 = vmatpush3.bf16.msra.mxu1 %v7866_v55  ;;  %vm11059_vm1 = vmmov %vm11024_vm0 }
 0x68c   : > { %7131 = vmatprep.subr.bf16.mxu1 %v7867_v37 }
 0x692   : > { %7102 = vmatmul.mubr.msk.bf16.gmra.mrb[68].mxu1 %vm11047_vm14, %v10351_v48  ;;  %vm11060_vm14 = vmmov %vm11024_vm0 }
 0x693   : > { %7105 = vmatprep.mubr.msk.bf16.mxu1 %vm11048_vm9, %v10360_v15  ;;  %vm11061_vm9 = vmmov %vm11024_vm0 }
 0x69a   : > { %7106 = vmatmul.mubr.msk.bf16.gmra.mrb[72].mxu1 %vm11049_vm10, %v10369_v30  ;;  %vm11062_vm10 = vmmov %vm11024_vm0 }
 0x69b   : > { %7109 = vmatprep.mubr.msk.bf16.mxu1 %vm11050_vm15, %v10374_v33  ;;  %vm11063_vm15 = vmmov %vm11024_vm0 }
 0x6a2   : > { %7110 = vmatmul.mubr.msk.bf16.gmra.mrb[76].mxu1 %vm11024_vm0, %v10378_v58 }
 0x6a3   : > { %7115 = vmatprep.mubr.msk.bf16.mxu1 %vm11051_vm7, %v4290_v3  ;;  %vm11064_vm7 = vmmov %vm11024_vm0 }
 0x6aa   : > { %7116 = vmatmul.mubr.msk.bf16.vlgmr.msra.gmra.mrb[64].mxu1 %vm11052_vm2, %v10249_v50  ;;  %v7869_v50 = vld [vmem:[#allocation22 + $0x40] sm:$0xff]   ;;  %vm11065_vm2 = vmmov %vm11024_vm0 }
 0x6ab   : > { %7119 = vmatprep.mubr.msk.bf16.mxu1 %vm11053_vm8, %v10301_v7  ;;  %7132 = vmatpush3.bf16.msra.mxu1 %v7867_v37  ;;  %vm11066_vm8 = vmmov %vm11024_vm0 }
 0x6ac   : > { %7149 = vmatprep.subr.bf16.mxu1 %v7868_v0 }
 0x6b2   : > { %7120 = vmatmul.mubr.msk.bf16.gmra.mrb[68].mxu1 %vm11054_vm5, %v10314_v62  ;;  %vm11067_vm5 = vmmov %vm11024_vm0 }
 0x6b3   : > { %7123 = vmatprep.mubr.msk.bf16.mxu1 %vm11055_vm11, %v10351_v48  ;;  %vm11068_vm11 = vmmov %vm11024_vm0 }
 0x6ba   : > { %7124 = vmatmul.mubr.msk.bf16.gmra.mrb[72].mxu1 %vm11056_vm3, %v10360_v15  ;;  %vm11069_vm3 = vmmov %vm11024_vm0 }
 0x6bb   : > { %7127 = vmatprep.mubr.msk.bf16.mxu1 %vm11057_vm4, %v10369_v30  ;;  %vm11070_vm4 = vmmov %vm11024_vm0 }
 0x6c2   : > { %7128 = vmatmul.mubr.msk.bf16.gmra.mrb[76].mxu1 %vm11058_vm13, %v10374_v33  ;;  %vm11071_vm13 = vmmov %vm11024_vm0 }
 0x6c3   : > { %7133 = vmatprep.mubr.msk.bf16.mxu1 %vm11059_vm1, %v10301_v7  ;;  %vm11072_vm1 = vmmov %vm11024_vm0 }
 0x6ca   : > { %7134 = vmatmul.mubr.msk.bf16.vlgmr.msra.gmra.mrb[32].mxu1 %vm11060_vm14, %v10314_v62  ;;  %vm11073_vm14 = vmmov %vm11024_vm0 }
 0x6cb   : > { %7137 = vmatprep.mubr.msk.bf16.mxu1 %vm11061_vm9, %v10351_v48  ;;  %7150 = vmatpush3.bf16.msra.mxu1 %v7868_v0  ;;  %vm11074_vm9 = vmmov %vm11024_vm0 }
 0x6cc   : > { %7167 = vmatprep.subr.bf16.mxu1 %v7869_v50 }
 0x6d2   : > { %7138 = vmatmul.mubr.msk.bf16.gmra.mrb[36].mxu1 %vm11062_vm10, %v10360_v15  ;;  %vm11075_vm10 = vmmov %vm11024_vm0 }
 0x6d3   : > { %7141 = vmatprep.mubr.msk.bf16.mxu1 %vm11063_vm15, %v10369_v30  ;;  %vm11076_vm15 = vmmov %vm11024_vm0 }
 0x6da   : > { %7142 = vmatmul.mubr.msk.bf16.gmra.mrb[40].mxu1 %vm11024_vm0, %v10374_v33 }
 0x6db   : > { %7145 = vmatprep.mubr.msk.bf16.mxu1 %vm11064_vm7, %v10378_v58  ;;  %vm11077_vm7 = vmmov %vm11024_vm0 }
 0x6e2   : > { %7146 = vmatmul.mubr.msk.bf16.gmra.mrb[44].mxu1 %vm11065_vm2, %v4299_v36  ;;  %vm11078_vm2 = vmmov %vm11024_vm0 }
 0x6e3   : > { %7151 = vmatprep.mubr.msk.bf16.mxu1 %vm11066_vm8, %v10301_v7  ;;  %vm11079_vm8 = vmmov %vm11024_vm0 }
 0x6ea   : > { %7152 = vmatmul.mubr.msk.bf16.vlgmr.msra.gmra.mrb[48].mxu1 %vm11067_vm5, %v10314_v62  ;;  %vm11080_vm5 = vmmov %vm11024_vm0 }
 0x6eb   : > { %7155 = vmatprep.mubr.msk.bf16.mxu1 %vm11068_vm11, %v10351_v48  ;;  %7168 = vmatpush3.bf16.msra.mxu1 %v7869_v50  ;;  %vm11082_vm11 = vmmov %vm11024_vm0 }
 0x6f2   : > { %7156 = vmatmul.mubr.msk.bf16.gmra.mrb[52].mxu1 %vm11069_vm3, %v10360_v15  ;;  %vm11083_vm3 = vmmov %vm11024_vm0 }
 0x6f3   : > { %7159 = vmatprep.mubr.msk.bf16.mxu1 %vm11070_vm4, %v10369_v30  ;;  %vm11084_vm4 = vmmov %vm11024_vm0 }
 0x6fa   : > { %7160 = vmatmul.mubr.msk.bf16.gmra.mrb[56].mxu1 %vm11071_vm13, %v10374_v33  ;;  %vm11085_vm13 = vmmov %vm11024_vm0 }
 0x6fb   : > { %7163 = vmatprep.mubr.msk.bf16.mxu1 %vm11072_vm1, %v10378_v58  ;;  %vm11086_vm1 = vmmov %vm11024_vm0 }
 0x702   : > { %7164 = vmatmul.mubr.msk.bf16.gmra.mrb[60].mxu1 %vm11073_vm14, %v4299_v36  ;;  %vm11087_vm14 = vmmov %vm11024_vm0 }
 0x703   : > { %7169 = vmatprep.mubr.msk.bf16.mxu1 %vm11074_vm9, %v10301_v7  ;;  %vm11088_vm9 = vmmov %vm11024_vm0 }
 0x70a   : > { %7170 = vmatmul.mubr.msk.bf16.vlgmr.msra.gmra.mrb[64].mxu1 %vm11075_vm10, %v10314_v62  ;;  %vm11090_vm10 = vmmov %vm11024_vm0 }
 0x70b   : > { %7173 = vmatprep.mubr.msk.bf16.mxu1 %vm11076_vm15, %v10351_v48  ;;  %vm11091_vm15 = vmmov %vm11024_vm0 }
 0x712   : > { %7174 = vmatmul.mubr.msk.bf16.gmra.mrb[68].mxu1 %vm11024_vm0, %v10360_v15 }
 0x713   : > { %7177 = vmatprep.mubr.msk.bf16.mxu1 %vm11077_vm7, %v10369_v30  ;;  %vm11092_vm7 = vmmov %vm11024_vm0 }
 0x71a   : > { %7178 = vmatmul.mubr.msk.bf16.gmra.mrb[72].mxu1 %vm11078_vm2, %v10374_v33  ;;  %vm11097_vm2 = vmmov %vm11024_vm0 }
 0x71b   : > { %7181 = vmatprep.mubr.msk.bf16.mxu1 %vm11079_vm8, %v10378_v58  ;;  %vm11098_vm8 = vmmov %vm11024_vm0 }
 0x722   : > { %7182 = vmatmul.mubr.msk.bf16.gmra.mrb[76].mxu1 %vm11080_vm5, %v4299_v36  ;;  %vm11099_vm5 = vmmov %vm11024_vm0 }
 0x79d   : > { %v7135_v43 = vpop.f32.mrb[32].mxu1 }
 0x79e   : > { %v5008_v47 = vpop.f32.mrb[33].mxu1  ;;  %v5350_v13 = vrot.slane %v7135_v43, 7 }
 0x79f   : > { %v7136_v59 = vpop.f32.mrb[34].mxu1  ;;  %v5347_v7 = vrot.slane %v5008_v47, 7 }
 0x7a0   : > { %v5351_v54 = vrot.slane %v7136_v59, 7  ;;  %v5011_v16 = vpop.f32.mrb[35].mxu1  ;;  %v5388_v26 = vsel %vm3960_vm12, 0.0, %v5350_v13 }
 0x7a1   : > { %v5348_v20 = vrot.slane %v5011_v16, 7  ;;  %v5387_v27 = vsel %vm3960_vm12, 0.0, %v5347_v7 }
 0x7a2   : > { %v5352_v8 = vsel %vm3960_vm12, %v5350_v13, %v5351_v54 }
 0x7a3   : > { %v5349_v62 = vsel %vm3960_vm12, %v5347_v7, %v5348_v20 }
 0x7a5   : > { %v7139_v1 = vpop.f32.mrb[36].mxu1 }
 0x7a6   : > { %v5024_v4 = vpop.f32.mrb[37].mxu1  ;;  %v5356_v32 = vrot.slane %v7139_v1, 7 }
 0x7a7   : > { %v7140_v11 = vpop.f32.mrb[38].mxu1  ;;  %v5353_v53 = vrot.slane %v5024_v4, 7 }
 0x7a8   : > { %v5357_v60 = vrot.slane %v7140_v11, 7  ;;  %v5027_v44 = vpop.f32.mrb[39].mxu1  ;;  %v5390_v6 = vsel %vm3960_vm12, 0.0, %v5356_v32 }
 0x7a9   : > { %v5354_v45 = vrot.slane %v5027_v44, 7  ;;  %v5389_v33 = vsel %vm3960_vm12, 0.0, %v5353_v53 }
 0x7aa   : > { %v5358_v63 = vsel %vm3960_vm12, %v5356_v32, %v5357_v60 }
 0x7ab   : > { %v5355_v2 = vsel %vm3960_vm12, %v5353_v53, %v5354_v45 }
 0x7ad   : > { %v7143_v29 = vpop.f32.mrb[40].mxu1 }
 0x7ae   : > { %v5040_v49 = vpop.f32.mrb[41].mxu1  ;;  %v5362_v25 = vrot.slane %v7143_v29, 7 }
 0x7af   : > { %v7144_v5 = vpop.f32.mrb[42].mxu1  ;;  %v5359_v14 = vrot.slane %v5040_v49, 7 }
 0x7b0   : > { %v5363_v35 = vrot.slane %v7144_v5, 7  ;;  %v5043_v52 = vpop.f32.mrb[43].mxu1  ;;  %v5392_v0 = vsel %vm3960_vm12, 0.0, %v5362_v25 }
 0x7b1   : > { %v5360_v41 = vrot.slane %v5043_v52, 7  ;;  %v5391_v43 = vsel %vm3960_vm12, 0.0, %v5359_v14 }
 0x7b2   : > { %v5364_v9 = vsel %vm3960_vm12, %v5362_v25, %v5363_v35 }
 0x7b3   : > { %v5361_v12 = vsel %vm3960_vm12, %v5359_v14, %v5360_v41  ;;  %v10547_v14 = vld [vmem:[#allocation24] ss:$0 sm:$0xff] }
 0x7b5   : > { %v7147_v17 = vpop.f32.mrb[44].mxu1 }
 0x7b6   : > { %v5056_v28 = vpop.f32.mrb[45].mxu1  ;;  %v5368_v42 = vrot.slane %v7147_v17, 7 }
 0x7b7   : > { %v7148_v34 = vpop.f32.mrb[46].mxu1  ;;  %v5365_v61 = vrot.slane %v5056_v28, 7 }
 0x7b8   : > { %v5369_v19 = vrot.slane %v7148_v34, 7  ;;  %v5059_v21 = vpop.f32.mrb[47].mxu1  ;;  %v5394_v20 = vsel %vm3960_vm12, 0.0, %v5368_v42 }
 0x7b9   : > { %v5366_v51 = vrot.slane %v5059_v21, 7  ;;  %v5393_v1 = vsel %vm3960_vm12, 0.0, %v5365_v61 }
 0x7ba   : > { %v5370_v46 = vsel %vm3960_vm12, %v5368_v42, %v5369_v19 }
 0x7bb   : > { %v5367_v48 = vsel %vm3960_vm12, %v5365_v61, %v5366_v51  ;;  %v10555_v61 = vld [vmem:[%s9351_s8] ss:$0 sm:$0xff]  ;;  %vm11081_vm12 = vmmov %vm11024_vm0  ;;  %s11095_s8 = smov %s11094_s26 }
 0x7bd   : > { %v7153_v15 = vpop.f32.mrb[48].mxu1 }
 0x7be   : > { %v5397_v23 = vadd.f32 %v7153_v15, %v5388_v26  ;;  %v5130_v56 = vpop.f32.mrb[49].mxu1 }
 0x7bf   : > { %v5395_v24 = vadd.f32 %v5387_v27, %v5130_v56  ;;  %v7154_v57 = vpop.f32.mrb[50].mxu1 }
 0x7c0   : > { %v5398_v38 = vadd.f32 %v7154_v57, %v5352_v8  ;;  %v5133_v39 = vpop.f32.mrb[51].mxu1 }
 0x7c1   : > { %v5396_v40 = vadd.f32 %v5349_v62, %v5133_v39 }
 0x7c5   : > { %v7157_v22 = vpop.f32.mrb[52].mxu1 }
 0x7c6   : > { %v10516_v10 = vadd.f32 %v7157_v22, %v5390_v6  ;;  %v5146_v30 = vpop.f32.mrb[53].mxu1 }
 0x7c7   : > { %v10519_v58 = vadd.f32 %v5389_v33, %v5146_v30  ;;  %v7158_v3 = vpop.f32.mrb[54].mxu1 }
 0x7c8   : > { %v10521_v18 = vadd.f32 %v7158_v3, %v5358_v63  ;;  %v5149_v31 = vpop.f32.mrb[55].mxu1 }
 0x7c9   : > { %v10523_v55 = vadd.f32 %v5355_v2, %v5149_v31 }
 0x7cd   : > { %v7161_v37 = vpop.f32.mrb[56].mxu1 }
 0x7ce   : > { %v10526_v50 = vadd.f32 %v7161_v37, %v5392_v0  ;;  %v5162_v36 = vpop.f32.mrb[57].mxu1 }
 0x7cf   : > { %v10529_v47 = vadd.f32 %v5391_v43, %v5162_v36  ;;  %v7162_v59 = vpop.f32.mrb[58].mxu1 }
 0x7d0   : > { %v10531_v13 = vadd.f32 %v7162_v59, %v5364_v9  ;;  %v5165_v54 = vpop.f32.mrb[59].mxu1 }
 0x7d1   : > { %v10533_v16 = vadd.f32 %v5361_v12, %v5165_v54 }
 0x7d5   : > { %v7165_v7 = vpop.f32.mrb[60].mxu1 }
 0x7d6   : > { %v10536_v8 = vadd.f32 %v7165_v7, %v5394_v20  ;;  %v5178_v62 = vpop.f32.mrb[61].mxu1 }
 0x7d7   : > { %v10539_v4 = vadd.f32 %v5393_v1, %v5178_v62  ;;  %v7166_v11 = vpop.f32.mrb[62].mxu1 }
 0x7d8   : > { %v10541_v32 = vadd.f32 %v7166_v11, %v5370_v46  ;;  %v5181_v60 = vpop.f32.mrb[63].mxu1 }
 0x7d9   : > { %v10543_v44 = vadd.f32 %v5367_v48, %v5181_v60 }
 0x7dd   : > { %v7171_v53 = vpop.f32.mrb[64].mxu1 }
 0x7de   : > { %v5252_v45 = vpop.f32.mrb[65].mxu1  ;;  %v5430_v2 = vrot.slane %v7171_v53, 1 }
 0x7df   : > { %v7172_v63 = vpop.f32.mrb[66].mxu1  ;;  %v5427_v5 = vrot.slane %v5252_v45, 1 }
 0x7e0   : > { %v5431_v29 = vrot.slane %v7172_v63, 1  ;;  %v5255_v49 = vpop.f32.mrb[67].mxu1 }
 0x7e1   : > { %v5428_v25 = vrot.slane %v5255_v49, 1 }
 0x7e2   : > { %v5432_v35 = vsel %vm4061_vm6, %v5430_v2, %v5431_v29  ;;  %v5468_v52 = vsel %vm4061_vm6, %v5431_v29, 0.0 }
 0x7e3   : > { %v5477_v41 = vadd.f32 %v5432_v35, %v5397_v23  ;;  %v5478_v9 = vadd.f32 %v5468_v52, %v5398_v38  ;;  %v5429_v12 = vsel %vm4061_vm6, %v5427_v5, %v5428_v25  ;;  %v5467_v17 = vsel %vm4061_vm6, %v5428_v25, 0.0 }
 0x7e4   : > { %v5475_v28 = vadd.f32 %v5429_v12, %v5395_v24  ;;  %v5476_v34 = vadd.f32 %v5467_v17, %v5396_v40 }
 0x7e5   : > { %v5500_v42 = vadd.f32 %v10547_v14, %v5477_v41  ;;  %v5501_v19 = vadd.f32 %v10547_v14, %v5478_v9  ;;  %v7175_v21 = vpop.f32.mrb[68].mxu1 }
 0x7e6   : > { %v5498_v51 = vadd.f32 %v10547_v14, %v5475_v28  ;;  %v5499_v46 = vadd.f32 %v10547_v14, %v5476_v34  ;;  %v5268_v48 = vpop.f32.mrb[69].mxu1  ;;  %v5436_v24 = vrot.slane %v7175_v21, 1 }
 0x7e7   : > { %v5516_v15 = vmax.f32 %v5500_v42, 0.0  ;;  %v5517_v26 = vmax.f32 %v5501_v19, 0.0  ;;  %v7176_v23 = vpop.f32.mrb[70].mxu1  ;;  %v5433_v22 = vrot.slane %v5268_v48, 1 }
 0x7e8   : > { %v5514_v56 = vmax.f32 %v5498_v51, 0.0  ;;  %v5515_v27 = vmax.f32 %v5499_v46, 0.0  ;;  %v5437_v57 = vrot.slane %v7176_v23, 1  ;;  %v5271_v38 = vpop.f32.mrb[71].mxu1 }
 0x7e9   : > { %v5539_v39 = vadd.f32 %v10555_v61, %v5516_v15  ;;  %v5540_v40 = vadd.f32 %v10555_v61, %v5517_v26  ;;  %v5434_v6 = vrot.slane %v5271_v38, 1 }
 0x7ea   : > { %v5537_v30 = vadd.f32 %v10555_v61, %v5514_v56  ;;  %v5538_v33 = vadd.f32 %v10555_v61, %v5515_v27  ;;  %v5438_v3 = vsel %vm4061_vm6, %v5436_v24, %v5437_v57  ;;  %v5470_v31 = vsel %vm4061_vm6, %v5437_v57, 0.0 }
 0x7eb   : > { %5555 = vst.msk [vmem:[%s10565_s24 + $0x10] sm:$0xff] %vm11081_vm12, %v5539_v39  ;;  %v5481_v37 = vadd.f32 %v5438_v3, %v10516_v10  ;;  %v5482_v0 = vadd.f32 %v5470_v31, %v10521_v18  ;;  %v5435_v36 = vsel %vm4061_vm6, %v5433_v22, %v5434_v6  ;;  %v5469_v43 = vsel %vm4061_vm6, %v5434_v6, 0.0 }
 0x7ec   : > { %5556 = vst.msk [vmem:[%s10565_s24 + $0x18] sm:$0xff] %vm11082_vm11, %v5540_v40  ;;  %v5479_v59 = vadd.f32 %v5435_v36, %v10519_v58  ;;  %v5480_v54 = vadd.f32 %v5469_v43, %v10523_v55 }
 0x7ed   : > { %5553 = vst.msk [vmem:[%s10565_s24] sm:$0xff] %vm11083_vm3, %v5537_v30  ;;  %v5504_v7 = vadd.f32 %v10547_v14, %v5481_v37  ;;  %v5505_v20 = vadd.f32 %v10547_v14, %v5482_v0  ;;  %v7179_v62 = vpop.f32.mrb[72].mxu1 }
 0x7ee   : > { %5554 = vst.msk [vmem:[%s10565_s24 + $0x8] sm:$0xff] %vm11084_vm4, %v5538_v33  ;;  %v5502_v10 = vadd.f32 %v10547_v14, %v5479_v59  ;;  %v5503_v18 = vadd.f32 %v10547_v14, %v5480_v54  ;;  %v5284_v1 = vpop.f32.mrb[73].mxu1  ;;  %v5442_v58 = vrot.slane %v7179_v62, 1 }
 0x7ef   : > { %v5520_v11 = vmax.f32 %v5504_v7, 0.0  ;;  %v5521_v60 = vmax.f32 %v5505_v20, 0.0  ;;  %v7180_v53 = vpop.f32.mrb[74].mxu1  ;;  %v5439_v5 = vrot.slane %v5284_v1, 1 }
 0x7f0   : > { %v5518_v45 = vmax.f32 %v5502_v10, 0.0  ;;  %v5519_v63 = vmax.f32 %v5503_v18, 0.0  ;;  %v5443_v2 = vrot.slane %v7180_v53, 1  ;;  %v5287_v55 = vpop.f32.mrb[75].mxu1 }
 0x7f1   : > { %v5543_v29 = vadd.f32 %v10555_v61, %v5520_v11  ;;  %v5544_v49 = vadd.f32 %v10555_v61, %v5521_v60  ;;  %v5440_v25 = vrot.slane %v5287_v55, 1 }
 0x7f2   : > { %v5541_v35 = vadd.f32 %v10555_v61, %v5518_v45  ;;  %v5542_v52 = vadd.f32 %v10555_v61, %v5519_v63  ;;  %v5444_v41 = vsel %vm4061_vm6, %v5442_v58, %v5443_v2  ;;  %v5472_v9 = vsel %vm4061_vm6, %v5443_v2, 0.0 }
 0x7f3   : > { %5559 = vst.msk [vmem:[%s10565_s24 + $0x30] sm:$0xff] %vm11085_vm13, %v5543_v29  ;;  %v5485_v12 = vadd.f32 %v5444_v41, %v10526_v50  ;;  %v5486_v17 = vadd.f32 %v5472_v9, %v10531_v13  ;;  %v5441_v28 = vsel %vm4061_vm6, %v5439_v5, %v5440_v25  ;;  %v5471_v34 = vsel %vm4061_vm6, %v5440_v25, 0.0 }
 0x7f4   : > { %5560 = vst.msk [vmem:[%s10565_s24 + $0x38] sm:$0xff] %vm11086_vm1, %v5544_v49  ;;  %v5483_v42 = vadd.f32 %v5441_v28, %v10529_v47  ;;  %v5484_v19 = vadd.f32 %v5471_v34, %v10533_v16 }
 0x7f5   : > { %5557 = vst.msk [vmem:[%s10565_s24 + $0x20] sm:$0xff] %vm11087_vm14, %v5541_v35  ;;  %v5508_v21 = vadd.f32 %v10547_v14, %v5485_v12  ;;  %v5509_v50 = vadd.f32 %v10547_v14, %v5486_v17  ;;  %v7183_v51 = vpop.f32.mrb[76].mxu1 }
 0x7f6   : > { %5558 = vst.msk [vmem:[%s10565_s24 + $0x28] sm:$0xff] %vm11088_vm9, %v5542_v52  ;;  %v5506_v13 = vadd.f32 %v10547_v14, %v5483_v42  ;;  %v5507_v46 = vadd.f32 %v10547_v14, %v5484_v19  ;;  %v5300_v48 = vpop.f32.mrb[77].mxu1  ;;  %v5448_v16 = vrot.slane %v7183_v51, 1 }
 0x7f7   : > { %v5524_v15 = vmax.f32 %v5508_v21, 0.0  ;;  %v5525_v26 = vmax.f32 %v5509_v50, 0.0  ;;  %v7184_v23 = vpop.f32.mrb[78].mxu1  ;;  %v5445_v39 = vrot.slane %v5300_v48, 1 }
 0x7f8   : > { %v5522_v47 = vmax.f32 %v5506_v13, 0.0  ;;  %v5523_v56 = vmax.f32 %v5507_v46, 0.0  ;;  %v5449_v27 = vrot.slane %v7184_v23, 1  ;;  %v5303_v24 = vpop.f32.mrb[79].mxu1 }
 0x7f9   : > { %v5547_v57 = vadd.f32 %v10555_v61, %v5524_v15  ;;  %v5548_v38 = vadd.f32 %v10555_v61, %v5525_v26  ;;  %v5446_v40 = vrot.slane %v5303_v24, 1 }
 0x7fa   : > { %v5545_v22 = vadd.f32 %v10555_v61, %v5522_v47  ;;  %v5546_v6 = vadd.f32 %v10555_v61, %v5523_v56  ;;  %v5450_v30 = vsel %vm4061_vm6, %v5448_v16, %v5449_v27  ;;  %v5474_v33 = vsel %vm4061_vm6, %v5449_v27, 0.0 }
 0x7fb   : > { %5563 = vst.msk [vmem:[%s10565_s24 + $0x50] sm:$0xff] %vm11090_vm10, %v5547_v57  ;;  %v5489_v3 = vadd.f32 %v5450_v30, %v10536_v8  ;;  %v5490_v31 = vadd.f32 %v5474_v33, %v10541_v32  ;;  %v5447_v37 = vsel %vm4061_vm6, %v5445_v39, %v5446_v40  ;;  %v5473_v0 = vsel %vm4061_vm6, %v5446_v40, 0.0  ;;  %vm11096_vm6 = vmmov %vm11024_vm0 }
 0x7fc   : > { %5564 = vst.msk [vmem:[%s10565_s24 + $0x58] sm:$0xff] %vm11091_vm15, %v5548_v38  ;;  %v5487_v36 = vadd.f32 %v5447_v37, %v10539_v4  ;;  %v5488_v43 = vadd.f32 %v5473_v0, %v10543_v44 }
 0x7fd   : > { %5561 = vst.msk [vmem:[%s10565_s24 + $0x40] sm:$0xff] %vm11024_vm0, %v5545_v22  ;;  %v5512_v59 = vadd.f32 %v10547_v14, %v5489_v3  ;;  %v5513_v8 = vadd.f32 %v10547_v14, %v5490_v31 }
 0x7fe   : > { %5562 = vst.msk [vmem:[%s10565_s24 + $0x48] sm:$0xff] %vm11092_vm7, %v5546_v6  ;;  %v5510_v32 = vadd.f32 %v10547_v14, %v5487_v36  ;;  %v5511_v54 = vadd.f32 %v10547_v14, %v5488_v43 }
 0x7ff   : > { %v5528_v7 = vmax.f32 %v5512_v59, 0.0  ;;  %v5529_v20 = vmax.f32 %v5513_v8, 0.0 }
 0x800   : > { %v5526_v4 = vmax.f32 %v5510_v32, 0.0  ;;  %v5527_v44 = vmax.f32 %v5511_v54, 0.0 }
 0x801   : > { %v5551_v62 = vadd.f32 %v10555_v61, %v5528_v7  ;;  %v5552_v10 = vadd.f32 %v10555_v61, %v5529_v20 }
 0x802   : > { %v5549_v14 = vadd.f32 %v10555_v61, %v5526_v4  ;;  %v5550_v18 = vadd.f32 %v10555_v61, %v5527_v44 }
 0x803   : > { %5567 = vst.msk [vmem:[%s10565_s24 + $0x70] sm:$0xff] %vm11096_vm6, %v5551_v62 }
 0x804   : > { %5568 = vst.msk [vmem:[%s10565_s24 + $0x78] sm:$0xff] %vm11097_vm2, %v5552_v10 }
 0x805   : > { %5565 = vst.msk [vmem:[%s10565_s24 + $0x60] sm:$0xff] %vm11098_vm8, %v5549_v14 }
 0x806   : > { %5566 = vst.msk [vmem:[%s10565_s24 + $0x68] sm:$0xff] %vm11099_vm5, %v5550_v18 }
 0x807   : > { %8289 = shalt.err (!%p8286_p13)
}
 0x808   : > { %s8290_s22 = scalar_lea.hbm %s10641_s23, 2048  ;;  %s8294_s28 = scalar_lea.hbm %s11095_s8, 8192 }
 0x809   : > { %p8291_p7 = scmp.ne.s32.totalorder %s10641_s23, %s8290_s22  ;;  %p8295_p6 = scmp.lt.u32.totalorder %s10641_s23, %s11095_s8 }
 0x80a   : > { %p8296_p3 = scmp.lt.u32.totalorder %s8294_s28, %s8290_s22  ;;  %p8298_p4 = scmp.lt.u32.totalorder %s8290_s22, %s10641_s23 }
 0x80b   : > { %p8292_p12 = pnand %p8291_p7, %p11100_p5 }
 0x80c   : > { %p8297_p9 = por %p8296_p3, %p8295_p6 }
 0x80d   : > { %p8293_p0 = pneg %p8292_p12 }
 0x80e   : > { %p8299_p11 = por %p8298_p4, %p8297_p9 }
 0x810   : > { %p8300_p1 = pnand %p8299_p11, %p8293_p0 }
 0x812   : > { %8303 = shalt.err (!%p8300_p1)
}
 0x813   : > { %s8507_s1 = smov 128   ;;  %s8508_s20 = smov 8  }
 0x814   : > { %7641 = dma.vmem_to_hbm [thread:$0]  (%p11100_p5), %s10643_s15, 2048, %s10641_s23, %s5570_s27, %s8507_s1, %s8507_s1, %s8508_s20  }
 0x815 PF: > { %s11101_s6 = sld [smem:[#allocation48_spill]]  ;;  %p7706_p8 = scmp.ge.s32.totalorder %s8486_s14, 2 }
 0x816   : > { %s11102_s17 = sld [smem:[#allocation64_spill]] }
 0x81b   : > { %s5601_s26 = sand.u32 1, %s11101_s6  }
 0x81c   : > { %p11103_p10 = scmp.ne.s32.totalorder %s11102_s17, 0  ;;  %s5602_s13 = scalar_lea.sflag [#allocation6], %s5601_s26 }
 0x81e   : > { %p7688_p2 = pnand %p7706_p8, %p11103_p10 }
 0x820   : > { %8417 = dma.done.wait (!%p7688_p2), %s5602_s13, 2048  }
 0x821   : > { %8419 = vsyncadd (!%p7688_p2), %s5602_s13, 4294965248  ;;  %s45_s14 = sadd.s32 1, %s8486_s14   ;;  %s11105_s29 = sld [smem:[#allocation41_spill]] }
 0x822   : > { %p10684_p13 = scmp.ge.s32.totalorder %s45_s14, 6   ;;  %s11106_s21 = sld [smem:[#allocation42_spill]] }
 0x823   : > { %s11107_s23 = sld [smem:[#allocation44_spill]]  ;;  %s11108_s17 = sld [smem:[#allocation45_spill]] }
 0x824   : > { %s11109_s27 = smov %s11146_s30  ;;  %s11110_s12 = sld [smem:[#allocation46_spill]] }
 0x825   : > { %s11111_s20 = sld [smem:[#allocation47_spill]]  ;;  %s11112_s9 = sld [smem:[#allocation59_spill]] }
 0x826   : > { %s11113_s22 = sld [smem:[#allocation49_spill]]  ;;  %s11114_s24 = sld [smem:[#allocation50_spill]] }
 0x827   : > { %s11115_s28 = sld [smem:[#allocation61_spill]]  ;;  %s11116_s25 = sld [smem:[#allocation53_spill]] }
 0x828   : > { %s11117_s26 = sld [smem:[#allocation54_spill]]  ;;  %s11118_s10 = sld [smem:[#allocation56_spill]] }
 0x829   : > { %s11119_s1 = sld [smem:[#allocation57_spill]]  ;;  %s11120_s30 = smov %s11106_s21 }
 0x82a   : > { %s11122_s15 = smov %s9235_s19  ;;  %s11123_s16 = smov %s11107_s23 }
 0x82b   : > { %s11124_s18 = smov %s11109_s27  ;;  %s11125_s19 = smov %s11110_s12 }
 0x82c   : > { %s11126_s21 = smov %s11112_s9  ;;  %s11127_s23 = smov %s11114_s24 }
 0x82d   : > { %s11128_s24 = smov %s11115_s28  ;;  %44 = sbr.rel (!%p10684_p13) target bundleno = 39 (0x27), region = 273 }
 0x82e   : > { %s11129_s27 = smov %s11118_s10 }
 0x82f   : > { %s11130_s28 = smov %s11119_s1 }
 0x834   :  { %5607 = vsyncpa [#allocation5], 1 }
 0x835   :  { %5609 = vsyncpa [#allocation5 + $0x1], 1 }
 0x836   :  { %5610 = vsyncpa [#allocation8], 1 }
 0x837   :  { %5612 = vsyncpa [#allocation8 + $0x1], 1 }
 0x838   :  { %5613 = vsyncpa [#allocation11], 1 }
 0x839   :  { %5615 = vsyncpa [#allocation11 + $0x1], 1 }
 0x83a   :  { %5616 = vsyncpa [#allocation14], 1 }
 0x83b   :  { %5618 = vsyncpa [#allocation14 + $0x1], 1 }
 0x83c   :  { %5619 = vsyncpa [#allocation17], 1 }
 0x83d   :  { %5620 = vsyncpa [#allocation20], 1 }
 0x83e   :  { %5621 = vsyncpa [#allocation23], 1 }
 0x83f   :  { %5622 = vsyncpa [#allocation26], 1 }
 0x840   :  { %5624 = vsyncpa [#allocation26 + $0x1], 1 }
 0x841   :  { %5625 = vsyncpa [#allocation6], 1 }
 0x842   :  { %5627 = vsyncpa [#allocation6 + $0x1], 1 }

</bundles_post_ra>
